<compile_context>
chip_gen: v6e
topology: v6e:2x2x1
jax: 0.10.0
libtpu: 0.0.40
codegen_flags: <defaults>
</compile_context>

<pallas_src>
import functools

import jax
import jax.numpy as jnp
from jax import lax
from jax.experimental import pallas as pl
from jax.experimental.pallas import tpu as pltpu


def resblock_kernel(x_ref, mask_ref, w1_ref, b1_ref, w2_ref, b2_ref, o_ref, *, wp):
    """One batch element per grid step; padded spatial grid flattened on lanes.

    x_ref   : (1, C, Mp) f32  zero-padded input; (H+2, W+2) flattened along
                              the lane axis, Mp a multiple of 128.
    mask_ref: (1, Mp)    f32  1.0 where padded coords (i, j) satisfy i < H and
                              j < W, else 0.0 (supplies conv2's zero padding).
    w*_ref  : (C, 9*C)   bf16 3x3 weights, (dy, dx, ci) flattened on axis 1.
    b*_ref  : (C, 1)     f32  biases (broadcast along lanes).
    o_ref   : (1, C, Mp)      conv output over the whole padded grid; the
                              wrapper keeps only the top-left (H, W) corner.
    """
    mp = x_ref.shape[-1]
    x = x_ref[0]                                   # (C, Mp) f32
    mask = mask_ref[...]                           # (1, Mp) f32

    def shifted(v, s):
        # result[:, p] = v[:, (p + s) % Mp]. Wrapped lanes only ever land in
        # masked and/or cropped positions, so they never affect kept outputs.
        k = (-s) % mp
        return pltpu.roll(v, k, axis=1) if k else v

    def im2col(v, shifts, reuse):
        rows = [(reuse[s] if s in reuse else shifted(v, s)).astype(jnp.bfloat16)
                for s in shifts]
        return jnp.concatenate(rows, axis=0)       # (9*C, Mp) bf16

    # Tap (dy, dx) of output pixel p = h*Wp + w reads xpad_flat[p + dy*Wp + dx].
    shifts1 = [dy * wp + dx for dy in range(3) for dx in range(3)]
    # conv2 sees the conv1 image at the top-left of the padded grid, so its
    # taps are offset by -(Wp + 1): act_flat[p + (dy-1)*Wp + (dx-1)].
    shifts2 = [s - (wp + 1) for s in shifts1]

    # Centre tap of x doubles as the residual skip connection (x[h, w]).
    x_center = shifted(x, wp + 1)                  # (C, Mp) f32

    # ---- conv1 ----
    wide1 = im2col(x, shifts1, {wp + 1: x_center})
    pre1 = jnp.dot(w1_ref[...], wide1, preferred_element_type=jnp.float32)
    # ReLU + interior mask: zero everywhere conv2 must see zero padding.
    act = jnp.maximum(pre1 + b1_ref[...], 0.0) * mask          # (C, Mp) f32

    # ---- conv2 + residual ----
    wide2 = im2col(act, shifts2, {})
    out = jnp.dot(w2_ref[...], wide2, preferred_element_type=jnp.float32)
    o_ref[0] = (out + b2_ref[...] + x_center).astype(o_ref.dtype)


@jax.jit
def residual_block_nchw(x, w1, b1, w2, b2):
    """x: (N, C, H, W) float32. w*: (3, 3, C, C) HWIO. b*: (C,). Returns NCHW."""
    N, C, H, W = x.shape
    Hp, Wp = H + 2, W + 2
    M = Hp * Wp
    Mp = ((M + 127) // 128) * 128          # lane-align the flattened grid

    x_pad = jnp.pad(x, ((0, 0), (0, 0), (1, 1), (1, 1))).reshape(N, C, M)
    x_pad = jnp.pad(x_pad, ((0, 0), (0, 0), (0, Mp - M)))

    # (dy, dx, ci) flattened as contraction axis; transposed so C_out sits on sublanes.
    w1t = w1.reshape(9 * C, C).T.astype(jnp.bfloat16)          # (C, 9C)
    w2t = w2.reshape(9 * C, C).T.astype(jnp.bfloat16)
    b1r = b1.reshape(C, 1).astype(jnp.float32)
    b2r = b2.reshape(C, 1).astype(jnp.float32)

    ii = jnp.arange(Hp)[:, None]
    jj = jnp.arange(Wp)[None, :]
    mask = ((ii < H) & (jj < W)).astype(jnp.float32).reshape(1, M)
    mask = jnp.pad(mask, ((0, 0), (0, Mp - M)))

    kernel = functools.partial(resblock_kernel, wp=Wp)
    out_flat = pl.pallas_call(
        kernel,
        out_shape=jax.ShapeDtypeStruct((N, C, Mp), x.dtype),
        grid_spec=pltpu.PrefetchScalarGridSpec(
            num_scalar_prefetch=0,
            grid=(N,),
            in_specs=[
                pl.BlockSpec((1, C, Mp), lambda n: (n, 0, 0)),
                pl.BlockSpec((1, Mp), lambda n: (0, 0)),
                pl.BlockSpec((C, 9 * C), lambda n: (0, 0)),
                pl.BlockSpec((C, 1), lambda n: (0, 0)),
                pl.BlockSpec((C, 9 * C), lambda n: (0, 0)),
                pl.BlockSpec((C, 1), lambda n: (0, 0)),
            ],
            out_specs=pl.BlockSpec((1, C, Mp), lambda n: (n, 0, 0)),
        ),
        compiler_params=pltpu.CompilerParams(
            dimension_semantics=("parallel",)),
    )(x_pad, mask, w1t, b1r, w2t, b2r)

    out = out_flat[:, :, :M].reshape(N, C, Hp, Wp)
    return out[:, :, :H, :W]


def reference_nchw(x, w1, b1, w2, b2):
    """Pure-JAX f32 reference (lax conv) for correctness checking."""
    dn = ("NCHW", "HWIO", "NCHW")
    out = lax.conv_general_dilated(x, w1, (1, 1), "SAME", dimension_numbers=dn)
    out = jnp.maximum(out + b1[None, :, None, None], 0.0)
    out = lax.conv_general_dilated(out, w2, (1, 1), "SAME", dimension_numbers=dn)
    return x + out + b2[None, :, None, None]


if __name__ == "__main__":
    nf = 64          # matches nn.Conv2d(nf, nf, 3, 1, 1) default nf=64
    N, H, W = 2, 16, 16

    key = jax.random.PRNGKey(0)
    kx, kw1, kb1, kw2, kb2 = jax.random.split(key, 5)

    # Deterministic synthetic parameters (HWIO layout, equiv. to PyTorch OIHW).
    x = jax.random.normal(kx, (N, nf, H, W), jnp.float32)
    w1 = jax.random.normal(kw1, (3, 3, nf, nf), jnp.float32) * 0.05
    b1 = jax.random.normal(kb1, (nf,), jnp.float32) * 0.05
    w2 = jax.random.normal(kw2, (3, 3, nf, nf), jnp.float32) * 0.05
    b2 = jax.random.normal(kb2, (nf,), jnp.float32) * 0.05

    y = jax.block_until_ready(residual_block_nchw(x, w1, b1, w2, b2))

    # Verify against a pure-JAX f32 reference. Kernel uses bf16 MXU operands
    # with f32 accumulation, so tolerances are loosened accordingly.
    y_ref = reference_nchw(x, w1, b1, w2, b2)
    assert y.shape == x.shape and y.dtype == x.dtype
    err = jnp.abs(y - y_ref)
    assert float(jnp.max(err)) < 1e-1, "max error vs reference too large"
    assert float(jnp.mean(err)) < 2e-2, "mean error vs reference too large"

    print("KERNEL_OK")
</pallas_src>

<mosaic_0001>
module attributes {stable_mosaic.version = 11 : i64} {
  func.func @resblock_kernel(%arg0: i32, %arg1: memref<1x64x384xf32, #tpu.memory_space<vmem>>, %arg2: memref<1x384xf32, #tpu.memory_space<vmem>>, %arg3: memref<64x576xbf16, #tpu.memory_space<vmem>>, %arg4: memref<64x1xf32, #tpu.memory_space<vmem>>, %arg5: memref<64x576xbf16, #tpu.memory_space<vmem>>, %arg6: memref<64x1xf32, #tpu.memory_space<vmem>>, %arg7: memref<1x64x384xf32, #tpu.memory_space<vmem>>) attributes {dimension_semantics = [#tpu.dimension_semantics<parallel>], iteration_bounds = array<i64: 2>, scalar_prefetch = 0 : i64, scratch_operands = 0 : i64, tpu.core_type = #tpu.core_type<tc>, window_params = [{transform_indices = @transform_0, window_bounds = array<i64: 1, 64, 384>}, {pipeline_mode = #tpu.pipeline_mode<synchronous>, transform_indices = @transform_1, window_bounds = array<i64: 1, 384>}, {pipeline_mode = #tpu.pipeline_mode<synchronous>, transform_indices = @transform_2, window_bounds = array<i64: 64, 576>}, {pipeline_mode = #tpu.pipeline_mode<synchronous>, transform_indices = @transform_3, window_bounds = array<i64: 64, 1>}, {pipeline_mode = #tpu.pipeline_mode<synchronous>, transform_indices = @transform_4, window_bounds = array<i64: 64, 576>}, {pipeline_mode = #tpu.pipeline_mode<synchronous>, transform_indices = @transform_5, window_bounds = array<i64: 64, 1>}, {transform_indices = @transform_6, window_bounds = array<i64: 1, 64, 384>}]} {
    %c0 = arith.constant 0 : index
    %c0_0 = arith.constant 0 : index
    %c0_1 = arith.constant 0 : index
    %0 = vector.load %arg1[%c0, %c0_0, %c0_1] : memref<1x64x384xf32, #tpu.memory_space<vmem>>, vector<1x64x384xf32>
    %1 = vector.shape_cast %0 : vector<1x64x384xf32> to vector<64x384xf32>
    %c0_2 = arith.constant 0 : index
    %c0_3 = arith.constant 0 : index
    %2 = vector.load %arg2[%c0_2, %c0_3] : memref<1x384xf32, #tpu.memory_space<vmem>>, vector<1x384xf32>
    %c365_i32 = arith.constant 365 : i32
    %3 = tpu.dynamic_rotate %1 by %c365_i32 dim 1 : vector<64x384xf32>, i32 -> vector<64x384xf32>
    %4 = arith.truncf %1 : vector<64x384xf32> to vector<64x384xbf16>
    %c383_i32 = arith.constant 383 : i32
    %5 = tpu.dynamic_rotate %1 by %c383_i32 dim 1 : vector<64x384xf32>, i32 -> vector<64x384xf32>
    %6 = arith.truncf %5 : vector<64x384xf32> to vector<64x384xbf16>
    %c382_i32 = arith.constant 382 : i32
    %7 = tpu.dynamic_rotate %1 by %c382_i32 dim 1 : vector<64x384xf32>, i32 -> vector<64x384xf32>
    %8 = arith.truncf %7 : vector<64x384xf32> to vector<64x384xbf16>
    %c366_i32 = arith.constant 366 : i32
    %9 = tpu.dynamic_rotate %1 by %c366_i32 dim 1 : vector<64x384xf32>, i32 -> vector<64x384xf32>
    %10 = arith.truncf %9 : vector<64x384xf32> to vector<64x384xbf16>
    %11 = arith.truncf %3 : vector<64x384xf32> to vector<64x384xbf16>
    %c364_i32 = arith.constant 364 : i32
    %12 = tpu.dynamic_rotate %1 by %c364_i32 dim 1 : vector<64x384xf32>, i32 -> vector<64x384xf32>
    %13 = arith.truncf %12 : vector<64x384xf32> to vector<64x384xbf16>
    %c348_i32 = arith.constant 348 : i32
    %14 = tpu.dynamic_rotate %1 by %c348_i32 dim 1 : vector<64x384xf32>, i32 -> vector<64x384xf32>
    %15 = arith.truncf %14 : vector<64x384xf32> to vector<64x384xbf16>
    %c347_i32 = arith.constant 347 : i32
    %16 = tpu.dynamic_rotate %1 by %c347_i32 dim 1 : vector<64x384xf32>, i32 -> vector<64x384xf32>
    %17 = arith.truncf %16 : vector<64x384xf32> to vector<64x384xbf16>
    %c346_i32 = arith.constant 346 : i32
    %18 = tpu.dynamic_rotate %1 by %c346_i32 dim 1 : vector<64x384xf32>, i32 -> vector<64x384xf32>
    %19 = arith.truncf %18 : vector<64x384xf32> to vector<64x384xbf16>
    %20 = tpu.concatenate %4, %6, %8, %10, %11, %13, %15, %17, %19 in 0 : vector<64x384xbf16>, vector<64x384xbf16>, vector<64x384xbf16>, vector<64x384xbf16>, vector<64x384xbf16>, vector<64x384xbf16>, vector<64x384xbf16>, vector<64x384xbf16>, vector<64x384xbf16> -> vector<576x384xbf16>
    %c0_4 = arith.constant 0 : index
    %c0_5 = arith.constant 0 : index
    %21 = vector.load %arg3[%c0_4, %c0_5] : memref<64x576xbf16, #tpu.memory_space<vmem>>, vector<64x576xbf16>
    %cst = arith.constant dense<0.000000e+00> : vector<64x384xf32>
    %22 = tpu.matmul %21, %20, %cst {dimension_numbers = #tpu.dot_dimension_numbers<[1], [0], [0], [1], [0, 0, 1, 1], [], []>} : vector<64x576xbf16>, vector<576x384xbf16>, vector<64x384xf32> -> vector<64x384xf32>
    %c0_6 = arith.constant 0 : index
    %c0_7 = arith.constant 0 : index
    %23 = vector.load %arg4[%c0_6, %c0_7] : memref<64x1xf32, #tpu.memory_space<vmem>>, vector<64x1xf32>
    %24 = vector.broadcast %23 : vector<64x1xf32> to vector<64x384xf32>
    %25 = arith.addf %22, %24 : vector<64x384xf32>
    %cst_8 = arith.constant 0.000000e+00 : f32
    %26 = vector.broadcast %cst_8 : f32 to vector<64x384xf32>
    %27 = arith.maximumf %25, %26 : vector<64x384xf32>
    %28 = vector.broadcast %2 : vector<1x384xf32> to vector<64x384xf32>
    %29 = arith.mulf %27, %28 : vector<64x384xf32>
    %c19_i32 = arith.constant 19 : i32
    %30 = tpu.dynamic_rotate %29 by %c19_i32 dim 1 : vector<64x384xf32>, i32 -> vector<64x384xf32>
    %31 = arith.truncf %30 : vector<64x384xf32> to vector<64x384xbf16>
    %c18_i32 = arith.constant 18 : i32
    %32 = tpu.dynamic_rotate %29 by %c18_i32 dim 1 : vector<64x384xf32>, i32 -> vector<64x384xf32>
    %33 = arith.truncf %32 : vector<64x384xf32> to vector<64x384xbf16>
    %c17_i32 = arith.constant 17 : i32
    %34 = tpu.dynamic_rotate %29 by %c17_i32 dim 1 : vector<64x384xf32>, i32 -> vector<64x384xf32>
    %35 = arith.truncf %34 : vector<64x384xf32> to vector<64x384xbf16>
    %c1_i32 = arith.constant 1 : i32
    %36 = tpu.dynamic_rotate %29 by %c1_i32 dim 1 : vector<64x384xf32>, i32 -> vector<64x384xf32>
    %37 = arith.truncf %36 : vector<64x384xf32> to vector<64x384xbf16>
    %38 = arith.truncf %29 : vector<64x384xf32> to vector<64x384xbf16>
    %c383_i32_9 = arith.constant 383 : i32
    %39 = tpu.dynamic_rotate %29 by %c383_i32_9 dim 1 : vector<64x384xf32>, i32 -> vector<64x384xf32>
    %40 = arith.truncf %39 : vector<64x384xf32> to vector<64x384xbf16>
    %c367_i32 = arith.constant 367 : i32
    %41 = tpu.dynamic_rotate %29 by %c367_i32 dim 1 : vector<64x384xf32>, i32 -> vector<64x384xf32>
    %42 = arith.truncf %41 : vector<64x384xf32> to vector<64x384xbf16>
    %c366_i32_10 = arith.constant 366 : i32
    %43 = tpu.dynamic_rotate %29 by %c366_i32_10 dim 1 : vector<64x384xf32>, i32 -> vector<64x384xf32>
    %44 = arith.truncf %43 : vector<64x384xf32> to vector<64x384xbf16>
    %c365_i32_11 = arith.constant 365 : i32
    %45 = tpu.dynamic_rotate %29 by %c365_i32_11 dim 1 : vector<64x384xf32>, i32 -> vector<64x384xf32>
    %46 = arith.truncf %45 : vector<64x384xf32> to vector<64x384xbf16>
    %47 = tpu.concatenate %31, %33, %35, %37, %38, %40, %42, %44, %46 in 0 : vector<64x384xbf16>, vector<64x384xbf16>, vector<64x384xbf16>, vector<64x384xbf16>, vector<64x384xbf16>, vector<64x384xbf16>, vector<64x384xbf16>, vector<64x384xbf16>, vector<64x384xbf16> -> vector<576x384xbf16>
    %c0_12 = arith.constant 0 : index
    %c0_13 = arith.constant 0 : index
    %48 = vector.load %arg5[%c0_12, %c0_13] : memref<64x576xbf16, #tpu.memory_space<vmem>>, vector<64x576xbf16>
    %cst_14 = arith.constant dense<0.000000e+00> : vector<64x384xf32>
    %49 = tpu.matmul %48, %47, %cst_14 {dimension_numbers = #tpu.dot_dimension_numbers<[1], [0], [0], [1], [0, 0, 1, 1], [], []>} : vector<64x576xbf16>, vector<576x384xbf16>, vector<64x384xf32> -> vector<64x384xf32>
    %c0_15 = arith.constant 0 : index
    %c0_16 = arith.constant 0 : index
    %50 = vector.load %arg6[%c0_15, %c0_16] : memref<64x1xf32, #tpu.memory_space<vmem>>, vector<64x1xf32>
    %51 = vector.broadcast %50 : vector<64x1xf32> to vector<64x384xf32>
    %52 = arith.addf %49, %51 : vector<64x384xf32>
    %53 = arith.addf %52, %3 : vector<64x384xf32>
    %c0_17 = arith.constant 0 : index
    %c0_18 = arith.constant 0 : index
    %c0_19 = arith.constant 0 : index
    %54 = vector.load %arg7[%c0_17, %c0_18, %c0_19] : memref<1x64x384xf32, #tpu.memory_space<vmem>>, vector<1x64x384xf32>
    %55 = vector.shape_cast %54 : vector<1x64x384xf32> to vector<64x384xf32>
    %56 = vector.shape_cast %53 : vector<64x384xf32> to vector<1x64x384xf32>
    tpu.vector_store %arg7[%c0_17, %c0_18, %c0_19], %56 {strides = array<i32>} : memref<1x64x384xf32, #tpu.memory_space<vmem>>, vector<1x64x384xf32>,
    return
  }
  func.func @transform_0(%arg0: i32) -> (i32, i32, i32) {
    %c0_i32 = arith.constant 0 : i32
    %c0_i32_0 = arith.constant 0 : i32
    %c0_i32_1 = arith.constant 0 : i32
    return %arg0, %c0_i32, %c0_i32_0 : i32, i32, i32
  }
  func.func @transform_1(%arg0: i32) -> (i32, i32) {
    %c0_i32 = arith.constant 0 : i32
    %c0_i32_0 = arith.constant 0 : i32
    %c0_i32_1 = arith.constant 0 : i32
    return %c0_i32, %c0_i32_0 : i32, i32
  }
  func.func @transform_2(%arg0: i32) -> (i32, i32) {
    %c0_i32 = arith.constant 0 : i32
    %c0_i32_0 = arith.constant 0 : i32
    %c0_i32_1 = arith.constant 0 : i32
    return %c0_i32, %c0_i32_0 : i32, i32
  }
  func.func @transform_3(%arg0: i32) -> (i32, i32) {
    %c0_i32 = arith.constant 0 : i32
    %c0_i32_0 = arith.constant 0 : i32
    %c0_i32_1 = arith.constant 0 : i32
    return %c0_i32, %c0_i32_0 : i32, i32
  }
  func.func @transform_4(%arg0: i32) -> (i32, i32) {
    %c0_i32 = arith.constant 0 : i32
    %c0_i32_0 = arith.constant 0 : i32
    %c0_i32_1 = arith.constant 0 : i32
    return %c0_i32, %c0_i32_0 : i32, i32
  }
  func.func @transform_5(%arg0: i32) -> (i32, i32) {
    %c0_i32 = arith.constant 0 : i32
    %c0_i32_0 = arith.constant 0 : i32
    %c0_i32_1 = arith.constant 0 : i32
    return %c0_i32, %c0_i32_0 : i32, i32
  }
  func.func @transform_6(%arg0: i32) -> (i32, i32, i32) {
    %c0_i32 = arith.constant 0 : i32
    %c0_i32_0 = arith.constant 0 : i32
    %c0_i32_1 = arith.constant 0 : i32
    return %arg0, %c0_i32, %c0_i32_0 : i32, i32, i32
  }
}

</mosaic_0001>

<bundles_post_ra>
// kernel: residual_block_nchw.1
= control target key start
LH: loop header
LB: loop body
LE: loop exit
PB: predicated region body
PF: predicated region fallthrough
CT: control target
= control target key end

     0   :  { %s4348_s21 = smov 0   ;;  %s8067_s0 = inlined_call_operand.vmem [shape: f32[2,64,384], index: 0, kind: input, shape index: {}]   ;;  %s8068_s1 = inlined_call_operand.vmem [shape: f32[1,384], index: 1, kind: input, shape index: {}]   ;;  %s8069_s2 = inlined_call_operand.vmem [shape: bf16[64,576], index: 2, kind: input, shape index: {}]   ;;  %s8070_s3 = inlined_call_operand.vmem [shape: f32[64,1], index: 3, kind: input, shape index: {}]   ;;  %s8071_s4 = inlined_call_operand.vmem [shape: bf16[64,576], index: 4, kind: input, shape index: {}]   ;;  %s8072_s5 = inlined_call_operand.vmem [shape: f32[64,1], index: 5, kind: input, shape index: {}]   ;;  %s8073_s6 = inlined_call_operand.vmem [shape: f32[2,64,384], index: 6, kind: output, shape index: {}]  }
   0x1 LB: > { %s3025_s22 = sadd.s32 4294967295, %s4297_s21   ;;  %p3029_p0 = scmp.ge.s32.totalorder %s4297_s21, 1  ;;  %s4297_s21 = sphi %s4348_s21, %s16_s21  }
   0x2   : > { %p212_p1 = scmp.lt.s32.totalorder %s4297_s21, 3 }
   0x4   : > { %p213_p2 = pnand %p3029_p0, %p212_p1 }
   0x6   : > { %216 = sbr.rel (%p213_p2) target bundleno = 1147 (0x47b), region = 44 }
   0xb   : > { %p242_p3 = scmp.lt.s32.totalorder %s3025_s22, 1  ;;  %s4299_s27 = smov 127   ;;  %v8074_v37 = vlaneseq  ;;  %vm1144_vm8 = vcmask 523264  }
   0xc   : > { %s4300_s28 = smov 108   ;;  %s4301_s29 = smov 110  }
   0xd   : > { %s8804_s22 = smov (!%p242_p3, %s3025_s22), 1  ;;  %s4302_s30 = smov 109   ;;  %v4591_v38 = vand.u32 127, %v8074_v37 }
   0xe   : > { %s3298_s23 = smul.u32 192, %s8804_s22  ;;  %s4303_s7 = smov 126  }
   0xf   : > { %vm413_vm0 = vcmp.lt.s32.totalorder %v4591_v38, 127  ;;  %s4304_s8 = smov 91   ;;  %vm680_vm1 = vcmp.lt.s32.totalorder %v4591_v38, 108  ;;  %vm583_vm2 = vcmp.lt.s32.totalorder %v4591_v38, 110  ;;  %s4305_s11 = smov 92   ;;  %vm328_vm3 = vcmp.lt.s32.totalorder %v4591_v38, 109 }
  0x10   : > { %s4364_s26 = scalar_lea.vmem %s8067_s0, %s3298_s23  ;;  %s4306_s12 = smov 90   ;;  %vm498_vm4 = vcmp.lt.s32.totalorder %v4591_v38, 126  ;;  %vm850_vm5 = vcmp.lt.s32.totalorder %v4591_v38, 91  ;;  %vm765_vm6 = vcmp.lt.s32.totalorder %v4591_v38, 92  ;;  %vm935_vm7 = vcmp.lt.s32.totalorder %v4591_v38, 90 }
  0x11   : > { %v4367_v0 = vld [vmem:[%s4364_s26 + $0x98] sm:$0xff]  ;;  %v4370_v1 = vld [vmem:[%s4364_s26 + $0xb0] sm:$0xff]  ;;  %v4380_v4 = vld [vmem:[%s4364_s26 + $0xa8] sm:$0xff]  ;;  %s4308_s24 = smov 18   ;;  %s4309_s25 = smov 19   ;;  %vm1768_vm9 = vcmp.lt.s32.totalorder %v4591_v38, 18 }
  0x12   : > { %v4373_v2 = vld [vmem:[%s4364_s26 + $0x90] sm:$0xff]  ;;  %v4377_v3 = vpack.i.bf16 %v4370_v1, %v4367_v0  ;;  %v4383_v5 = vld [vmem:[%s4364_s26 + $0xa0] sm:$0xff]  ;;  %v4386_v6 = vld [vmem:[%s4364_s26 + $0xb8] sm:$0xff]  ;;  %v363_v36 = vpack.c.bf16 %v4370_v1, %v4367_v0  ;;  %vm1938_vm10 = vcmp.lt.s32.totalorder %v4591_v38, 1  ;;  %vm1683_vm11 = vcmp.lt.s32.totalorder %v4591_v38, 19 }
  0x13   : > { %v4390_v7 = vpack.i.bf16 %v4380_v4, %v4373_v2  ;;  %v4393_v8 = vld [vmem:[%s4364_s26 + $0x68] sm:$0xff]  ;;  %v4396_v9 = vld [vmem:[%s4364_s26 + $0x80] sm:$0xff]  ;;  %v4402_v10 = vpack.i.bf16 %v4386_v6, %v4383_v5  ;;  %v4411_v12 = vld [vmem:[%s4364_s26 + $0x70] sm:$0xff]  ;;  %vm1853_vm12 = vcmp.lt.s32.totalorder %v4591_v38, 17  ;;  %vm2119_vm13 = vcmp.lt.s32.totalorder %v4591_v38, 111 }
  0x14   : > { %3322 = vrot.lane.b32.xlu0 %v4377_v3, %s4299_s27  ;;  %v4408_v11 = vpack.i.bf16 %v4396_v9, %v4393_v8  ;;  %v4414_v13 = vld [vmem:[%s4364_s26 + $0x88] sm:$0xff]  ;;  %v4417_v14 = vld [vmem:[%s4364_s26 + $0x60] sm:$0xff]  ;;  %v4420_v15 = vld [vmem:[%s4364_s26 + $0x78] sm:$0xff] }
  0x15   : > { %3332 = vrot.lane.b32.xlu1 %v4390_v7, %s4299_s27  ;;  %v4426_v16 = vpack.i.bf16 %v4414_v13, %v4411_v12  ;;  %v4429_v17 = vld [vmem:[%s4364_s26 + $0x40] sm:$0xff]  ;;  %v4432_v18 = vld [vmem:[%s4364_s26 + $0x58] sm:$0xff]  ;;  %v4438_v20 = vld [vmem:[%s4364_s26 + $0x50] sm:$0xff]  ;;  %v4444_v21 = vpack.i.bf16 %v4420_v15, %v4417_v14 }
  0x16   : > { %v4435_v19 = vld [vmem:[%s4364_s26 + $0x38] sm:$0xff]  ;;  %v4447_v22 = vld [vmem:[%s4364_s26 + $0x30] sm:$0xff]  ;;  %v4450_v23 = vld [vmem:[%s4364_s26 + $0x48] sm:$0xff]  ;;  %v4468_v27 = vpack.i.bf16 %v4432_v18, %v4429_v17 }
  0x17   : > { %v4456_v24 = vpack.i.bf16 %v4438_v20, %v4435_v19  ;;  %v4459_v25 = vld [vmem:[%s4364_s26 + $0x8] sm:$0xff]  ;;  %v4462_v26 = vld [vmem:[%s4364_s26 + $0x20] sm:$0xff]  ;;  %v4471_v28 = vld [vmem:[%s4364_s26 + $0x10] sm:$0xff]  ;;  %v4480_v30 = vpack.i.bf16 %v4450_v23, %v4447_v22 }
  0x18   : > { %3327 = vrot.lane.b32.xlu0 %v4402_v10, %s4299_s27  ;;  %v4474_v29 = vld [vmem:[%s4364_s26 + $0x28] sm:$0xff]  ;;  %v4486_v31 = vpack.i.bf16 %v4462_v26, %v4459_v25  ;;  %v4489_v32 = vld [vmem:[%s4364_s26] sm:$0xff]  ;;  %v4492_v33 = vld [vmem:[%s4364_s26 + $0x18] sm:$0xff] }
  0x19   : > { %3337 = vrot.lane.b32.xlu1 %v4408_v11, %s4299_s27  ;;  %v4498_v34 = vpack.i.bf16 %v4474_v29, %v4471_v28  ;;  %v4504_v35 = vpack.i.bf16 %v4492_v33, %v4489_v32 }
  0x1c   : > { %3342 = vrot.lane.b32.xlu0 %v4426_v16, %s4299_s27 }
  0x1d   : > { %3347 = vrot.lane.b32.xlu1 %v4444_v21, %s4299_s27 }
  0x20   : > { %3352 = vrot.lane.b32.xlu0 %v4456_v24, %s4299_s27 }
  0x21   : > { %3357 = vrot.lane.b32.xlu1 %v4468_v27, %s4299_s27 }
  0x24   : > { %3362 = vrot.lane.b32.xlu0 %v4480_v30, %s4299_s27 }
  0x25   : > { %3367 = vrot.lane.b32.xlu1 %v4486_v31, %s4299_s27 }
  0x28   : > { %3372 = vrot.lane.b32.xlu0 %v4498_v34, %s4299_s27 }
  0x29   : > { %3377 = vrot.lane.b32.xlu1 %v4504_v35, %s4299_s27 }
  0x2c   : > { %3382 = vrot.lane.b32.xlu0 %v4377_v3, %s4300_s28 }
  0x2d   : > { %3387 = vrot.lane.b32.xlu1 %v4402_v10, %s4300_s28 }
  0x30   : > { %3392 = vrot.lane.b32.xlu0 %v4390_v7, %s4300_s28 }
  0x31   : > { %3397 = vrot.lane.b32.xlu1 %v4408_v11, %s4300_s28 }
  0x34   : > { %3402 = vrot.lane.b32.xlu0 %v4426_v16, %s4300_s28 }
  0x35   : > { %3407 = vrot.lane.b32.xlu1 %v4444_v21, %s4300_s28 }
  0x38   : > { %3412 = vrot.lane.b32.xlu0 %v4456_v24, %s4300_s28 }
  0x39   : > { %3417 = vrot.lane.b32.xlu1 %v4468_v27, %s4300_s28 }
  0x3c   : > { %3422 = vrot.lane.b32.xlu0 %v4480_v30, %s4300_s28 }
  0x3d   : > { %3427 = vrot.lane.b32.xlu1 %v4377_v3, %s4301_s29 }
  0x40   : > { %3432 = vrot.lane.b32.xlu0 %v4402_v10, %s4301_s29 }
  0x41   : > { %3437 = vrot.lane.b32.xlu1 %v4390_v7, %s4301_s29 }
  0x44   : > { %3442 = vrot.lane.b32.xlu0 %v4486_v31, %s4300_s28 }
  0x45   : > { %3447 = vrot.lane.b32.xlu1 %v4498_v34, %s4300_s28 }
  0x48   : > { %3452 = vrot.lane.b32.xlu0 %v4504_v35, %s4300_s28  ;;  %s4310_s28 = smov 1  }
  0x49   : > { %3457 = vrot.lane.b32.xlu1 %v4408_v11, %s4301_s29 }
  0x4c   : > { %3462 = vrot.lane.b32.xlu0 %v4426_v16, %s4301_s29 }
  0x4d   : > { %3467 = vrot.lane.b32.xlu1 %v4444_v21, %s4301_s29 }
  0x50   : > { %306 = vrot.lane.b32.xlu0 %v4367_v0, %s4302_s30 }
  0x51   : > { %308 = vrot.lane.b32.xlu1 %v4370_v1, %s4302_s30 }
  0x54   : > { %322 = vrot.lane.b32.xlu0 %v4383_v5, %s4302_s30 }
  0x55   : > { %324 = vrot.lane.b32.xlu1 %v4386_v6, %s4302_s30 }
  0x58   : > { %290 = vrot.lane.b32.xlu0 %v4373_v2, %s4302_s30 }
  0x59   : > { %292 = vrot.lane.b32.xlu1 %v4380_v4, %s4302_s30 }
  0x5c   : > { %3472 = vrot.lane.b32.xlu0 %v4456_v24, %s4301_s29 }
  0x5d   : > { %3477 = vrot.lane.b32.xlu1 %v4468_v27, %s4301_s29 }
  0x60   : > { %3482 = vrot.lane.b32.xlu0 %v4480_v30, %s4301_s29 }
  0x61   : > { %302 = vrot.lane.b32.xlu1 %v4393_v8, %s4302_s30 }
  0x64   : > { %304 = vrot.lane.b32.xlu0 %v4396_v9, %s4302_s30 }
  0x65   : > { %318 = vrot.lane.b32.xlu1 %v4411_v12, %s4302_s30 }
  0x68   : > { %320 = vrot.lane.b32.xlu0 %v4414_v13, %s4302_s30 }
  0x69   : > { %286 = vrot.lane.b32.xlu1 %v4417_v14, %s4302_s30 }
  0x6c   : > { %288 = vrot.lane.b32.xlu0 %v4420_v15, %s4302_s30 }
  0x6d   : > { %3487 = vrot.lane.b32.xlu1 %v4486_v31, %s4301_s29 }
  0x70   : > { %3492 = vrot.lane.b32.xlu0 %v4498_v34, %s4301_s29 }
  0x71   : > { %3497 = vrot.lane.b32.xlu1 %v4504_v35, %s4301_s29 }
  0x74   : > { %298 = vrot.lane.b32.xlu0 %v4435_v19, %s4302_s30 }
  0x75   : > { %300 = vrot.lane.b32.xlu1 %v4438_v20, %s4302_s30 }
  0x78   : > { %314 = vrot.lane.b32.xlu0 %v4429_v17, %s4302_s30 }
  0x79   : > { %316 = vrot.lane.b32.xlu1 %v4432_v18, %s4302_s30 }
  0x7c   : > { %282 = vrot.lane.b32.xlu0 %v4447_v22, %s4302_s30 }
  0x7d   : > { %284 = vrot.lane.b32.xlu1 %v4450_v23, %s4302_s30 }
  0x80   : > { %3502 = vrot.lane.b32.xlu0 %v4377_v3, %s4303_s7 }
  0x81   : > { %3507 = vrot.lane.b32.xlu1 %v4402_v10, %s4303_s7 }
  0x84   : > { %3512 = vrot.lane.b32.xlu0 %v4390_v7, %s4303_s7 }
  0x85   : > { %294 = vrot.lane.b32.xlu1 %v4459_v25, %s4302_s30 }
  0x86   : > { %v3323_v39 = vpop.permute.xlu0 %3322 }
  0x87   : > { %v3325_v40 = vunpack.i.h.bf16 %v3323_v39  ;;  %v3324_v41 = vunpack.i.l.bf16 %v3323_v39  ;;  %v3333_v42 = vpop.permute.xlu1 %3332 }
  0x88   : > { %v3335_v43 = vunpack.i.h.bf16 %v3333_v42  ;;  %v3334_v44 = vunpack.i.l.bf16 %v3333_v42  ;;  %296 = vrot.lane.b32.xlu0 %v4462_v26, %s4302_s30 }
  0x89   : > { %310 = vrot.lane.b32.xlu1 %v4471_v28, %s4302_s30 }
  0x8a   : > { %v3328_v45 = vpop.permute.xlu0 %3327  ;;  %v428_v49 = vsel %vm413_vm0, %v3334_v44, %v3324_v41  ;;  %v429_v50 = vsel %vm413_vm0, %v3335_v43, %v3325_v40 }
  0x8b   : > { %v3330_v46 = vunpack.i.h.bf16 %v3328_v45  ;;  %v3329_v47 = vunpack.i.l.bf16 %v3328_v45  ;;  %v3338_v48 = vpop.permute.xlu1 %3337  ;;  %v447_v57 = vpack.c.bf16 %v429_v50, %v428_v49 }
  0x8c   : > { %312 = vrot.lane.b32.xlu0 %v4474_v29, %s4302_s30  ;;  %v3340_v59 = vunpack.i.h.bf16 %v3338_v48  ;;  %v3339_v60 = vunpack.i.l.bf16 %v3338_v48 }
  0x8d   : > { %v4608_v51 = vsel %vm413_vm0, %v3329_v47, %v3334_v44  ;;  %v4612_v52 = vsel %vm413_vm0, %v3330_v46, %v3335_v43  ;;  %278 = vrot.lane.b32.xlu1 %v4489_v32, %s4302_s30  ;;  %v420_v53 = vsel %vm413_vm0, %v3324_v41, %v3329_v47  ;;  %v421_v54 = vsel %vm413_vm0, %v3325_v40, %v3330_v46 }
  0x8e   : > { %v3343_v55 = vpop.permute.xlu0 %3342  ;;  %v448_v56 = vpack.c.bf16 %v421_v54, %v420_v53 }
  0x8f   : > { %v3345_v61 = vunpack.i.h.bf16 %v3343_v55  ;;  %v3344_v62 = vunpack.i.l.bf16 %v3343_v55  ;;  %v3348_v63 = vpop.permute.xlu1 %3347 }
  0x90   : > { %v3350_v5 = vunpack.i.h.bf16 %v3348_v63  ;;  %v3349_v6 = vunpack.i.l.bf16 %v3348_v63  ;;  %1157 = vmatprep.subr.bf16.mxu0 %v448_v56  ;;  %280 = vrot.lane.b32.xlu0 %v4492_v33, %s4302_s30 }
  0x91   : > { %3517 = vrot.lane.b32.xlu1 %v4408_v11, %s4303_s7  ;;  %1158 = vmatpush1.bf16.msra.mxu0 %v447_v57  ;;  %v418_v12 = vsel %vm413_vm0, %v3339_v60, %v3344_v62  ;;  %v419_v13 = vsel %vm413_vm0, %v3340_v59, %v3345_v61 }
  0x92   : > { %v4632_v17 = vsel %vm413_vm0, %v3345_v61, %v3350_v5  ;;  %v4636_v18 = vsel %vm413_vm0, %v3344_v62, %v3349_v6  ;;  %v3353_v28 = vpop.permute.xlu0 %3352  ;;  %v445_v29 = vpack.c.bf16 %v419_v13, %v418_v12  ;;  %v426_v39 = vsel %vm413_vm0, %v3349_v6, %v3339_v60 }
  0x93   : > { %v3358_v40 = vpop.permute.xlu1 %3357  ;;  %v3355_v41 = vunpack.i.h.bf16 %v3353_v28  ;;  %v3354_v42 = vunpack.i.l.bf16 %v3353_v28  ;;  %v427_v43 = vsel %vm413_vm0, %v3350_v5, %v3340_v59 }
  0x94   : > { %v3360_v45 = vunpack.i.h.bf16 %v3358_v40  ;;  %v3359_v46 = vunpack.i.l.bf16 %v3358_v40  ;;  %1159 = vmatprep.subr.bf16.mxu0 %v445_v29  ;;  %3522 = vrot.lane.b32.xlu0 %v4426_v16, %s4303_s7  ;;  %v444_v47 = vpack.c.bf16 %v427_v43, %v426_v39 }
  0x95   : > { %3527 = vrot.lane.b32.xlu1 %v4444_v21, %s4303_s7 }
  0x96   : > { %1160 = vmatpush1.bf16.msra.mxu0 %v444_v47  ;;  %v3363_v48 = vpop.permute.xlu0 %3362  ;;  %v416_v49 = vsel %vm413_vm0, %v3354_v42, %v3359_v46  ;;  %v417_v50 = vsel %vm413_vm0, %v3355_v41, %v3360_v45 }
  0x97   : > { %v3365_v53 = vunpack.i.h.bf16 %v3363_v48  ;;  %v3364_v54 = vunpack.i.l.bf16 %v3363_v48  ;;  %v3368_v55 = vpop.permute.xlu1 %3367  ;;  %v442_v56 = vpack.c.bf16 %v417_v50, %v416_v49 }
  0x98   : > { %3532 = vrot.lane.b32.xlu0 %v4377_v3, %s4304_s8  ;;  %v3370_v61 = vunpack.i.h.bf16 %v3368_v55  ;;  %v3369_v6 = vunpack.i.l.bf16 %v3368_v55 }
  0x99   : > { %v4656_v57 = vsel %vm413_vm0, %v3360_v45, %v3365_v53  ;;  %v4660_v59 = vsel %vm413_vm0, %v3359_v46, %v3364_v54  ;;  %1161 = vmatprep.subr.bf16.mxu0 %v442_v56  ;;  %3537 = vrot.lane.b32.xlu1 %v4402_v10, %s4304_s8  ;;  %v424_v60 = vsel %vm413_vm0, %v3364_v54, %v3354_v42 }
  0x9a   : > { %v3373_v62 = vpop.permute.xlu0 %3372  ;;  %v425_v63 = vsel %vm413_vm0, %v3365_v53, %v3355_v41 }
  0x9b   : > { %v3375_v12 = vunpack.i.h.bf16 %v3373_v62  ;;  %v3374_v13 = vunpack.i.l.bf16 %v3373_v62  ;;  %v3378_v28 = vpop.permute.xlu1 %3377  ;;  %v441_v29 = vpack.c.bf16 %v425_v63, %v424_v60 }
  0x9c   : > { %v3380_v39 = vunpack.i.h.bf16 %v3378_v28  ;;  %v3379_v40 = vunpack.i.l.bf16 %v3378_v28  ;;  %3542 = vrot.lane.b32.xlu0 %v4390_v7, %s4304_s8 }
  0x9d   : > { %1162 = vmatpush1.bf16.msra.mxu0 %v441_v29  ;;  %3547 = vrot.lane.b32.xlu1 %v4456_v24, %s4303_s7  ;;  %v414_v41 = vsel %vm413_vm0, %v3369_v6, %v3374_v13  ;;  %v415_v42 = vsel %vm413_vm0, %v3370_v61, %v3375_v12 }
  0x9e   : > { %v4681_v43 = vsel %vm413_vm0, %v3375_v12, %v3380_v39  ;;  %v4685_v45 = vsel %vm413_vm0, %v3374_v13, %v3379_v40  ;;  %v3383_v46 = vpop.permute.xlu0 %3382  ;;  %v439_v47 = vpack.c.bf16 %v415_v42, %v414_v41  ;;  %v422_v48 = vsel %vm413_vm0, %v3379_v40, %v3369_v6 }
  0x9f   : > { %v3385_v49 = vunpack.i.h.bf16 %v3383_v46  ;;  %v3384_v50 = vunpack.i.l.bf16 %v3383_v46  ;;  %v3388_v53 = vpop.permute.xlu1 %3387  ;;  %v423_v54 = vsel %vm413_vm0, %v3380_v39, %v3370_v61  ;;  %v362_v12 = vpack.c.bf16 %v4380_v4, %v4373_v2 }
  0xa0   : > { %v3390_v56 = vunpack.i.h.bf16 %v3388_v53  ;;  %v3389_v60 = vunpack.i.l.bf16 %v3388_v53  ;;  %1163 = vmatprep.subr.bf16.mxu0 %v439_v47  ;;  %3552 = vrot.lane.b32.xlu0 %v4468_v27, %s4303_s7  ;;  %v438_v62 = vpack.c.bf16 %v423_v54, %v422_v48  ;;  %v360_v40 = vpack.c.bf16 %v4396_v9, %v4393_v8 }
  0xa1   : > { %3557 = vrot.lane.b32.xlu1 %v4480_v30, %s4303_s7  ;;  %v359_v41 = vpack.c.bf16 %v4420_v15, %v4417_v14  ;;  %v357_v14 = vpack.c.bf16 %v4438_v20, %v4435_v19  ;;  %v354_v54 = vpack.c.bf16 %v4462_v26, %v4459_v25  ;;  %v8075_v26 = vmov 0  }
  0xa2   : > { %1164 = vmatpush1.bf16.msra.mxu0 %v438_v62  ;;  %v3393_v63 = vpop.permute.xlu0 %3392  ;;  %v687_v6 = vsel %vm680_vm1, %v3384_v50, %v3389_v60  ;;  %v688_v61 = vsel %vm680_vm1, %v3385_v49, %v3390_v56  ;;  %3742 = vset.pattern.permute.xlu1 %v8075_v26 }
  0xa3   : > { %v3395_v13 = vunpack.i.h.bf16 %v3393_v63  ;;  %v3394_v28 = vunpack.i.l.bf16 %v3393_v63  ;;  %v3398_v29 = vpop.permute.xlu1 %3397  ;;  %v715_v39 = vpack.c.bf16 %v688_v61, %v687_v6  ;;  %1165 = vmatprep.subr.bf16.mxu0 %v363_v36  ;;  %3741 = vset.pattern.permute.xlu0 %v8075_v26 }
  0xa4   : > { %3562 = vrot.lane.b32.xlu0 %v4408_v11, %s4304_s8  ;;  %v3400_v1 = vunpack.i.h.bf16 %v3398_v29  ;;  %v3399_v36 = vunpack.i.l.bf16 %v3398_v29 }
  0xa5   : > { %v4714_v2 = vsel %vm680_vm1, %v3389_v60, %v3394_v28  ;;  %v4718_v4 = vsel %vm680_vm1, %v3390_v56, %v3395_v13  ;;  %3567 = vrot.lane.b32.xlu1 %v4426_v16, %s4304_s8  ;;  %1230 = vmatprep.subr.bf16.mxu1 %v715_v39  ;;  %v695_v0 = vsel %vm680_vm1, %v3394_v28, %v3384_v50 }
  0xa6   : > { %v3403_v8 = vpop.permute.xlu0 %3402  ;;  %v696_v9 = vsel %vm680_vm1, %v3395_v13, %v3385_v49  ;;  %1166 = vmatpush1.bf16.msra.mxu0 %v362_v12  ;;  %v356_v49 = vpack.c.bf16 %v4450_v23, %v4447_v22 }
  0xa7   : > { %v3405_v42 = vunpack.i.h.bf16 %v3403_v8  ;;  %v3404_v46 = vunpack.i.l.bf16 %v3403_v8  ;;  %v3408_v47 = vpop.permute.xlu1 %3407  ;;  %v714_v48 = vpack.c.bf16 %v696_v9, %v695_v0  ;;  %1167 = vmatprep.subr.bf16.mxu0 %v360_v40 }
  0xa8   : > { %v3410_v53 = vunpack.i.h.bf16 %v3408_v47  ;;  %v3409_v50 = vunpack.i.l.bf16 %v3408_v47  ;;  %3572 = vrot.lane.b32.xlu0 %v4444_v21, %s4304_s8 }
  0xa9   : > { %3577 = vrot.lane.b32.xlu1 %v4486_v31, %s4303_s7  ;;  %1231 = vmatpush1.bf16.msra.mxu1 %v714_v48  ;;  %v685_v19 = vsel %vm680_vm1, %v3399_v36, %v3404_v46  ;;  %v686_v20 = vsel %vm680_vm1, %v3400_v1, %v3405_v42 }
  0xaa   : > { %v4744_v56 = vsel %vm680_vm1, %v3405_v42, %v3410_v53  ;;  %v4748_v22 = vsel %vm680_vm1, %v3404_v46, %v3409_v50  ;;  %v3413_v23 = vpop.permute.xlu0 %3412  ;;  %v712_v60 = vpack.c.bf16 %v686_v20, %v685_v19  ;;  %1168 = vmatpush1.bf16.msra.mxu0 %v359_v41  ;;  %v693_v62 = vsel %vm680_vm1, %v3409_v50, %v3399_v36 }
  0xab   : > { %v3415_v63 = vunpack.i.h.bf16 %v3413_v23  ;;  %v3414_v6 = vunpack.i.l.bf16 %v3413_v23  ;;  %v3418_v61 = vpop.permute.xlu1 %3417  ;;  %v694_v25 = vsel %vm680_vm1, %v3410_v53, %v3400_v1  ;;  %1169 = vmatprep.subr.bf16.mxu0 %v357_v14  ;;  %v353_v41 = vpack.c.bf16 %v4492_v33, %v4489_v32 }
  0xac   : > { %v3420_v12 = vunpack.i.h.bf16 %v3418_v61  ;;  %v3419_v13 = vunpack.i.l.bf16 %v3418_v61  ;;  %3582 = vrot.lane.b32.xlu0 %v4498_v34, %s4303_s7  ;;  %1232 = vmatprep.subr.bf16.mxu1 %v712_v60  ;;  %v711_v28 = vpack.c.bf16 %v694_v25, %v693_v62 }
  0xad   : > { %3587 = vrot.lane.b32.xlu1 %v4504_v35, %s4303_s7  ;;  %s4311_s7 = smov 17  }
  0xae   : > { %1233 = vmatpush1.bf16.msra.mxu1 %v711_v28  ;;  %v3423_v29 = vpop.permute.xlu0 %3422  ;;  %v683_v39 = vsel %vm680_vm1, %v3414_v6, %v3419_v13  ;;  %v684_v40 = vsel %vm680_vm1, %v3415_v63, %v3420_v12  ;;  %1170 = vmatpush1.bf16.msra.mxu0 %v356_v49 }
  0xaf   : > { %v3425_v0 = vunpack.i.h.bf16 %v3423_v29  ;;  %v3424_v1 = vunpack.i.l.bf16 %v3423_v29  ;;  %v3428_v8 = vpop.permute.xlu1 %3427  ;;  %v709_v9 = vpack.c.bf16 %v684_v40, %v683_v39  ;;  %1171 = vmatprep.subr.bf16.mxu0 %v354_v54 }
  0xb0   : > { %3592 = vrot.lane.b32.xlu0 %v4456_v24, %s4304_s8  ;;  %v3430_v33 = vunpack.i.h.bf16 %v3428_v8  ;;  %v3429_v48 = vunpack.i.l.bf16 %v3428_v8 }
  0xb1   : > { %v4770_v14 = vsel %vm680_vm1, %v3419_v13, %v3424_v1  ;;  %v4774_v36 = vsel %vm680_vm1, %v3420_v12, %v3425_v0  ;;  %3597 = vrot.lane.b32.xlu1 %v4468_v27, %s4304_s8  ;;  %1234 = vmatprep.subr.bf16.mxu1 %v709_v9  ;;  %v691_v32 = vsel %vm680_vm1, %v3424_v1, %v3414_v6 }
  0xb2   : > { %v3433_v42 = vpop.permute.xlu0 %3432  ;;  %v692_v46 = vsel %vm680_vm1, %v3425_v0, %v3415_v63  ;;  %1172 = vmatpush1.bf16.msra.mxu0 %v353_v41  ;;  %v4225_v0 = vld [vmem:[%s8069_s2 + $0x4] ss:$20 sps:$4 sm:$0xff]  }
  0xb3   : > { %v3435_v53 = vunpack.i.h.bf16 %v3433_v42  ;;  %v3434_v50 = vunpack.i.l.bf16 %v3433_v42  ;;  %v3438_v49 = vpop.permute.xlu1 %3437  ;;  %v708_v19 = vpack.c.bf16 %v692_v46, %v691_v32  ;;  %1189 = vmatprep.mubr.bf16.mxu0 %v4225_v0 }
  0xb4   : > { %v3440_v20 = vunpack.i.h.bf16 %v3438_v49  ;;  %v3439_v54 = vunpack.i.l.bf16 %v3438_v49  ;;  %3602 = vrot.lane.b32.xlu0 %v4480_v30, %s4304_s8 }
  0xb5   : > { %3607 = vrot.lane.b32.xlu1 %v4486_v31, %s4304_s8  ;;  %1235 = vmatpush1.bf16.msra.mxu1 %v708_v19  ;;  %v590_v23 = vsel %vm583_vm2, %v3429_v48, %v3434_v50  ;;  %v591_v60 = vsel %vm583_vm2, %v3430_v33, %v3435_v53 }
  0xb6   : > { %v3443_v62 = vpop.permute.xlu0 %3442  ;;  %v618_v63 = vpack.c.bf16 %v591_v60, %v590_v23  ;;  %v598_v6 = vsel %vm583_vm2, %v3439_v54, %v3429_v48  ;;  %v599_v61 = vsel %vm583_vm2, %v3440_v20, %v3430_v33  ;;  %v4799_v25 = vsel %vm583_vm2, %v3434_v50, %v3439_v54 }
  0xb7   : > { %v3445_v12 = vunpack.i.h.bf16 %v3443_v62  ;;  %v3444_v13 = vunpack.i.l.bf16 %v3443_v62  ;;  %v3448_v28 = vpop.permute.xlu1 %3447  ;;  %v617_v29 = vpack.c.bf16 %v599_v61, %v598_v6  ;;  %v4803_v39 = vsel %vm583_vm2, %v3435_v53, %v3440_v20 }
  0xb8   : > { %v3450_v40 = vunpack.i.h.bf16 %v3448_v28  ;;  %v3449_v41 = vunpack.i.l.bf16 %v3448_v28  ;;  %3612 = vrot.lane.b32.xlu0 %v4498_v34, %s4304_s8  ;;  %1173 = vmatprep.subr.bf16.mxu0 %v618_v63 }
  0xb9   : > { %3617 = vrot.lane.b32.xlu1 %v4504_v35, %s4304_s8  ;;  %1174 = vmatpush2.bf16.msra.mxu0 %v617_v29 }
  0xba   : > { %v3453_v8 = vpop.permute.xlu0 %3452  ;;  %v681_v9 = vsel %vm680_vm1, %v3444_v13, %v3449_v41  ;;  %v682_v32 = vsel %vm680_vm1, %v3445_v12, %v3450_v40 }
  0xbb   : > { %v3455_v33 = vunpack.i.h.bf16 %v3453_v8  ;;  %v3454_v42 = vunpack.i.l.bf16 %v3453_v8  ;;  %v3458_v46 = vpop.permute.xlu1 %3457  ;;  %v706_v48 = vpack.c.bf16 %v682_v32, %v681_v9 }
  0xbc   : > { %3622 = vrot.lane.b32.xlu0 %v4377_v3, %s4305_s11  ;;  %v3460_v19 = vunpack.i.h.bf16 %v3458_v46  ;;  %v3459_v60 = vunpack.i.l.bf16 %v3458_v46 }
  0xbd   : > { %v4822_v53 = vsel %vm680_vm1, %v3449_v41, %v3454_v42  ;;  %v4826_v50 = vsel %vm680_vm1, %v3450_v40, %v3455_v33  ;;  %3627 = vrot.lane.b32.xlu1 %v4402_v10, %s4305_s11  ;;  %1236 = vmatprep.subr.bf16.mxu1 %v706_v48  ;;  %v689_v49 = vsel %vm680_vm1, %v3454_v42, %v3444_v13 }
  0xbe   : > { %8342 = vst [vmem:[#allocation2_spill] sm:$0xff] %v4822_v53  ;;  %8343 = vst [vmem:[#allocation3_spill] sm:$0xff] %v4826_v50  ;;  %v3463_v20 = vpop.permute.xlu0 %3462  ;;  %v690_v54 = vsel %vm680_vm1, %v3455_v33, %v3445_v12 }
  0xbf   : > { %v3465_v62 = vunpack.i.h.bf16 %v3463_v20  ;;  %v3464_v63 = vunpack.i.l.bf16 %v3463_v20  ;;  %v3468_v6 = vpop.permute.xlu1 %3467  ;;  %v705_v61 = vpack.c.bf16 %v690_v54, %v689_v49 }
  0xc0   : > { %v3470_v28 = vunpack.i.h.bf16 %v3468_v6  ;;  %v3469_v29 = vunpack.i.l.bf16 %v3468_v6  ;;  %3632 = vrot.lane.b32.xlu0 %v4390_v7, %s4305_s11 }
  0xc1   : > { %3637 = vrot.lane.b32.xlu1 %v4408_v11, %s4305_s11  ;;  %1237 = vmatpush1.bf16.msra.mxu1 %v705_v61  ;;  %v588_v12 = vsel %vm583_vm2, %v3459_v60, %v3464_v63  ;;  %v589_v13 = vsel %vm583_vm2, %v3460_v19, %v3465_v62 }
  0xc2   : > { %v307_v40 = vpop.permute.xlu0 %306  ;;  %v615_v41 = vpack.c.bf16 %v589_v13, %v588_v12  ;;  %v596_v0 = vsel %vm583_vm2, %v3469_v29, %v3459_v60  ;;  %v597_v8 = vsel %vm583_vm2, %v3470_v28, %v3460_v19  ;;  %v4850_v9 = vsel %vm583_vm2, %v3464_v63, %v3469_v29 }
  0xc3   : > { %v309_v32 = vpop.permute.xlu1 %308  ;;  %v614_v33 = vpack.c.bf16 %v597_v8, %v596_v0  ;;  %v4854_v42 = vsel %vm583_vm2, %v3465_v62, %v3470_v28 }
  0xc4   : > { %3642 = vrot.lane.b32.xlu0 %v4426_v16, %s4305_s11  ;;  %1175 = vmatprep.subr.bf16.mxu0 %v615_v41 }
  0xc5   : > { %3647 = vrot.lane.b32.xlu1 %v4444_v21, %s4305_s11  ;;  %1176 = vmatpush2.bf16.msra.mxu0 %v614_v33 }
  0xc6   : > { %v4863_v48 = vpop.permute.xlu0 %322 }
  0xc7   : > { %v4868_v49 = vsel %vm328_vm3, %v307_v40, %v4863_v48  ;;  %v4870_v19 = vpop.permute.xlu1 %324 }
  0xc8   : > { %8344 = vst [vmem:[#allocation4_spill] sm:$0xff] %v4868_v49  ;;  %8345 = vst [vmem:[#allocation5_spill] sm:$0xff] %v4870_v19  ;;  %v4875_v20 = vsel %vm328_vm3, %v309_v32, %v4870_v19  ;;  %3652 = vrot.lane.b32.xlu0 %v4456_v24, %s4305_s11 }
  0xc9   : > { %8346 = vst [vmem:[#allocation6_spill] sm:$0xff] %v4875_v20  ;;  %3657 = vrot.lane.b32.xlu1 %v4468_v27, %s4305_s11  ;;  %v630_v54 = vpack.c.bf16 %v4875_v20, %v4868_v49 }
  0xca   : > { %v4883_v60 = vpop.permute.xlu0 %290 }
  0xcb   : > { %v4888_v62 = vsel %vm328_vm3, %v4883_v60, %v307_v40  ;;  %v4890_v63 = vpop.permute.xlu1 %292  ;;  %1238 = vmatprep.subr.bf16.mxu1 %v630_v54 }
  0xcc   : > { %8347 = vst [vmem:[#allocation7_spill] sm:$0xff] %v4888_v62  ;;  %v4895_v6 = vsel %vm328_vm3, %v4890_v63, %v309_v32  ;;  %3662 = vrot.lane.b32.xlu0 %v4480_v30, %s4305_s11  ;;  %v4236_v32 = vld [vmem:[%s8069_s2 + $0xc] ss:$20 sps:$4 sm:$0xff]  }
  0xcd   : > { %8348 = vst [vmem:[#allocation8_spill] sm:$0xff] %v4895_v6  ;;  %3667 = vrot.lane.b32.xlu1 %v4377_v3, %s4306_s12  ;;  %v629_v61 = vpack.c.bf16 %v4895_v6, %v4888_v62  ;;  %1262 = vmatprep.mubr.bf16.mxu1 %v4236_v32 }
  0xce   : > { %v3473_v28 = vpop.permute.xlu0 %3472 }
  0xcf   : > { %v3475_v29 = vunpack.i.h.bf16 %v3473_v28  ;;  %v3474_v12 = vunpack.i.l.bf16 %v3473_v28  ;;  %v3478_v13 = vpop.permute.xlu1 %3477  ;;  %1239 = vmatpush1.bf16.msra.mxu1 %v629_v61 }
  0xd0   : > { %v3480_v40 = vunpack.i.h.bf16 %v3478_v13  ;;  %v3479_v41 = vunpack.i.l.bf16 %v3478_v13  ;;  %3672 = vrot.lane.b32.xlu0 %v4402_v10, %s4306_s12 }
  0xd1   : > { %3677 = vrot.lane.b32.xlu1 %v4390_v7, %s4306_s12 }
  0xd2   : > { %v3483_v0 = vpop.permute.xlu0 %3482  ;;  %v586_v3 = vsel %vm583_vm2, %v3474_v12, %v3479_v41  ;;  %v587_v8 = vsel %vm583_vm2, %v3475_v29, %v3480_v40 }
  0xd3   : > { %v3485_v33 = vunpack.i.h.bf16 %v3483_v0  ;;  %v3484_v54 = vunpack.i.l.bf16 %v3483_v0  ;;  %v303_v61 = vpop.permute.xlu1 %302  ;;  %v612_v28 = vpack.c.bf16 %v587_v8, %v586_v3 }
  0xd4   : > { %3682 = vrot.lane.b32.xlu0 %v4486_v31, %s4305_s11 }
  0xd5   : > { %3687 = vrot.lane.b32.xlu1 %v4498_v34, %s4305_s11  ;;  %1177 = vmatprep.subr.bf16.mxu0 %v612_v28  ;;  %v594_v7 = vsel %vm583_vm2, %v3484_v54, %v3474_v12  ;;  %v595_v10 = vsel %vm583_vm2, %v3485_v33, %v3475_v29  ;;  %v4924_v13 = vsel %vm583_vm2, %v3479_v41, %v3484_v54 }
  0xd6   : > { %v305_v0 = vpop.permute.xlu0 %304  ;;  %v611_v3 = vpack.c.bf16 %v595_v10, %v594_v7  ;;  %v4928_v8 = vsel %vm583_vm2, %v3480_v40, %v3485_v33 }
  0xd7   : > { %v4930_v32 = vpop.permute.xlu1 %318 }
  0xd8   : > { %8349 = vst [vmem:[#allocation9_spill] sm:$0xff] %v4930_v32  ;;  %3692 = vrot.lane.b32.xlu0 %v4504_v35, %s4305_s11  ;;  %1178 = vmatpush2.bf16.msra.mxu0 %v611_v3  ;;  %v4943_v12 = vsel %vm328_vm3, %v303_v61, %v4930_v32 }
  0xd9   : > { %3697 = vrot.lane.b32.xlu1 %v4408_v11, %s4306_s12  ;;  %8351 = vst [vmem:[#allocation11_spill] sm:$0xff] %v4943_v12 }
  0xda   : > { %v4938_v29 = vpop.permute.xlu0 %320 }
  0xdb   : > { %8350 = vst [vmem:[#allocation10_spill] sm:$0xff] %v4938_v29  ;;  %v4948_v40 = vsel %vm328_vm3, %v305_v0, %v4938_v29  ;;  %v4950_v41 = vpop.permute.xlu1 %286 }
  0xdc   : > { %8352 = vst [vmem:[#allocation12_spill] sm:$0xff] %v4948_v40  ;;  %8353 = vst [vmem:[#allocation13_spill] sm:$0xff] %v4950_v41  ;;  %3702 = vrot.lane.b32.xlu0 %v4426_v16, %s4306_s12  ;;  %v627_v11 = vpack.c.bf16 %v4948_v40, %v4943_v12  ;;  %v4963_v54 = vsel %vm328_vm3, %v4950_v41, %v303_v61 }
  0xdd   : > { %3707 = vrot.lane.b32.xlu1 %v4444_v21, %s4306_s12  ;;  %8355 = vst [vmem:[#allocation15_spill] sm:$0xff] %v4963_v54 }
  0xde   : > { %v4958_v33 = vpop.permute.xlu0 %288  ;;  %1240 = vmatprep.subr.bf16.mxu1 %v627_v11 }
  0xdf   : > { %8354 = vst [vmem:[#allocation14_spill] sm:$0xff] %v4958_v33  ;;  %v4968_v7 = vsel %vm328_vm3, %v4958_v33, %v305_v0  ;;  %v3488_v16 = vpop.permute.xlu1 %3487 }
  0xe0   : > { %8356 = vst [vmem:[#allocation16_spill] sm:$0xff] %v4968_v7  ;;  %3712 = vrot.lane.b32.xlu0 %v4456_v24, %s4306_s12  ;;  %v626_v21 = vpack.c.bf16 %v4968_v7, %v4963_v54  ;;  %v3490_v10 = vunpack.i.h.bf16 %v3488_v16  ;;  %v3489_v61 = vunpack.i.l.bf16 %v3488_v16 }
  0xe1   : > { %3717 = vrot.lane.b32.xlu1 %v4468_v27, %s4306_s12 }
  0xe2   : > { %v3493_v3 = vpop.permute.xlu0 %3492  ;;  %1241 = vmatpush1.bf16.msra.mxu1 %v626_v21 }
  0xe3   : > { %v3495_v11 = vunpack.i.h.bf16 %v3493_v3  ;;  %v3494_v37 = vunpack.i.l.bf16 %v3493_v3  ;;  %v3498_v23 = vpop.permute.xlu1 %3497 }
  0xe4   : > { %v3500_v47 = vunpack.i.h.bf16 %v3498_v23  ;;  %v3499_v0 = vunpack.i.l.bf16 %v3498_v23  ;;  %3722 = vrot.lane.b32.xlu0 %v4480_v30, %s4306_s12 }
  0xe5   : > { %3727 = vrot.lane.b32.xlu1 %v4486_v31, %s4306_s12  ;;  %v584_v24 = vsel %vm583_vm2, %v3489_v61, %v3494_v37  ;;  %v585_v27 = vsel %vm583_vm2, %v3490_v10, %v3495_v11 }
  0xe6   : > { %v299_v16 = vpop.permute.xlu0 %298  ;;  %v609_v21 = vpack.c.bf16 %v585_v27, %v584_v24  ;;  %v592_v23 = vsel %vm583_vm2, %v3499_v0, %v3489_v61  ;;  %v593_v30 = vsel %vm583_vm2, %v3500_v47, %v3490_v10  ;;  %v4992_v3 = vsel %vm583_vm2, %v3494_v37, %v3499_v0 }
  0xe7   : > { %v301_v31 = vpop.permute.xlu1 %300  ;;  %v608_v15 = vpack.c.bf16 %v593_v30, %v592_v23  ;;  %v4996_v55 = vsel %vm583_vm2, %v3495_v11, %v3500_v47 }
  0xe8   : > { %3732 = vrot.lane.b32.xlu0 %v4498_v34, %s4306_s12  ;;  %1179 = vmatprep.subr.bf16.mxu0 %v609_v21 }
  0xe9   : > { %3737 = vrot.lane.b32.xlu1 %v4504_v35, %s4306_s12  ;;  %1180 = vmatpush2.bf16.msra.mxu0 %v608_v15 }
  0xea   : > { %v5004_v10 = vpop.permute.xlu0 %314 }
  0xeb   : > { %8357 = vst [vmem:[#allocation17_spill] sm:$0xff] %v5004_v10  ;;  %v5009_v37 = vsel %vm328_vm3, %v299_v16, %v5004_v10  ;;  %v5011_v47 = vpop.permute.xlu1 %316 }
  0xec   : > { %8358 = vst [vmem:[#allocation18_spill] sm:$0xff] %v5009_v37  ;;  %8359 = vst [vmem:[#allocation19_spill] sm:$0xff] %v5011_v47  ;;  %v5016_v34 = vsel %vm328_vm3, %v301_v31, %v5011_v47 }
  0xed   : > { %8360 = vst [vmem:[#allocation20_spill] sm:$0xff] %v5016_v34  ;;  %v624_v11 = vpack.c.bf16 %v5016_v34, %v5009_v37 }
  0xee   : > { %v5020_v0 = vpop.permute.xlu0 %282 }
  0xef   : > { %8361 = vst [vmem:[#allocation21_spill] sm:$0xff] %v5020_v0  ;;  %v5025_v35 = vsel %vm328_vm3, %v5020_v0, %v299_v16  ;;  %v5027_v15 = vpop.permute.xlu1 %284  ;;  %1242 = vmatprep.subr.bf16.mxu1 %v624_v11 }
  0xf0   : > { %8362 = vst [vmem:[#allocation22_spill] sm:$0xff] %v5025_v35  ;;  %8363 = vst [vmem:[#allocation23_spill] sm:$0xff] %v5027_v15  ;;  %v5032_v24 = vsel %vm328_vm3, %v5027_v15, %v301_v31 }
  0xf1   : > { %8364 = vst [vmem:[#allocation24_spill] sm:$0xff] %v5032_v24  ;;  %v623_v27 = vpack.c.bf16 %v5032_v24, %v5025_v35 }
  0xf2   : > { %v3503_v21 = vpop.permute.xlu0 %3502 }
  0xf3   : > { %v3505_v23 = vunpack.i.h.bf16 %v3503_v21  ;;  %v3504_v30 = vunpack.i.l.bf16 %v3503_v21  ;;  %v3508_v61 = vpop.permute.xlu1 %3507  ;;  %1243 = vmatpush1.bf16.msra.mxu1 %v623_v27 }
  0xf4   : > { %v3510_v16 = vunpack.i.h.bf16 %v3508_v61  ;;  %v3509_v5 = vunpack.i.l.bf16 %v3508_v61 }
  0xf6   : > { %v3513_v28 = vpop.permute.xlu0 %3512  ;;  %v505_v11 = vsel %vm498_vm4, %v3504_v30, %v3509_v5  ;;  %v506_v31 = vsel %vm498_vm4, %v3505_v23, %v3510_v16 }
  0xf7   : > { %v3515_v44 = vunpack.i.h.bf16 %v3513_v28  ;;  %v3514_v46 = vunpack.i.l.bf16 %v3513_v28  ;;  %v295_v58 = vpop.permute.xlu1 %294  ;;  %v533_v1 = vpack.c.bf16 %v506_v31, %v505_v11  ;;  %v1001_v11 = vld [vmem:[%s8070_s3 + $0x28] sm:$0xff]  ;;  %v1000_v31 = vld [vmem:[%s8070_s3 + $0x20] sm:$0xff] }
  0xf9   : > { %1181 = vmatprep.subr.bf16.mxu0 %v533_v1  ;;  %v513_v21 = vsel %vm498_vm4, %v3514_v46, %v3504_v30  ;;  %v514_v27 = vsel %vm498_vm4, %v3515_v44, %v3505_v23  ;;  %v5047_v61 = vsel %vm498_vm4, %v3509_v5, %v3514_v46  ;;  %v5051_v26 = vsel %vm498_vm4, %v3510_v16, %v3515_v44  ;;  %v1002_v23 = vld [vmem:[%s8070_s3 + $0x30] sm:$0xff]  ;;  %v1003_v5 = vld [vmem:[%s8070_s3 + $0x38] sm:$0xff] }
  0xfa   : > { %v297_v20 = vpop.permute.xlu0 %296  ;;  %v532_v6 = vpack.c.bf16 %v514_v27, %v513_v21  ;;  %1036 = vperm.xlu0 %3741, %v1002_v23   ;;  %1041 = vperm.xlu1 %3742, %v1003_v5  }
  0xfb   : > { %v5055_v1 = vpop.permute.xlu1 %310 }
  0xfc   : > { %8365 = vst [vmem:[#allocation25_spill] sm:$0xff] %v5055_v1  ;;  %1182 = vmatpush2.bf16.msra.mxu0 %v532_v6  ;;  %v5068_v46 = vsel %vm328_vm3, %v295_v58, %v5055_v1 }
  0xfd   : > { %8367 = vst [vmem:[#allocation27_spill] sm:$0xff] %v5068_v46 }
  0xfe   : > { %v5063_v44 = vpop.permute.xlu0 %312  ;;  %1031 = vperm.xlu0 %3741, %v1001_v11   ;;  %1026 = vperm.xlu1 %3742, %v1000_v31   ;;  %v999_v11 = vld [vmem:[%s8070_s3 + $0x18] sm:$0xff]  ;;  %v996_v31 = vld [vmem:[%s8070_s3] sm:$0xff] }
  0xff   : > { %8366 = vst [vmem:[#allocation26_spill] sm:$0xff] %v5063_v44  ;;  %v5073_v6 = vsel %vm328_vm3, %v297_v20, %v5063_v44  ;;  %v5075_v30 = vpop.permute.xlu1 %278 }
 0x100   : > { %8368 = vst [vmem:[#allocation28_spill] sm:$0xff] %v5073_v6  ;;  %8369 = vst [vmem:[#allocation29_spill] sm:$0xff] %v5075_v30  ;;  %v621_v16 = vpack.c.bf16 %v5073_v6, %v5068_v46  ;;  %v5090_v27 = vsel %vm328_vm3, %v5075_v30, %v295_v58 }
 0x101   : > { %8371 = vst [vmem:[#allocation31_spill] sm:$0xff] %v5090_v27 }
 0x102   : > { %v5085_v21 = vpop.permute.xlu0 %280  ;;  %1244 = vmatprep.subr.bf16.mxu1 %v621_v16  ;;  %v998_v16 = vld [vmem:[%s8070_s3 + $0x10] sm:$0xff]  ;;  %1021 = vperm.xlu0 %3741, %v999_v11  }
 0x103   : > { %8370 = vst [vmem:[#allocation30_spill] sm:$0xff] %v5085_v21  ;;  %v5095_v23 = vsel %vm328_vm3, %v5085_v21, %v297_v20  ;;  %v3518_v5 = vpop.permute.xlu1 %3517  ;;  %1016 = vperm.xlu1 %3742, %v998_v16   ;;  %v997_v20 = vld [vmem:[%s8070_s3 + $0x8] sm:$0xff] }
 0x104   : > { %8372 = vst [vmem:[#allocation32_spill] sm:$0xff] %v5095_v23  ;;  %v620_v28 = vpack.c.bf16 %v5095_v23, %v5090_v27  ;;  %v3520_v49 = vunpack.i.h.bf16 %v3518_v5  ;;  %v3519_v62 = vunpack.i.l.bf16 %v3518_v5 }
 0x106   : > { %v3523_v58 = vpop.permute.xlu0 %3522  ;;  %1245 = vmatpush1.bf16.msra.mxu1 %v620_v28  ;;  %1011 = vperm.xlu0 %3741, %v997_v20  }
 0x107   : > { %v3525_v40 = vunpack.i.h.bf16 %v3523_v58  ;;  %v3524_v7 = vunpack.i.l.bf16 %v3523_v58  ;;  %v3528_v12 = vpop.permute.xlu1 %3527  ;;  %1006 = vperm.xlu1 %3742, %v996_v31  }
 0x108   : > { %v3530_v54 = vunpack.i.h.bf16 %v3528_v12  ;;  %v3529_v34 = vunpack.i.l.bf16 %v3528_v12 }
 0x109   : > { %v503_v11 = vsel %vm498_vm4, %v3519_v62, %v3524_v7  ;;  %v504_v28 = vsel %vm498_vm4, %v3520_v49, %v3525_v40 }
 0x10a   : > { %v3533_v16 = vpop.permute.xlu0 %3532  ;;  %v530_v24 = vpack.c.bf16 %v504_v28, %v503_v11  ;;  %v511_v5 = vsel %vm498_vm4, %v3529_v34, %v3519_v62  ;;  %v512_v58 = vsel %vm498_vm4, %v3530_v54, %v3520_v49  ;;  %v5122_v12 = vsel %vm498_vm4, %v3524_v7, %v3529_v34 }
 0x10b   : > { %v3535_v37 = vunpack.i.h.bf16 %v3533_v16  ;;  %v3534_v35 = vunpack.i.l.bf16 %v3533_v16  ;;  %v3538_v6 = vpop.permute.xlu1 %3537  ;;  %v529_v23 = vpack.c.bf16 %v512_v58, %v511_v5  ;;  %v5126_v20 = vsel %vm498_vm4, %v3525_v40, %v3530_v54 }
 0x10c   : > { %v3540_v31 = vunpack.i.h.bf16 %v3538_v6  ;;  %v3539_v11 = vunpack.i.l.bf16 %v3538_v6  ;;  %1183 = vmatprep.subr.bf16.mxu0 %v530_v24 }
 0x10d   : > { %1184 = vmatpush2.bf16.msra.mxu0 %v529_v23 }
 0x10e   : > { %v3543_v49 = vpop.permute.xlu0 %3542  ;;  %v857_v7 = vsel %vm850_vm5, %v3534_v35, %v3539_v11  ;;  %v858_v34 = vsel %vm850_vm5, %v3535_v37, %v3540_v31 }
 0x10f   : > { %v3545_v28 = vunpack.i.h.bf16 %v3543_v49  ;;  %v3544_v16 = vunpack.i.l.bf16 %v3543_v49  ;;  %v3548_v5 = vpop.permute.xlu1 %3547  ;;  %v885_v58 = vpack.c.bf16 %v858_v34, %v857_v7 }
 0x110   : > { %v3550_v7 = vunpack.i.h.bf16 %v3548_v5  ;;  %v3549_v34 = vunpack.i.l.bf16 %v3548_v5 }
 0x111   : > { %1246 = vmatprep.subr.bf16.mxu1 %v885_v58  ;;  %v865_v40 = vsel %vm850_vm5, %v3544_v16, %v3534_v35  ;;  %v866_v54 = vsel %vm850_vm5, %v3545_v28, %v3535_v37  ;;  %v5140_v24 = vsel %vm850_vm5, %v3539_v11, %v3544_v16  ;;  %v5144_v6 = vsel %vm850_vm5, %v3540_v31, %v3545_v28 }
 0x112   : > { %v3553_v23 = vpop.permute.xlu0 %3552  ;;  %v884_v62 = vpack.c.bf16 %v866_v54, %v865_v40 }
 0x113   : > { %v3555_v58 = vunpack.i.h.bf16 %v3553_v23  ;;  %v3554_v35 = vunpack.i.l.bf16 %v3553_v23  ;;  %v3558_v46 = vpop.permute.xlu1 %3557 }
 0x114   : > { %v3560_v27 = vunpack.i.h.bf16 %v3558_v46  ;;  %v3559_v37 = vunpack.i.l.bf16 %v3558_v46  ;;  %1247 = vmatpush2.bf16.msra.mxu1 %v884_v62 }
 0x115   : > { %v501_v11 = vsel %vm498_vm4, %v3549_v34, %v3554_v35  ;;  %v502_v31 = vsel %vm498_vm4, %v3550_v7, %v3555_v58 }
 0x116   : > { %v3563_v28 = vpop.permute.xlu0 %3562  ;;  %v527_v16 = vpack.c.bf16 %v502_v31, %v501_v11  ;;  %v509_v40 = vsel %vm498_vm4, %v3559_v37, %v3549_v34  ;;  %v510_v5 = vsel %vm498_vm4, %v3560_v27, %v3550_v7  ;;  %v5158_v54 = vsel %vm498_vm4, %v3554_v35, %v3559_v37 }
 0x117   : > { %v3565_v46 = vunpack.i.h.bf16 %v3563_v28  ;;  %v3564_v62 = vunpack.i.l.bf16 %v3563_v28  ;;  %v3568_v23 = vpop.permute.xlu1 %3567  ;;  %v526_v49 = vpack.c.bf16 %v510_v5, %v509_v40  ;;  %v5162_v1 = vsel %vm498_vm4, %v3555_v58, %v3560_v27 }
 0x118   : > { %v3570_v30 = vunpack.i.h.bf16 %v3568_v23  ;;  %v3569_v11 = vunpack.i.l.bf16 %v3568_v23  ;;  %1185 = vmatprep.subr.bf16.mxu0 %v527_v16 }
 0x119   : > { %1186 = vmatpush2.bf16.msra.mxu0 %v526_v49 }
 0x11a   : > { %v3573_v7 = vpop.permute.xlu0 %3572  ;;  %v855_v35 = vsel %vm850_vm5, %v3564_v62, %v3569_v11  ;;  %v856_v37 = vsel %vm850_vm5, %v3565_v46, %v3570_v30 }
 0x11b   : > { %v3575_v31 = vunpack.i.h.bf16 %v3573_v7  ;;  %v3574_v28 = vunpack.i.l.bf16 %v3573_v7  ;;  %v3578_v40 = vpop.permute.xlu1 %3577  ;;  %v882_v5 = vpack.c.bf16 %v856_v37, %v855_v35 }
 0x11c   : > { %v3580_v35 = vunpack.i.h.bf16 %v3578_v40  ;;  %v3579_v37 = vunpack.i.l.bf16 %v3578_v40 }
 0x11d   : > { %1248 = vmatprep.subr.bf16.mxu1 %v882_v5  ;;  %v863_v27 = vsel %vm850_vm5, %v3574_v28, %v3564_v62  ;;  %v864_v58 = vsel %vm850_vm5, %v3575_v31, %v3565_v46  ;;  %v5176_v49 = vsel %vm850_vm5, %v3569_v11, %v3574_v28  ;;  %v5180_v16 = vsel %vm850_vm5, %v3570_v30, %v3575_v31 }
 0x11e   : > { %v3583_v23 = vpop.permute.xlu0 %3582  ;;  %v881_v34 = vpack.c.bf16 %v864_v58, %v863_v27 }
 0x11f   : > { %v3585_v5 = vunpack.i.h.bf16 %v3583_v23  ;;  %v3584_v62 = vunpack.i.l.bf16 %v3583_v23  ;;  %v3588_v44 = vpop.permute.xlu1 %3587 }
 0x120   : > { %v3590_v21 = vunpack.i.h.bf16 %v3588_v44  ;;  %v3589_v46 = vunpack.i.l.bf16 %v3588_v44  ;;  %1249 = vmatpush2.bf16.msra.mxu1 %v881_v34 }
 0x121   : > { %v499_v11 = vsel %vm498_vm4, %v3579_v37, %v3584_v62  ;;  %v500_v30 = vsel %vm498_vm4, %v3580_v35, %v3585_v5 }
 0x122   : > { %v3593_v31 = vpop.permute.xlu0 %3592  ;;  %v524_v28 = vpack.c.bf16 %v500_v30, %v499_v11  ;;  %v507_v27 = vsel %vm498_vm4, %v3589_v46, %v3579_v37  ;;  %v508_v40 = vsel %vm498_vm4, %v3590_v21, %v3580_v35  ;;  %v5194_v58 = vsel %vm498_vm4, %v3584_v62, %v3589_v46  ;;  %v5203_v37 = vld [vmem:[%s8069_s2] ss:$20 sps:$4 sm:$0xff]  }
 0x123   : > { %v3595_v44 = vunpack.i.h.bf16 %v3593_v31  ;;  %v3594_v34 = vunpack.i.l.bf16 %v3593_v31  ;;  %v3598_v23 = vpop.permute.xlu1 %3597  ;;  %v523_v7 = vpack.c.bf16 %v508_v40, %v507_v27  ;;  %v5198_v47 = vsel %vm498_vm4, %v3585_v5, %v3590_v21  ;;  %8373 = vst [vmem:[#allocation33_spill] sm:$0xff] %v5203_v37  ;;  %v5210_v62 = vld [vmem:[%s8069_s2 + $0x2c] ss:$20 sps:$4 sm:$0xff]  }
 0x124   : > { %v3600_v15 = vunpack.i.h.bf16 %v3598_v23  ;;  %v3599_v11 = vunpack.i.l.bf16 %v3598_v23  ;;  %1187 = vmatprep.subr.bf16.mxu0 %v524_v28  ;;  %8374 = vst [vmem:[#allocation34_spill] sm:$0xff] %v5210_v62 }
 0x125   : > { %1188 = vmatpush2.bf16.msra.mxu0 %v523_v7 }
 0x126   : > { %v3603_v46 = vpop.permute.xlu0 %3602  ;;  %v853_v21 = vsel %vm850_vm5, %v3594_v34, %v3599_v11  ;;  %v854_v5 = vsel %vm850_vm5, %v3595_v44, %v3600_v15 }
 0x127   : > { %v3605_v30 = vunpack.i.h.bf16 %v3603_v46  ;;  %v3604_v31 = vunpack.i.l.bf16 %v3603_v46  ;;  %v3608_v28 = vpop.permute.xlu1 %3607  ;;  %v879_v27 = vpack.c.bf16 %v854_v5, %v853_v21 }
 0x128   : > { %1190 = vmatmul.mubr.bf16.vlgmr.msra.gmra.mxu0 %v5203_v37  ;;  %v3610_v35 = vunpack.i.h.bf16 %v3608_v28  ;;  %v3609_v5 = vunpack.i.l.bf16 %v3608_v28 }
 0x129   : > { %1250 = vmatprep.subr.bf16.mxu1 %v879_v27  ;;  %v861_v7 = vsel %vm850_vm5, %v3604_v31, %v3594_v34  ;;  %v862_v40 = vsel %vm850_vm5, %v3605_v30, %v3595_v44  ;;  %1199 = vmatprep.mubr.bf16.mxu0 %v5210_v62  ;;  %v5224_v23 = vsel %vm850_vm5, %v3599_v11, %v3604_v31 }
 0x12a   : > { %v5226_v10 = vpop.permute.xlu0 %3612  ;;  %v878_v46 = vpack.c.bf16 %v862_v40, %v861_v7  ;;  %v5230_v21 = vsel %vm850_vm5, %v3600_v15, %v3605_v30  ;;  %v5243_v15 = vld [vmem:[%s8069_s2 + $0x28] ss:$20 sps:$4 sm:$0xff]  }
 0x12b   : > { %v8104_v34 = vunpack.i.h.bf16 %v5226_v10  ;;  %v8101_v27 = vunpack.i.l.bf16 %v5226_v10  ;;  %v5234_v44 = vpop.permute.xlu1 %3617  ;;  %8375 = vst [vmem:[#allocation35_spill] sm:$0xff] %v5243_v15  ;;  %v5256_v7 = vld [vmem:[%s8069_s2 + $0x54] ss:$20 sps:$4 sm:$0xff]  }
 0x12c   : > { %v8109_v11 = vunpack.i.h.bf16 %v5234_v44  ;;  %v8110_v31 = vunpack.i.l.bf16 %v5234_v44  ;;  %1251 = vmatpush2.bf16.msra.mxu1 %v878_v46  ;;  %8376 = vst [vmem:[#allocation36_spill] sm:$0xff] %v5256_v7 }
 0x12d   : > { %v851_v30 = vsel %vm850_vm5, %v3609_v5, %v8101_v27  ;;  %v852_v28 = vsel %vm850_vm5, %v3610_v35, %v8104_v34 }
 0x12e   : > { %v3623_v40 = vpop.permute.xlu0 %3622  ;;  %v876_v46 = vpack.c.bf16 %v852_v28, %v851_v30  ;;  %v859_v0 = vsel %vm850_vm5, %v8110_v31, %v3609_v5  ;;  %v860_v27 = vsel %vm850_vm5, %v8109_v11, %v3610_v35 }
 0x12f   : > { %v3625_v62 = vunpack.i.h.bf16 %v3623_v40  ;;  %v3624_v32 = vunpack.i.l.bf16 %v3623_v40  ;;  %v5266_v34 = vpop.permute.xlu1 %3627  ;;  %v875_v41 = vpack.c.bf16 %v860_v27, %v859_v0 }
 0x130   : > { %v8108_v37 = vunpack.i.h.bf16 %v5266_v34  ;;  %v8107_v30 = vunpack.i.l.bf16 %v5266_v34  ;;  %1252 = vmatprep.subr.bf16.mxu1 %v876_v46  ;;  %1200 = vmatmul.mubr.bf16.gmra.mxu0 %v5243_v15  ;;  %v5288_v46 = vld [vmem:[%s8069_s2 + $0x50] ss:$20 sps:$4 sm:$0xff]  }
 0x131   : > { %1253 = vmatpush2.bf16.msra.mxu1 %v875_v41  ;;  %1209 = vmatprep.mubr.bf16.mxu0 %v5256_v7  ;;  %8377 = vst [vmem:[#allocation37_spill] sm:$0xff] %v5288_v46 }
 0x132   : > { %v5273_v5 = vpop.permute.xlu0 %3632  ;;  %v772_v35 = vsel %vm765_vm6, %v3624_v32, %v8107_v30  ;;  %v773_v0 = vsel %vm765_vm6, %v3625_v62, %v8108_v37 }
 0x133   : > { %v8114_v27 = vunpack.i.h.bf16 %v5273_v5  ;;  %v8113_v28 = vunpack.i.l.bf16 %v5273_v5  ;;  %v3638_v40 = vpop.permute.xlu1 %3637  ;;  %v800_v41 = vpack.c.bf16 %v773_v0, %v772_v35  ;;  %v5301_v35 = vld [vmem:[%s8069_s2 + $0x7c] ss:$20 sps:$4 sm:$0xff]  }
 0x134   : > { %8378 = vst [vmem:[#allocation38_spill] sm:$0xff] %v5301_v35  ;;  %v3640_v31 = vunpack.i.h.bf16 %v3638_v40 }
 0x135   : > { %1254 = vmatprep.subr.bf16.mxu1 %v800_v41  ;;  %v780_v30 = vsel %vm765_vm6, %v8113_v28, %v3624_v32  ;;  %v781_v37 = vsel %vm765_vm6, %v8114_v27, %v3625_v62  ;;  %v3639_v41 = vunpack.i.l.bf16 %v3638_v40 }
 0x136   : > { %v5303_v0 = vpop.permute.xlu0 %3642  ;;  %v799_v11 = vpack.c.bf16 %v781_v37, %v780_v30 }
 0x137   : > { %8379 = vst [vmem:[#allocation39_spill] sm:$0xff] %v5303_v0  ;;  %v8121_v7 = vunpack.i.h.bf16 %v5303_v0  ;;  %v8116_v15 = vunpack.i.l.bf16 %v5303_v0  ;;  %v5307_v32 = vpop.permute.xlu1 %3647 }
 0x138   : > { %8380 = vst [vmem:[#allocation40_spill] sm:$0xff] %v5307_v32  ;;  %v8125_v28 = vunpack.i.h.bf16 %v5307_v32  ;;  %v8126_v62 = vunpack.i.l.bf16 %v5307_v32  ;;  %1255 = vmatpush2.bf16.msra.mxu1 %v799_v11  ;;  %1210 = vmatmul.mubr.bf16.gmra.mxu0 %v5288_v46 }
 0x139   : > { %v770_v37 = vsel %vm765_vm6, %v3639_v41, %v8116_v15  ;;  %v771_v30 = vsel %vm765_vm6, %v3640_v31, %v8121_v7  ;;  %1219 = vmatprep.mubr.bf16.mxu0 %v5301_v35 }
 0x13a   : > { %v3653_v40 = vpop.permute.xlu0 %3652  ;;  %v797_v27 = vpack.c.bf16 %v771_v30, %v770_v37  ;;  %v778_v11 = vsel %vm765_vm6, %v8126_v62, %v3639_v41  ;;  %v779_v46 = vsel %vm765_vm6, %v8125_v28, %v3640_v31  ;;  %v5336_v37 = vld [vmem:[%s8069_s2 + $0x78] ss:$20 sps:$4 sm:$0xff]  }
 0x13b   : > { %v3655_v15 = vunpack.i.h.bf16 %v3653_v40  ;;  %v3654_v29 = vunpack.i.l.bf16 %v3653_v40  ;;  %v5329_v33 = vpop.permute.xlu1 %3657  ;;  %v796_v0 = vpack.c.bf16 %v779_v46, %v778_v11  ;;  %8382 = vst [vmem:[#allocation42_spill] sm:$0xff] %v5336_v37 }
 0x13c   : > { %8381 = vst [vmem:[#allocation41_spill] sm:$0xff] %v5329_v33  ;;  %v8124_v7 = vunpack.i.h.bf16 %v5329_v33  ;;  %v8123_v35 = vunpack.i.l.bf16 %v5329_v33  ;;  %1256 = vmatprep.subr.bf16.mxu1 %v797_v27 }
 0x13d   : > { %1257 = vmatpush2.bf16.msra.mxu1 %v796_v0 }
 0x13e   : > { %v5338_v41 = vpop.permute.xlu0 %3662  ;;  %v768_v31 = vsel %vm765_vm6, %v3654_v29, %v8123_v35  ;;  %v769_v46 = vsel %vm765_vm6, %v3655_v15, %v8124_v7  ;;  %v8384_v7 = vmov 0  }
 0x13f   : > { %8383 = vst [vmem:[#allocation43_spill] sm:$0xff] %v5338_v41  ;;  %v8131_v27 = vunpack.i.h.bf16 %v5338_v41  ;;  %v8130_v30 = vunpack.i.l.bf16 %v5338_v41  ;;  %v3668_v40 = vpop.permute.xlu1 %3667  ;;  %v794_v11 = vpack.c.bf16 %v769_v46, %v768_v31 }
 0x140   : > { %1220 = vmatmul.mubr.bf16.gmra.mxu0 %v5336_v37  ;;  %v3670_v46 = vunpack.i.h.bf16 %v3668_v40  ;;  %v3669_v62 = vunpack.i.l.bf16 %v3668_v40 }
 0x141   : > { %1258 = vmatprep.subr.bf16.mxu1 %v794_v11  ;;  %v776_v0 = vsel %vm765_vm6, %v8130_v30, %v3654_v29  ;;  %v777_v35 = vsel %vm765_vm6, %v8131_v27, %v3655_v15  ;;  %1335 = vmatprep.mubr.bf16.mxu0 %v8384_v7 }
 0x142   : > { %v5360_v28 = vpop.permute.xlu0 %3672  ;;  %v793_v31 = vpack.c.bf16 %v777_v35, %v776_v0 }
 0x143   : > { %v8139_v11 = vunpack.i.h.bf16 %v5360_v28  ;;  %v8136_v37 = vunpack.i.l.bf16 %v5360_v28  ;;  %v5365_v33 = vpop.permute.xlu1 %3677 }
 0x144   : > { %v8143_v29 = vunpack.i.h.bf16 %v5365_v33  ;;  %v8144_v30 = vunpack.i.l.bf16 %v5365_v33  ;;  %1259 = vmatpush2.bf16.msra.mxu1 %v793_v31 }
 0x145   : > { %v942_v15 = vsel %vm935_vm7, %v3669_v62, %v8136_v37  ;;  %v943_v35 = vsel %vm935_vm7, %v3670_v46, %v8139_v11 }
 0x146   : > { %v950_v40 = vsel %vm935_vm7, %v8144_v30, %v3669_v62  ;;  %v951_v0 = vsel %vm935_vm7, %v8143_v29, %v3670_v46  ;;  %v3683_v31 = vpop.permute.xlu0 %3682  ;;  %v970_v27 = vpack.c.bf16 %v943_v35, %v942_v15 }
 0x147   : > { %v3685_v41 = vunpack.i.h.bf16 %v3683_v31  ;;  %v3684_v32 = vunpack.i.l.bf16 %v3683_v31  ;;  %v5385_v37 = vpop.permute.xlu1 %3687  ;;  %v969_v53 = vpack.c.bf16 %v951_v0, %v950_v40 }
 0x148   : > { %8385 = vst [vmem:[#allocation44_spill] sm:$0xff] %v5385_v37  ;;  %v8141_v50 = vunpack.i.h.bf16 %v5385_v37  ;;  %v8142_v11 = vunpack.i.l.bf16 %v5385_v37  ;;  %1311 = vmatprep.subr.bf16.mxu0 %v970_v27 }
 0x149   : > { %1312 = vmatpush1.bf16.msra.mxu0 %v969_v53 }
 0x14a   : > { %v5389_v19 = vpop.permute.xlu0 %3692  ;;  %v766_v62 = vsel %vm765_vm6, %v3684_v32, %v8142_v11  ;;  %v767_v46 = vsel %vm765_vm6, %v3685_v41, %v8141_v50 }
 0x14b   : > { %v8145_v15 = vunpack.i.h.bf16 %v5389_v19  ;;  %v8146_v35 = vunpack.i.l.bf16 %v5389_v19  ;;  %v3698_v40 = vpop.permute.xlu1 %3697  ;;  %v791_v0 = vpack.c.bf16 %v767_v46, %v766_v62 }
 0x14c   : > { %v3700_v11 = vunpack.i.h.bf16 %v3698_v40  ;;  %v3699_v29 = vunpack.i.l.bf16 %v3698_v40 }
 0x14d   : > { %1260 = vmatprep.subr.bf16.mxu1 %v791_v0  ;;  %v774_v53 = vsel %vm765_vm6, %v8146_v35, %v3684_v32  ;;  %v775_v27 = vsel %vm765_vm6, %v8145_v15, %v3685_v41  ;;  %v5418_v32 = vld [vmem:[%s8069_s2 + $0x8] ss:$20 sps:$4 sm:$0xff]  }
 0x14e   : > { %v5409_v31 = vpop.permute.xlu0 %3702  ;;  %v790_v50 = vpack.c.bf16 %v775_v27, %v774_v53  ;;  %v8386_v53 = vpack.c.bf16 %v4803_v39, %v4799_v25 }
 0x14f   : > { %v8148_v30 = vunpack.i.h.bf16 %v5409_v31  ;;  %v8147_v62 = vunpack.i.l.bf16 %v5409_v31  ;;  %v5413_v46 = vpop.permute.xlu1 %3707 }
 0x150   : > { %v3710_v0 = vunpack.i.h.bf16 %v5413_v46  ;;  %v8151_v41 = vunpack.i.l.bf16 %v5413_v46  ;;  %1261 = vmatpush2.bf16.msra.mxu1 %v790_v50 }
 0x151   : > { %3090 = vmatprep.subr.bf16.mxu1 %v8386_v53  ;;  %v940_v40 = vsel %vm935_vm7, %v3699_v29, %v8147_v62  ;;  %v941_v27 = vsel %vm935_vm7, %v3700_v11, %v8148_v30  ;;  %v5444_v53 = vld [vmem:[%s8069_s2 + $0x34] ss:$20 sps:$4 sm:$0xff]  }
 0x152   : > { %v948_v15 = vsel %vm935_vm7, %v8151_v41, %v3699_v29  ;;  %v949_v25 = vsel %vm935_vm7, %v3710_v0, %v3700_v11  ;;  %v3713_v39 = vpop.permute.xlu0 %3712  ;;  %v967_v50 = vpack.c.bf16 %v941_v27, %v940_v40  ;;  %v8387_v11 = vpack.c.bf16 %v4612_v52, %v4608_v51 }
 0x153   : > { %v3715_v35 = vunpack.i.h.bf16 %v3713_v39  ;;  %v3714_v62 = vunpack.i.l.bf16 %v3713_v39  ;;  %v5446_v30 = vpop.permute.xlu1 %3717  ;;  %1263 = vmatmul.mubr.bf16.vlgmr.msra.gmra.mxu1 %v5418_v32  ;;  %v966_v37 = vpack.c.bf16 %v949_v25, %v948_v15  ;;  %v8388_v40 = vpack.c.bf16 %v4854_v42, %v4850_v9 }
 0x154   : > { %v8152_v29 = vunpack.i.h.bf16 %v5446_v30  ;;  %v3719_v41 = vunpack.i.l.bf16 %v5446_v30  ;;  %1313 = vmatprep.subr.bf16.mxu0 %v967_v50  ;;  %3091 = vmatpush3.bf16.msra.mxu1 %v8387_v11  ;;  %v8389_v39 = vpack.c.bf16 %v4632_v17, %v4636_v18  ;;  %v5492_v17 = vld [vmem:[%s8069_s2 + $0x5c] ss:$20 sps:$4 sm:$0xff]  }
 0x155   : > { %1314 = vmatpush1.bf16.msra.mxu0 %v966_v37  ;;  %3092 = vmatprep.subr.bf16.mxu1 %v8388_v40  ;;  %v5473_v37 = vld [vmem:[%s8069_s2 + $0x30] ss:$20 sps:$4 sm:$0xff]   ;;  %v8390_v40 = vpack.c.bf16 %v4928_v8, %v4924_v13 }
 0x156   : > { %v5457_v27 = vpop.permute.xlu0 %3722  ;;  %v938_v15 = vsel %vm935_vm7, %v3714_v62, %v3719_v41  ;;  %v939_v25 = vsel %vm935_vm7, %v3715_v35, %v8152_v29  ;;  %1272 = vmatprep.mubr.bf16.mxu1 %v5444_v53 }
 0x157   : > { %v3725_v51 = vunpack.i.h.bf16 %v5457_v27  ;;  %v3724_v52 = vunpack.i.l.bf16 %v5457_v27  ;;  %v3728_v9 = vpop.permute.xlu1 %3727  ;;  %v964_v42 = vpack.c.bf16 %v939_v25, %v938_v15 }
 0x158   : > { %3093 = vmatpush3.bf16.msra.mxu1 %v8389_v39  ;;  %v3730_v25 = vunpack.i.h.bf16 %v3728_v9 }
 0x159   : > { %v946_v50 = vsel %vm935_vm7, %v3724_v52, %v3714_v62  ;;  %v947_v11 = vsel %vm935_vm7, %v3725_v51, %v3715_v35  ;;  %1315 = vmatprep.subr.bf16.mxu0 %v964_v42  ;;  %3094 = vmatprep.subr.bf16.mxu1 %v8390_v40  ;;  %v3729_v62 = vunpack.i.l.bf16 %v3728_v9  ;;  %v8391_v42 = vpack.c.bf16 %v4656_v57, %v4660_v59  ;;  %v5529_v40 = vld [vmem:[%s8069_s2 + $0x58] ss:$20 sps:$4 sm:$0xff]  }
 0x15a   : > { %v5494_v18 = vpop.permute.xlu0 %3732  ;;  %v963_v15 = vpack.c.bf16 %v947_v11, %v946_v50  ;;  %v8392_v9 = vpack.c.bf16 %v4996_v55, %v4992_v3 }
 0x15b   : > { %v3735_v39 = vunpack.i.h.bf16 %v5494_v18  ;;  %v3734_v29 = vunpack.i.l.bf16 %v5494_v18  ;;  %v5498_v35 = vpop.permute.xlu1 %3737  ;;  %1273 = vmatmul.mubr.bf16.gmra.mxu1 %v5473_v37 }
 0x15c   : > { %v3740_v13 = vunpack.i.h.bf16 %v5498_v35  ;;  %v3739_v8 = vunpack.i.l.bf16 %v5498_v35  ;;  %1316 = vmatpush1.bf16.msra.mxu0 %v963_v15  ;;  %3095 = vmatpush3.bf16.msra.mxu1 %v8391_v42  ;;  %v8393_v15 = vpack.c.bf16 %v4681_v43, %v4685_v45  ;;  %v4280_v42 = vld [vmem:[%s4364_s26 + $0xb8] sm:$0xff]  ;;  %v4281_v45 = vld [vmem:[%s4364_s26 + $0x70] sm:$0xff] }
 0x15d   : > { %3096 = vmatprep.subr.bf16.mxu1 %v8392_v9  ;;  %v936_v50 = vsel %vm935_vm7, %v3729_v62, %v3734_v29  ;;  %v937_v11 = vsel %vm935_vm7, %v3730_v25, %v3735_v39  ;;  %1282 = vmatprep.mubr.bf16.mxu1 %v5492_v17  ;;  %v5550_v43 = vld [vmem:[%s8069_s2 + $0x84] ss:$20 sps:$4 sm:$0xff]  }
 0x15e   : > { %v944_v57 = vsel %vm935_vm7, %v3739_v8, %v3729_v62  ;;  %v945_v59 = vsel %vm935_vm7, %v3740_v13, %v3730_v25  ;;  %v961_v55 = vpack.c.bf16 %v937_v11, %v936_v50  ;;  %v5537_v62 = vld [vmem:[%s8069_s2 + $0x10] ss:$20 sps:$4 sm:$0xff]   ;;  %v8394_v50 = vpack.c.bf16 %v5051_v26, %v5047_v61  ;;  %v4282_v26 = vld [vmem:[%s4364_s26 + $0x88] sm:$0xff] }
 0x15f   : > { %v960_v3 = vpack.c.bf16 %v945_v59, %v944_v57  ;;  %v4279_v25 = vld [vmem:[%s4364_s26 + $0xa0] sm:$0xff]  ;;  %v8395_v11 = vpack.c.bf16 %v5144_v6, %v5140_v24  ;;  %v361_v61 = vpack.c.bf16 %v4282_v26, %v4281_v45  ;;  %v8396_v24 = vpack.c.bf16 %v5126_v20, %v5122_v12  ;;  %v4284_v12 = vld [vmem:[%s4364_s26 + $0x58] sm:$0xff] }
 0x160   : > { %1317 = vmatprep.subr.bf16.mxu0 %v961_v55  ;;  %3097 = vmatpush3.bf16.msra.mxu1 %v8393_v15  ;;  %v364_v9 = vpack.c.bf16 %v4280_v42, %v4279_v25  ;;  %v8397_v6 = vpack.c.bf16 %v4718_v4, %v4714_v2  ;;  %v8398_v57 = vpack.c.bf16 %v5180_v16, %v5176_v49  ;;  %v5570_v59 = vld [vmem:[%s8069_s2 + $0x80] ss:$20 sps:$4 sm:$0xff]   ;;  %v5576_v2 = vld [vmem:[%s8069_s2 + $0x38] ss:$20 sps:$4 sm:$0xff]   ;;  %v8401_v55 = vunpack.i.l.bf16 %v5234_v44 }
 0x161   : > { %1318 = vmatpush1.bf16.msra.mxu0 %v960_v3  ;;  %3098 = vmatprep.subr.bf16.mxu1 %v8394_v50  ;;  %v4283_v4 = vld [vmem:[%s4364_s26 + $0x40] sm:$0xff]  ;;  %v8399_v49 = vpack.c.bf16 %v5162_v1, %v5158_v54  ;;  %v8400_v16 = vpack.c.bf16 %v4744_v56, %v4748_v22  ;;  %v8402_v3 = vunpack.i.l.bf16 %v5226_v10  ;;  %v8403_v25 = vunpack.i.h.bf16 %v5234_v44  ;;  %v4285_v56 = vld [vmem:[%s4364_s26 + $0x10] sm:$0xff]  ;;  %v4286_v22 = vld [vmem:[%s4364_s26 + $0x28] sm:$0xff] }
 0x162   : > { %3130 = vmatprep.subr.bf16.mxu0 %v8395_v11  ;;  %v358_v20 = vpack.c.bf16 %v4284_v12, %v4283_v4  ;;  %v8404_v42 = vunpack.i.h.bf16 %v5226_v10  ;;  %v8405_v1 = vpack.c.bf16 %v5230_v21, %v5224_v23  ;;  %v355_v54 = vpack.c.bf16 %v4286_v22, %v4285_v56  ;;  %v5655_v12 = vld [vmem:[%s8069_s2 + $0x60] ss:$20 sps:$4 sm:$0xff]  }
 0x163   : > { %1283 = vmatmul.mubr.bf16.gmra.mxu1 %v5529_v40  ;;  %v867_v15 = vsel %vm850_vm5, %v8402_v3, %v8401_v55  ;;  %v8406_v44 = vunpack.i.l.bf16 %v5365_v33  ;;  %v8407_v10 = vunpack.i.l.bf16 %v5360_v28  ;;  %v8408_v23 = vunpack.i.h.bf16 %v5365_v33  ;;  %v8423_v55 = vld [vmem:[#allocation2_spill] sm:$0xff] }
 0x164   : > { %3052 = vmatmul.mubr.msk.bf16.vlgmr.msra.gmra.mxu0 %vm1144_vm8, %v5537_v62  ;;  %3099 = vmatpush3.bf16.msra.mxu1 %v364_v9  ;;  %v868_v9 = vsel %vm850_vm5, %v8404_v42, %v8403_v25  ;;  %v8409_v21 = vunpack.i.h.bf16 %v5360_v28  ;;  %v8410_v26 = vpack.c.bf16 %v5198_v47, %v5194_v58  ;;  %v8414_v28 = vunpack.i.h.bf16 %v5273_v5  ;;  %v8417_v58 = vld [vmem:[#allocation5_spill] sm:$0xff]  ;;  %v8427_v42 = vld [vmem:[#allocation39_spill] sm:$0xff]  ;;  %v8431_v22 = vld [vmem:[#allocation14_spill] sm:$0xff] }
 0x165   : > { %3100 = vmatprep.subr.bf16.mxu1 %v8396_v24  ;;  %3131 = vmatpush3.bf16.msra.mxu0 %v8397_v6  ;;  %v877_v50 = vpack.c.bf16 %v868_v9, %v867_v15  ;;  %v958_v11 = vsel %vm935_vm7, %v8407_v10, %v8406_v44  ;;  %v8412_v24 = vunpack.i.l.bf16 %v5273_v5  ;;  %v8413_v6 = vunpack.i.l.bf16 %v5266_v34  ;;  %v8425_v15 = vld [vmem:[#allocation40_spill] sm:$0xff]  ;;  %v8434_v44 = vld [vmem:[#allocation33_spill] sm:$0xff] }
 0x166   : > { %3132 = vmatprep.subr.bf16.mxu0 %v8398_v57  ;;  %1292 = vmatprep.mubr.bf16.mxu1 %v5550_v43  ;;  %v959_v45 = vsel %vm935_vm7, %v8409_v21, %v8408_v23  ;;  %v8415_v57 = vunpack.i.h.bf16 %v5266_v34  ;;  %v5650_v34 = vsel %vm328_vm3, %v8417_v58, %v4890_v63  ;;  %v8426_v25 = vunpack.i.l.bf16 %v8425_v15 }
 0x167   : > { %1345 = vmatprep.mubr.bf16.mxu0 %v8384_v7  ;;  %v788_v33 = vsel %vm765_vm6, %v8413_v6, %v8412_v24  ;;  %v971_v47 = vpack.c.bf16 %v959_v45, %v958_v11  ;;  %8418 = vst [vmem:[#allocation5_spill] sm:$0xff] %v5650_v34  ;;  %v8428_v9 = vunpack.i.l.bf16 %v8427_v42  ;;  %v8429_v56 = vunpack.i.h.bf16 %v8425_v15  ;;  %v8438_v24 = vld [vmem:[#allocation41_spill] sm:$0xff]  ;;  %v8453_v15 = vld [vmem:[#allocation44_spill] sm:$0xff] }
 0x168   : > { %3101 = vmatpush3.bf16.msra.mxu1 %v361_v61  ;;  %v8411_v61 = vpack.c.bf16 %v4774_v36, %v4770_v14  ;;  %v789_v4 = vsel %vm765_vm6, %v8415_v57, %v8414_v28  ;;  %v4287_v14 = vld [vmem:[%s8069_s2 + $0x4] ss:$20 sps:$4 sm:$0xff]   ;;  %v5643_v36 = vsel %vm328_vm3, %v4863_v48, %v4883_v60  ;;  %v8420_v48 = vunpack.i.l.bf16 %v5409_v31 }
 0x169   : > { %3102 = vmatprep.subr.bf16.mxu1 %v8399_v49  ;;  %3133 = vmatpush3.bf16.msra.mxu0 %v8400_v16  ;;  %8416 = vst [vmem:[#allocation45_spill] sm:$0xff] %v5643_v36  ;;  %v801_v5 = vpack.c.bf16 %v789_v4, %v788_v33  ;;  %v8421_v49 = vunpack.i.h.bf16 %v5409_v31  ;;  %v8422_v16 = vld [vmem:[#allocation3_spill] sm:$0xff]  ;;  %v954_v23 = vsel %vm935_vm7, %v3719_v41, %v3724_v52  ;;  %v8435_v21 = vunpack.i.h.bf16 %v5446_v30  ;;  %v8442_v30 = vld [vmem:[#allocation13_spill] sm:$0xff]  ;;  %v8445_v57 = vld [vmem:[#allocation34_spill] sm:$0xff] }
 0x16a   : > { %3134 = vmatprep.subr.bf16.mxu0 %v8405_v1  ;;  %v8424_v3 = vpack.c.bf16 %v8422_v16, %v8423_v55  ;;  %v786_v1 = vsel %vm765_vm6, %v8428_v9, %v8426_v25  ;;  %v8439_v6 = vunpack.i.l.bf16 %v8438_v24  ;;  %v8441_v41 = vunpack.i.h.bf16 %v8438_v24  ;;  %v8443_v52 = vld [vmem:[#allocation9_spill] sm:$0xff] }
 0x16b   : > { %1293 = vmatmul.mubr.bf16.gmra.mxu1 %v5570_v59  ;;  %v957_v63 = vsel %vm935_vm7, %v8421_v49, %v3710_v0  ;;  %v631_v0 = vpack.c.bf16 %v5650_v34, %v5643_v36  ;;  %v955_v45 = vsel %vm935_vm7, %v8435_v21, %v3725_v51  ;;  %v5723_v51 = vsel %vm328_vm3, %v8443_v52, %v8442_v30 }
 0x16c   : > { %3053 = vmatmul.mubr.msk.bf16.gmra.mxu0 %vm1144_vm8, %v5576_v2  ;;  %3103 = vmatpush3.bf16.msra.mxu1 %v358_v20  ;;  %v8419_v20 = vunpack.i.l.bf16 %v5413_v46  ;;  %v8430_v46 = vunpack.i.h.bf16 %v8427_v42  ;;  %8444 = vst [vmem:[#allocation2_spill] sm:$0xff] %v5723_v51  ;;  %v952_v16 = vsel %vm935_vm7, %v3734_v29, %v3739_v8  ;;  %v953_v55 = vsel %vm935_vm7, %v3735_v39, %v3740_v13  ;;  %v8457_v39 = vld [vmem:[#allocation35_spill] sm:$0xff]  ;;  %v8458_v8 = vld [vmem:[#allocation30_spill] sm:$0xff] }
 0x16d   : > { %3104 = vmatprep.subr.bf16.mxu1 %v8410_v26  ;;  %3135 = vmatpush3.bf16.msra.mxu0 %v8411_v61  ;;  %v8436_v26 = vld [vmem:[#allocation43_spill] sm:$0xff]  ;;  %v8454_v25 = vunpack.i.l.bf16 %v8453_v15  ;;  %v8455_v9 = vunpack.i.h.bf16 %v5389_v19  ;;  %v8456_v29 = vunpack.i.h.bf16 %v8453_v15  ;;  %v962_v13 = vpack.c.bf16 %v953_v55, %v952_v16 }
 0x16e   : > { %3136 = vmatprep.subr.bf16.mxu0 %v877_v50  ;;  %1408 = vmatprep.mubr.bf16.mxu1 %v4287_v14  ;;  %v956_v60 = vsel %vm935_vm7, %v8420_v48, %v8419_v20  ;;  %v787_v31 = vsel %vm765_vm6, %v8430_v46, %v8429_v56  ;;  %v8437_v61 = vunpack.i.l.bf16 %v8436_v26  ;;  %v8440_v28 = vunpack.i.h.bf16 %v8436_v26  ;;  %v8446_v14 = vld [vmem:[#allocation21_spill] sm:$0xff]  ;;  %v8449_v20 = vld [vmem:[#allocation23_spill] sm:$0xff] }
 0x16f   : > { %1355 = vmatprep.mubr.bf16.mxu0 %v8384_v7  ;;  %v968_v10 = vpack.c.bf16 %v957_v63, %v956_v60  ;;  %v798_v11 = vpack.c.bf16 %v787_v31, %v786_v1  ;;  %v8450_v48 = vld [vmem:[#allocation19_spill] sm:$0xff]  ;;  %v783_v35 = vsel %vm765_vm6, %v8456_v29, %v8455_v9  ;;  %v8459_v1 = vld [vmem:[#allocation26_spill] sm:$0xff]  ;;  %v8461_v46 = vld [vmem:[#allocation29_spill] sm:$0xff] }
 0x170   : > { %3105 = vmatpush3.bf16.msra.mxu1 %v355_v54  ;;  %v8432_v54 = vld [vmem:[#allocation10_spill] sm:$0xff]  ;;  %v784_v33 = vsel %vm765_vm6, %v8439_v6, %v8437_v61  ;;  %v785_v27 = vsel %vm765_vm6, %v8441_v41, %v8440_v28  ;;  %v5739_v60 = vsel %vm328_vm3, %v8450_v48, %v8449_v20  ;;  %v4250_v63 = vld [vmem:[%s8069_s2 + $0x88] ss:$20 sps:$4 sm:$0xff]   ;;  %v5775_v56 = vsel %vm328_vm3, %v8459_v1, %v8458_v8 }
 0x171   : > { %3137 = vmatpush3.bf16.msra.mxu0 %v8424_v3  ;;  %3266 = vmatprep.subr.bf16.mxu1 %v971_v47  ;;  %v5690_v50 = vsel %vm328_vm3, %v8432_v54, %v8431_v22  ;;  %8451 = vst [vmem:[#allocation39_spill] sm:$0xff] %v5739_v60  ;;  %v795_v49 = vpack.c.bf16 %v785_v27, %v784_v33  ;;  %v8452_v3 = vunpack.i.l.bf16 %v5389_v19  ;;  %8460 = vst [vmem:[#allocation14_spill] sm:$0xff] %v5775_v56  ;;  %v8462_v31 = vld [vmem:[#allocation25_spill] sm:$0xff]  ;;  %v8464_v22 = vld [vmem:[#allocation36_spill] sm:$0xff] }
 0x172   : > { %3138 = vmatprep.subr.bf16.mxu0 %v801_v5  ;;  %8433 = vst [vmem:[#allocation3_spill] sm:$0xff] %v5690_v50  ;;  %v628_v4 = vpack.c.bf16 %v5690_v50, %v5723_v51  ;;  %v965_v5 = vpack.c.bf16 %v955_v45, %v954_v23  ;;  %v8467_v23 = vld [vmem:[#allocation42_spill] sm:$0xff] }
 0x173   : > { %1409 = vmatmul.mubr.bf16.vlgmr.msra.gmra.mxu1 %v8434_v44  ;;  %v782_v42 = vsel %vm765_vm6, %v8454_v25, %v8452_v3  ;;  %v4288_v44 = vld [vmem:[%s8069_s2 + $0xc] ss:$20 sps:$4 sm:$0xff]  }
 0x174   : > { %3054 = vmatmul.mubr.msk.bf16.gmra.mxu0 %vm1144_vm8, %v5655_v12  ;;  %3267 = vmatpush3.bf16.msra.mxu1 %v971_v47  ;;  %v8447_v47 = vld [vmem:[#allocation17_spill] sm:$0xff]  ;;  %v792_v19 = vpack.c.bf16 %v783_v35, %v782_v42 }
 0x175   : > { %3139 = vmatpush3.bf16.msra.mxu0 %v631_v0  ;;  %3268 = vmatprep.subr.bf16.mxu1 %v968_v10  ;;  %v5732_v58 = vsel %vm328_vm3, %v8447_v47, %v8446_v14  ;;  %v5782_v0 = vsel %vm328_vm3, %v8462_v31, %v8461_v46  ;;  %v5820_v6 = vpop.permute.xlu1 %1041  ;;  %v5824_v28 = vpop.permute.xlu0 %1036 }
 0x176   : > { %3140 = vmatprep.subr.bf16.mxu0 %v798_v11  ;;  %1416 = vmatprep.mubr.bf16.mxu1 %v8445_v57  ;;  %8448 = vst [vmem:[#allocation40_spill] sm:$0xff] %v5732_v58  ;;  %v625_v18 = vpack.c.bf16 %v5739_v60, %v5732_v58  ;;  %8463 = vst [vmem:[#allocation10_spill] sm:$0xff] %v5782_v0  ;;  %v622_v54 = vpack.c.bf16 %v5775_v56, %v5782_v0  ;;  %v8466_v11 = vld [vmem:[#allocation38_spill] sm:$0xff] }
 0x177   : > { %1365 = vmatprep.mubr.bf16.mxu0 %v8384_v7 }
 0x178   : > { %3269 = vmatpush3.bf16.msra.mxu1 %v968_v10  ;;  %v8465_v10 = vld [vmem:[#allocation37_spill] sm:$0xff] }
 0x179   : > { %3141 = vmatpush3.bf16.msra.mxu0 %v628_v4  ;;  %3270 = vmatprep.subr.bf16.mxu1 %v965_v5  ;;  %v5826_v41 = vpop.permute.xlu1 %1026  ;;  %v5830_v57 = vpop.permute.xlu0 %1031 }
 0x17a   : > { %3142 = vmatprep.subr.bf16.mxu0 %v795_v49 }
 0x17b   : > { %1417 = vmatmul.mubr.bf16.gmra.mxu1 %v8457_v39 }
 0x17c   : > { %3055 = vmatmul.mubr.msk.bf16.gmra.mxu0 %vm1144_vm8, %v4250_v63  ;;  %3271 = vmatpush3.bf16.msra.mxu1 %v965_v5 }
 0x17d   : > { %3143 = vmatpush3.bf16.msra.mxu0 %v625_v18  ;;  %3272 = vmatprep.subr.bf16.mxu1 %v962_v13  ;;  %v5838_v49 = vpop.permute.xlu0 %1021 }
 0x17e   : > { %3144 = vmatprep.subr.bf16.mxu0 %v792_v19  ;;  %1424 = vmatprep.mubr.bf16.mxu1 %v8464_v22  ;;  %v5834_v47 = vpop.permute.xlu1 %1016 }
 0x17f   : > { %1473 = vmatprep.mubr.bf16.mxu0 %v4288_v44 }
 0x180   : > { %3273 = vmatpush3.bf16.msra.mxu1 %v962_v13 }
 0x181   : > { %3145 = vmatpush3.bf16.msra.mxu0 %v622_v54  ;;  %v5845_v42 = vpop.permute.xlu0 %1011 }
 0x182   : > { %v5840_v16 = vpop.permute.xlu1 %1006 }
 0x183   : > { %1425 = vmatmul.mubr.bf16.gmra.mxu1 %v8465_v10 }
 0x184   : > { %1474 = vmatmul.mubr.bf16.vlgmr.msra.gmra.mxu0 %v5418_v32  ;;  %1432 = vmatprep.mubr.bf16.mxu1 %v8466_v11  ;;  %v8468_v32 = vlaneseq }
 0x185   : > { %1481 = vmatprep.mubr.bf16.mxu0 %v5444_v53 }
 0x186   : > { %v5808_v53 = vshrl.u32 %v8468_v32, 7 }
 0x188   : > { %v1598_v39 = vsub.s32 0, %v5808_v53  ;;  %v1602_v11 = vsub.s32 1, %v5808_v53 }
 0x18b   : > { %1433 = vmatmul.mubr.bf16.gmra.mxu1 %v8467_v23 }
 0x18c   : > { %1482 = vmatmul.mubr.bf16.gmra.mxu0 %v5473_v37  ;;  %3274 = vmatprep.mubr.msk.bf16.mxu1 %vm1144_vm8, %v5537_v62  ;;  %v1606_v37 = vsub.s32 2, %v5808_v53 }
 0x18d   : > { %1489 = vmatprep.mubr.bf16.mxu0 %v5492_v17  ;;  %v277_v17 = vld [vmem:[%s8068_s1] sm:$0x7] }
 0x18e   : > { %v5814_v62 = vrot.slane %v277_v17, %v1606_v37  ;;  %v5857_v10 = vrot.slane %v277_v17, %v1598_v39 }
 0x193   : > { %3275 = vmatmul.mubr.msk.bf16.vlgmr.msra.gmra.mxu1 %vm1144_vm8, %v5576_v2 }
 0x194   : > { %1490 = vmatmul.mubr.bf16.gmra.mxu0 %v5529_v40  ;;  %3278 = vmatprep.mubr.msk.bf16.mxu1 %vm1144_vm8, %v5655_v12 }
 0x195   : > { %1497 = vmatprep.mubr.bf16.mxu0 %v5550_v43 }
 0x19b   : > { %3279 = vmatmul.mubr.msk.bf16.gmra.mxu1 %vm1144_vm8, %v4250_v63 }
 0x19c   : > { %1498 = vmatmul.mubr.bf16.gmra.mxu0 %v5570_v59 }
 0x1e8   : > { %v1191_v40 = vpop.f32.mrf.mxu0 }
 0x1e9   : > { %v1192_v15 = vadd.f32 %v1191_v40, %v5840_v16 }
 0x1ea   : > { %v1193_v2 = vpop.f32.mrf.mxu0 }
 0x1eb   : > { %v1194_v13 = vadd.f32 %v1193_v2, %v5840_v16 }
 0x1ec   : > { %v1195_v12 = vpop.f32.mrf.mxu0 }
 0x1ed   : > { %v1196_v8 = vadd.f32 %v1195_v12, %v5845_v42 }
 0x1ee   : > { %v1197_v21 = vpop.f32.mrf.mxu0 }
 0x1ef   : > { %v1198_v54 = vadd.f32 %v1197_v21, %v5845_v42 }
 0x1f0   : > { %v1201_v43 = vpop.f32.mrf.mxu0 }
 0x1f2   : > { %v1203_v45 = vpop.f32.mrf.mxu0 }
 0x1f4   : > { %v1205_v26 = vpop.f32.mrf.mxu0 }
 0x1f6   : > { %v1207_v61 = vpop.f32.mrf.mxu0 }
 0x1f8   : > { %v5816_v59 = vpop.f32.mrf.mxu0 }
 0x1fa   : > { %v5818_v24 = vpop.f32.mrf.mxu0 }
 0x1fc   : > { %v5822_v33 = vpop.f32.mrf.mxu0 }
 0x1fe   : > { %v5828_v27 = vpop.f32.mrf.mxu0 }
 0x200   : > { %v5832_v4 = vpop.f32.mrf.mxu0 }
 0x202   : > { %v5836_v20 = vpop.f32.mrf.mxu0 }
 0x204   : > { %v5842_v55 = vpop.f32.mrf.mxu0 }
 0x206   : > { %v5847_v9 = vpop.f32.mrf.mxu0 }
 0x213   : > { %v1264_v30 = vpop.f32.mrf.mxu1 }
 0x214   : > { %v1265_v29 = vadd.f32 %v1264_v30, %v1192_v15 }
 0x215   : > { %v1266_v52 = vpop.f32.mrf.mxu1 }
 0x216   : > { %v1267_v31 = vadd.f32 %v1266_v52, %v1194_v13  ;;  %v1206_v52 = vadd.f32 %v1205_v26, %v5838_v49  ;;  %v1208_v26 = vadd.f32 %v1207_v61, %v5838_v49  ;;  %v1212_v61 = vadd.f32 %v5816_v59, %v5826_v41 }
 0x217   : > { %v1268_v14 = vpop.f32.mrf.mxu1  ;;  %v1216_v59 = vadd.f32 %v5822_v33, %v5830_v57 }
 0x218   : > { %v1269_v22 = vadd.f32 %v1268_v14, %v1196_v8  ;;  %v5863_v14 = vrot.slane %v277_v17, %v1602_v11 }
 0x219   : > { %v1270_v5 = vpop.f32.mrf.mxu1 }
 0x21a   : > { %v1271_v32 = vadd.f32 %v1270_v5, %v1198_v54 }
 0x21b   : > { %v1274_v48 = vpop.f32.mrf.mxu1 }
 0x21d   : > { %v1276_v63 = vpop.f32.mrf.mxu1 }
 0x21f   : > { %v1278_v3 = vpop.f32.mrf.mxu1 }
 0x220   : > { %v1279_v17 = vadd.f32 %v1278_v3, %v1206_v52 }
 0x221   : > { %v1280_v25 = vpop.f32.mrf.mxu1 }
 0x223   : > { %v5849_v35 = vpop.f32.mrf.mxu1 }
 0x224   : > { %v1337_v18 = vpop.f32.mrf.mxu0 }
 0x225   : > { %v1338_v1 = vadd.f32 %v1337_v18, %v1265_v29  ;;  %v5854_v19 = vpop.f32.mrf.mxu1 }
 0x226   : > { %v1339_v46 = vpop.f32.mrf.mxu0 }
 0x227   : > { %v1288_v44 = vpop.f32.mrf.mxu1  ;;  %v1571_v37 = vmax.f32 %v1338_v1, 0.0  ;;  %v1340_v40 = vadd.f32 %v1339_v46, %v1267_v31  ;;  %v1202_v1 = vadd.f32 %v1201_v43, %v5834_v47  ;;  %v1204_v46 = vadd.f32 %v1203_v45, %v5834_v47 }
 0x228   : > { %v1341_v23 = vpop.f32.mrf.mxu0 }
 0x229   : > { %v1342_v2 = vadd.f32 %v1341_v23, %v1269_v22  ;;  %v1290_v30 = vpop.f32.mrf.mxu1  ;;  %v5866_v39 = vmul.f32 %v5857_v10, %v1571_v37  ;;  %v1572_v53 = vmax.f32 %v1340_v40, 0.0  ;;  %v1275_v23 = vadd.f32 %v1274_v48, %v1202_v1 }
 0x22a   : > { %v1343_v12 = vpop.f32.mrf.mxu0  ;;  %v1281_v40 = vadd.f32 %v1280_v25, %v1208_v26  ;;  %v1218_v26 = vadd.f32 %v5828_v27, %v5830_v57 }
 0x22b   : > { %v1574_v15 = vmax.f32 %v1342_v2, 0.0  ;;  %v1344_v29 = vadd.f32 %v1343_v12, %v1271_v32  ;;  %v5860_v18 = vpop.f32.mrf.mxu1  ;;  %8469 = vst [vmem:[#allocation33_spill] sm:$0xff] %v5866_v39  ;;  %v1277_v32 = vadd.f32 %v1276_v63, %v1204_v46  ;;  %v5886_v43 = vmul.f32 %v5863_v14, %v1572_v53 }
 0x22c   : > { %v1347_v21 = vpop.f32.mrf.mxu0  ;;  %v1214_v53 = vadd.f32 %v5818_v24, %v5826_v41  ;;  %v1285_v24 = vadd.f32 %v5849_v35, %v1212_v61  ;;  %v1224_v35 = vadd.f32 %v5836_v20, %v5824_v28 }
 0x22d   : > { %v5869_v5 = vmul.f32 %v5857_v10, %v1574_v15  ;;  %v1575_v13 = vmax.f32 %v1344_v29, 0.0  ;;  %v5871_v8 = vpop.f32.mrf.mxu1  ;;  %8472 = vst [vmem:[#allocation13_spill] sm:$0xff] %v5886_v43  ;;  %v1348_v3 = vadd.f32 %v1347_v21, %v1275_v23 }
 0x22e   : > { %v1349_v31 = vpop.f32.mrf.mxu0  ;;  %v1287_v23 = vadd.f32 %v5854_v19, %v1214_v53 }
 0x22f   : > { %8470 = vst [vmem:[#allocation43_spill] sm:$0xff] %v5869_v5  ;;  %v5877_v22 = vmul.f32 %v5863_v14, %v1575_v13  ;;  %v5879_v54 = vpop.f32.mrf.mxu1  ;;  %v5883_v11 = vpack.i.bf16 %v5869_v5, %v5866_v39  ;;  %v1350_v12 = vadd.f32 %v1349_v31, %v1277_v32  ;;  %v1577_v1 = vmax.f32 %v1348_v3, 0.0 }
 0x230   : > { %v1351_v37 = vpop.f32.mrf.mxu0  ;;  %v1291_v3 = vadd.f32 %v1290_v30, %v1218_v26  ;;  %v1226_v30 = vadd.f32 %v5842_v55, %v5820_v6 }
 0x231   : > { %8471 = vst [vmem:[#allocation41_spill] sm:$0xff] %v5877_v22  ;;  %v1352_v45 = vadd.f32 %v1351_v37, %v1279_v17  ;;  %v5888_v2 = vpop.f32.mrf.mxu1  ;;  %3754 = vrot.lane.b32.xlu1 %v5883_v11, %s4299_s27  ;;  %3744 = vrot.lane.b32.xlu0 %v5883_v11, %s4308_s24  ;;  %v5900_v29 = vpack.i.bf16 %v5877_v22, %v5886_v43  ;;  %v1578_v46 = vmax.f32 %v1350_v12, 0.0 }
 0x232   : > { %v1353_v48 = vpop.f32.mrf.mxu0  ;;  %v1289_v17 = vadd.f32 %v1288_v44, %v1216_v59  ;;  %v5933_v19 = vmul.f32 %v5857_v10, %v1577_v1 }
 0x233   : > { %v1580_v63 = vmax.f32 %v1352_v45, 0.0  ;;  %v1354_v25 = vadd.f32 %v1353_v48, %v1281_v40  ;;  %v5896_v15 = vpop.f32.mrf.mxu1  ;;  %v1222_v45 = vadd.f32 %v5832_v4, %v5824_v28  ;;  %v5936_v44 = vmul.f32 %v5863_v14, %v1578_v46 }
 0x234   : > { %v1357_v52 = vpop.f32.mrf.mxu0  ;;  %8475 = vst [vmem:[#allocation21_spill] sm:$0xff] %v5933_v19 }
 0x235   : > { %v1581_v21 = vmax.f32 %v1354_v25, 0.0  ;;  %v5906_v13 = vpop.f32.mrf.mxu1  ;;  %3764 = vrot.lane.b32.xlu1 %v5900_v29, %s4308_s24  ;;  %3749 = vrot.lane.b32.xlu0 %v5883_v11, %s4309_s25  ;;  %v5919_v32 = vmul.f32 %v5857_v10, %v1580_v63  ;;  %v1358_v12 = vadd.f32 %v1357_v52, %v1285_v24  ;;  %8476 = vst [vmem:[#allocation17_spill] sm:$0xff] %v5936_v44 }
 0x236   : > { %v1359_v31 = vpop.f32.mrf.mxu0  ;;  %v1228_v24 = vadd.f32 %v5847_v9, %v5820_v6  ;;  %v3108_v58 = vadd.f32 %v5906_v13, %v5896_v15 }
 0x237   : > { %v5915_v33 = vpop.f32.mrf.mxu1  ;;  %8473 = vst [vmem:[#allocation9_spill] sm:$0xff] %v5919_v32  ;;  %v5922_v37 = vmul.f32 %v5863_v14, %v1581_v21  ;;  %v1360_v61 = vadd.f32 %v1359_v31, %v1287_v23  ;;  %v5950_v59 = vpack.i.bf16 %v5919_v32, %v5933_v19  ;;  %v1295_v21 = vadd.f32 %v5860_v18, %v1222_v45 }
 0x238   : > { %v1361_v40 = vpop.f32.mrf.mxu0  ;;  %v1583_v1 = vmax.f32 %v1358_v12, 0.0  ;;  %v1299_v23 = vadd.f32 %v5879_v54, %v1226_v30  ;;  %v1411_v7 = vadd.f32 %v3108_v58, %v5840_v16 }
 0x239   : > { %8474 = vst [vmem:[#allocation34_spill] sm:$0xff] %v5922_v37  ;;  %v1362_v27 = vadd.f32 %v1361_v40, %v1289_v17  ;;  %v5926_v48 = vpop.f32.mrf.mxu1  ;;  %3769 = vrot.lane.b32.xlu1 %v5900_v29, %s4309_s25  ;;  %3759 = vrot.lane.b32.xlu0 %v5883_v11, %s4310_s28  ;;  %v5946_v53 = vpack.i.bf16 %v5922_v37, %v5936_v44  ;;  %v1584_v55 = vmax.f32 %v1360_v61, 0.0 }
 0x23a   : > { %v1363_v4 = vpop.f32.mrf.mxu0  ;;  %v1297_v17 = vadd.f32 %v5871_v8, %v1224_v35  ;;  %v5971_v9 = vmul.f32 %v5857_v10, %v1583_v1 }
 0x23b   : > { %v1364_v63 = vadd.f32 %v1363_v4, %v1291_v3  ;;  %v5942_v25 = vpop.f32.mrf.mxu1  ;;  %v1586_v52 = vmax.f32 %v1362_v27, 0.0  ;;  %v1301_v27 = vadd.f32 %v5888_v2, %v1228_v24  ;;  %v5974_v8 = vmul.f32 %v5863_v14, %v1584_v55 }
 0x23c   : > { %v1367_v20 = vpop.f32.mrf.mxu0  ;;  %8479 = vst [vmem:[#allocation44_spill] sm:$0xff] %v5971_v9 }
 0x23d   : > { %v1587_v46 = vmax.f32 %v1364_v63, 0.0  ;;  %v3113_v31 = vpop.f32.mrf.mxu1  ;;  %3779 = vrot.lane.b32.xlu1 %v5900_v29, %s4310_s28  ;;  %3774 = vrot.lane.b32.xlu0 %v5900_v29, %s4299_s27  ;;  %v5962_v18 = vmul.f32 %v5857_v10, %v1586_v52  ;;  %v1368_v3 = vadd.f32 %v1367_v20, %v1295_v21  ;;  %8480 = vst [vmem:[#allocation35_spill] sm:$0xff] %v5974_v8 }
 0x23e   : > { %v1369_v26 = vpop.f32.mrf.mxu0  ;;  %v3114_v34 = vadd.f32 %v3113_v31, %v5942_v25 }
 0x23f   : > { %v3115_v40 = vpop.f32.mrf.mxu1  ;;  %8477 = vst [vmem:[#allocation23_spill] sm:$0xff] %v5962_v18  ;;  %v5965_v45 = vmul.f32 %v5863_v14, %v1587_v46  ;;  %v1370_v61 = vadd.f32 %v1369_v26, %v1297_v17  ;;  %v1589_v2 = vmax.f32 %v1368_v3, 0.0  ;;  %v5980_v21 = vpack.i.bf16 %v5962_v18, %v5971_v9 }
 0x240   : > { %v1371_v12 = vpop.f32.mrf.mxu0 }
 0x241   : > { %8478 = vst [vmem:[#allocation19_spill] sm:$0xff] %v5965_v45  ;;  %v1372_v4 = vadd.f32 %v1371_v12, %v1299_v23  ;;  %v3116_v63 = vpop.f32.mrf.mxu1  ;;  %3784 = vrot.lane.b32.xlu1 %v5950_v59, %s4308_s24  ;;  %3789 = vrot.lane.b32.xlu0 %v5950_v59, %s4309_s25  ;;  %v5984_v1 = vpack.i.bf16 %v5965_v45, %v5974_v8  ;;  %v1590_v46 = vmax.f32 %v1370_v61, 0.0 }
 0x242   : > { %v1373_v54 = vpop.f32.mrf.mxu0  ;;  %v3117_v60 = vadd.f32 %v3116_v63, %v3115_v40  ;;  %v1419_v40 = vadd.f32 %v3114_v34, %v5834_v47 }
 0x243   : > { %v1592_v35 = vmax.f32 %v1372_v4, 0.0  ;;  %v1374_v30 = vadd.f32 %v1373_v54, %v1301_v27  ;;  %v3118_v52 = vpop.f32.mrf.mxu1  ;;  %v5997_v27 = vmul.f32 %v5857_v10, %v1589_v2  ;;  %v6000_v61 = vmul.f32 %v5863_v14, %v1590_v46 }
 0x244   : > { %v3146_v20 = vpop.f32.mrf.mxu0  ;;  %v3111_v46 = vadd.f32 %v5926_v48, %v5915_v33  ;;  %v1422_v25 = vadd.f32 %v3117_v60, %v5838_v49 }
 0x245   : > { %v1593_v55 = vmax.f32 %v1374_v30, 0.0  ;;  %v3119_v26 = vpop.f32.mrf.mxu1  ;;  %3794 = vrot.lane.b32.xlu1 %v5950_v59, %s4299_s27  ;;  %3804 = vrot.lane.b32.xlu0 %v5950_v59, %s4311_s7  ;;  %v5991_v17 = vmul.f32 %v5857_v10, %v1592_v35  ;;  %8482 = vst [vmem:[#allocation26_spill] sm:$0xff] %v5997_v27  ;;  %8483 = vst [vmem:[#allocation29_spill] sm:$0xff] %v6000_v61 }
 0x246   : > { %v3147_v24 = vpop.f32.mrf.mxu0  ;;  %v1414_v34 = vadd.f32 %v3111_v46, %v5845_v42  ;;  %v3120_v47 = vadd.f32 %v3119_v26, %v3118_v52 }
 0x247   : > { %8481 = vst [vmem:[#allocation30_spill] sm:$0xff] %v5991_v17  ;;  %v5994_v23 = vmul.f32 %v5863_v14, %v1593_v55  ;;  %v3121_v3 = vpop.f32.mrf.mxu1  ;;  %v6012_v10 = vpack.i.bf16 %v5991_v17, %v5997_v27 }
 0x248   : > { %v3149_v12 = vpop.f32.mrf.mxu0 }
 0x249   : > { %v3122_v4 = vpop.f32.mrf.mxu1  ;;  %3799 = vrot.lane.b32.xlu1 %v5950_v59, %s4310_s28  ;;  %3809 = vrot.lane.b32.xlu0 %v5946_v53, %s4308_s24  ;;  %v6008_v30 = vpack.i.bf16 %v5994_v23, %v6000_v61 }
 0x24a   : > { %v3150_v54 = vpop.f32.mrf.mxu0  ;;  %v3123_v42 = vadd.f32 %v3122_v4, %v3121_v3 }
 0x24b   : > { %v3124_v35 = vpop.f32.mrf.mxu1  ;;  %v3151_v56 = vadd.f32 %v3150_v54, %v3149_v12 }
 0x24c   : > { %v3152_v2 = vpop.f32.mrf.mxu0 }
 0x24d   : > { %v3125_v14 = vpop.f32.mrf.mxu1  ;;  %3814 = vrot.lane.b32.xlu1 %v5946_v53, %s4309_s25  ;;  %3819 = vrot.lane.b32.xlu0 %v5946_v53, %s4299_s27  ;;  %v1479_v54 = vadd.f32 %v3151_v56, %v1414_v34 }
 0x24e   : > { %v3153_v51 = vpop.f32.mrf.mxu0  ;;  %v3126_v46 = vadd.f32 %v3125_v14, %v3124_v35 }
 0x24f   : > { %v3127_v55 = vpop.f32.mrf.mxu1  ;;  %v3154_v31 = vadd.f32 %v3153_v51, %v3152_v2  ;;  %v3148_v51 = vadd.f32 %v3147_v24, %v3146_v20 }
 0x250   : > { %v3155_v0 = vpop.f32.mrf.mxu0  ;;  %v1435_v14 = vadd.f32 %v3126_v46, %v5824_v28 }
 0x251   : > { %v3128_v36 = vpop.f32.mrf.mxu1  ;;  %3839 = vrot.lane.b32.xlu1 %v5980_v21, %s4299_s27  ;;  %3824 = vrot.lane.b32.xlu0 %v5946_v53, %s4310_s28  ;;  %v1484_v15 = vadd.f32 %v3154_v31, %v1419_v40  ;;  %v1476_v49 = vadd.f32 %v3148_v51, %v1411_v7 }
 0x252   : > { %v3156_v63 = vpop.f32.mrf.mxu0  ;;  %v3129_v3 = vadd.f32 %v3128_v36, %v3127_v55 }
 0x253   : > { %v3157_v2 = vadd.f32 %v3156_v63, %v3155_v0  ;;  %v3276_v50 = vpop.f32.mrf.mxu1 }
 0x254   : > { %v3158_v13 = vpop.f32.mrf.mxu0  ;;  %v1549_v48 = vadd.f32 %v3276_v50, %v1484_v15  ;;  %v1438_v28 = vadd.f32 %v3129_v3, %v5820_v6 }
 0x255   : > { %v1540_v39 = vpop.f32.mrf.mxu1  ;;  %3854 = vrot.lane.b32.xlu1 %v5984_v1, %s4308_s24  ;;  %v1487_v33 = vadd.f32 %v3157_v2, %v1422_v25  ;;  %3829 = vrot.lane.b32.xlu0 %v5980_v21, %s4308_s24  ;;  %v1427_v25 = vadd.f32 %v3120_v47, %v5826_v41  ;;  %v1430_v41 = vadd.f32 %v3123_v42, %v5830_v57 }
 0x256   : > { %v3159_v60 = vpop.f32.mrf.mxu0  ;;  %v1541_v58 = vadd.f32 %v1540_v39, %v1476_v49  ;;  %v1579_v31 = vmax.f32 %v1549_v48, 0.0 }
 0x257   : > { %v3277_v0 = vpop.f32.mrf.mxu1  ;;  %v3160_v20 = vadd.f32 %v3159_v60, %v3158_v13 }
 0x258   : > { %v1552_v24 = vadd.f32 %v3277_v0, %v1487_v33  ;;  %v3161_v12 = vpop.f32.mrf.mxu0  ;;  %v1573_v51 = vmax.f32 %v1541_v58, 0.0  ;;  %v6069_v47 = vmul.f32 %v5814_v62, %v1579_v31 }
 0x259   : > { %v1543_v16 = vpop.f32.mrf.mxu1  ;;  %3859 = vrot.lane.b32.xlu1 %v5984_v1, %s4309_s25  ;;  %3834 = vrot.lane.b32.xlu0 %v5980_v21, %s4309_s25  ;;  %v1492_v39 = vadd.f32 %v3160_v20, %v1427_v25 }
 0x25a   : > { %v1582_v52 = vmax.f32 %v1552_v24, 0.0  ;;  %v1544_v26 = vadd.f32 %v1543_v16, %v1479_v54  ;;  %v3162_v7 = vpop.f32.mrf.mxu0  ;;  %8486 = vst [vmem:[#allocation37_spill] sm:$0xff] %v6069_v47  ;;  %v6072_v55 = vmul.f32 %v5814_v62, %v1573_v51 }
 0x25b   : > { %v3280_v50 = vpop.f32.mrf.mxu1  ;;  %v3163_v63 = vadd.f32 %v3162_v7, %v3161_v12 }
 0x25c   : > { %v1576_v40 = vmax.f32 %v1544_v26, 0.0  ;;  %v3164_v56 = vpop.f32.mrf.mxu0  ;;  %v6060_v4 = vmul.f32 %v5814_v62, %v1582_v52  ;;  %8487 = vst [vmem:[#allocation38_spill] sm:$0xff] %v6072_v55 }
 0x25d   : > { %v1556_v2 = vpop.f32.mrf.mxu1  ;;  %3869 = vrot.lane.b32.xlu1 %v5984_v1, %s4310_s28  ;;  %3844 = vrot.lane.b32.xlu0 %v5980_v21, %s4310_s28  ;;  %v1495_v36 = vadd.f32 %v3163_v63, %v1430_v41 }
 0x25e   : > { %8484 = vst [vmem:[#allocation25_spill] sm:$0xff] %v6060_v4  ;;  %v1557_v15 = vadd.f32 %v1556_v2, %v1492_v39  ;;  %v3165_v35 = vpop.f32.mrf.mxu0  ;;  %v6066_v13 = vmul.f32 %v5814_v62, %v1576_v40  ;;  %v6081_v24 = vpack.i.bf16 %v6060_v4, %v6069_v47 }
 0x25f   : > { %v3166_v33 = vadd.f32 %v3165_v35, %v3164_v56  ;;  %v3281_v34 = vpop.f32.mrf.mxu1 }
 0x260   : > { %8485 = vst [vmem:[#allocation36_spill] sm:$0xff] %v6066_v13  ;;  %v3167_v57 = vpop.f32.mrf.mxu0  ;;  %v1585_v0 = vmax.f32 %v1557_v15, 0.0  ;;  %v6085_v58 = vpack.i.bf16 %v6066_v13, %v6072_v55  ;;  %v4253_v13 = vld [vmem:[%s8071_s4 + $0x4] ss:$20 sps:$4 sm:$0xff]  }
 0x261   : > { %v1500_v60 = vadd.f32 %v3166_v33, %v1435_v14  ;;  %v1559_v49 = vpop.f32.mrf.mxu1  ;;  %3874 = vrot.lane.b32.xlu1 %v5984_v1, %s4311_s7  ;;  %3849 = vrot.lane.b32.xlu0 %v5980_v21, %s4311_s7 }
 0x262   : > { %v1560_v48 = vadd.f32 %v1559_v49, %v1495_v36  ;;  %v3168_v20 = vpop.f32.mrf.mxu0  ;;  %v6099_v7 = vmul.f32 %v5814_v62, %v1585_v0  ;;  %2540 = vmatprep.mubr.bf16.mxu0 %v4253_v13 }
 0x263   : > { %v1565_v12 = vadd.f32 %v3280_v50, %v1500_v60  ;;  %v3169_v54 = vadd.f32 %v3168_v20, %v3167_v57 }
 0x264   : > { %v1588_v16 = vmax.f32 %v1560_v48, 0.0  ;;  %8489 = vst [vmem:[#allocation46_spill] sm:$0xff] %v6099_v7 }
 0x265   : > { %v1503_v42 = vadd.f32 %v3169_v54, %v1438_v28  ;;  %3879 = vrot.lane.b32.xlu1 %v6012_v10, %s4308_s24  ;;  %3864 = vrot.lane.b32.xlu0 %v5984_v1, %s4299_s27  ;;  %v1591_v46 = vmax.f32 %v1565_v12, 0.0 }
 0x266   : > { %v6094_v52 = vmul.f32 %v5814_v62, %v1588_v16 }
 0x267   : > { %v1568_v26 = vadd.f32 %v3281_v34, %v1503_v42  ;;  %v6115_v56 = vmul.f32 %v5814_v62, %v1591_v46 }
 0x268   : > { %8488 = vst [vmem:[#allocation42_spill] sm:$0xff] %v6094_v52  ;;  %v6107_v31 = vpack.i.bf16 %v6094_v52, %v6099_v7 }
 0x269   : > { %v1594_v50 = vmax.f32 %v1568_v26, 0.0  ;;  %3884 = vrot.lane.b32.xlu1 %v6012_v10, %s4309_s25  ;;  %3894 = vrot.lane.b32.xlu0 %v6012_v10, %s4310_s28  ;;  %8491 = vst [vmem:[#allocation48_spill] sm:$0xff] %v6115_v56 }
 0x26b   : > { %v6112_v63 = vmul.f32 %v5814_v62, %v1594_v50 }
 0x26d   : > { %8490 = vst [vmem:[#allocation47_spill] sm:$0xff] %v6112_v63  ;;  %3889 = vrot.lane.b32.xlu1 %v6012_v10, %s4299_s27  ;;  %3909 = vrot.lane.b32.xlu0 %v6008_v30, %s4308_s24  ;;  %v6123_v39 = vpack.i.bf16 %v6112_v63, %v6115_v56 }
 0x271   : > { %3899 = vrot.lane.b32.xlu1 %v6012_v10, %s4311_s7  ;;  %3914 = vrot.lane.b32.xlu0 %v6008_v30, %s4309_s25 }
 0x275   : > { %3904 = vrot.lane.b32.xlu1 %v6012_v10, %s4301_s29  ;;  %3919 = vrot.lane.b32.xlu0 %v6008_v30, %s4299_s27 }
 0x279   : > { %3924 = vrot.lane.b32.xlu1 %v6008_v30, %s4310_s28  ;;  %3929 = vrot.lane.b32.xlu0 %v6008_v30, %s4311_s7 }
 0x27d   : > { %3949 = vrot.lane.b32.xlu1 %v6085_v58, %s4299_s27  ;;  %3934 = vrot.lane.b32.xlu0 %v6008_v30, %s4301_s29 }
 0x281   : > { %3959 = vrot.lane.b32.xlu1 %v6081_v24, %s4308_s24  ;;  %3939 = vrot.lane.b32.xlu0 %v6085_v58, %s4308_s24 }
 0x285   : > { %3969 = vrot.lane.b32.xlu1 %v6081_v24, %s4299_s27  ;;  %3944 = vrot.lane.b32.xlu0 %v6085_v58, %s4309_s25 }
 0x289   : > { %3974 = vrot.lane.b32.xlu1 %v6081_v24, %s4310_s28  ;;  %3954 = vrot.lane.b32.xlu0 %v6085_v58, %s4310_s28 }
 0x28d   : > { %3989 = vrot.lane.b32.xlu1 %v6107_v31, %s4299_s27  ;;  %3964 = vrot.lane.b32.xlu0 %v6081_v24, %s4309_s25 }
 0x291   : > { %4004 = vrot.lane.b32.xlu1 %v6123_v39, %s4308_s24  ;;  %3979 = vrot.lane.b32.xlu0 %v6107_v31, %s4308_s24 }
 0x295   : > { %4009 = vrot.lane.b32.xlu1 %v5946_v53, %s4311_s7  ;;  %3984 = vrot.lane.b32.xlu0 %v6107_v31, %s4309_s25 }
 0x299   : > { %4019 = vrot.lane.b32.xlu1 %v6107_v31, %s4301_s29  ;;  %3994 = vrot.lane.b32.xlu0 %v6107_v31, %s4310_s28 }
 0x29d   : > { %4029 = vrot.lane.b32.xlu1 %v5980_v21, %s4301_s29  ;;  %3999 = vrot.lane.b32.xlu0 %v6107_v31, %s4311_s7 }
 0x2a1   : > { %4039 = vrot.lane.b32.xlu1 %v6123_v39, %s4309_s25  ;;  %4014 = vrot.lane.b32.xlu0 %v5984_v1, %s4301_s29 }
 0x2a3   : > { %v6179_v62 = vpop.permute.xlu1 %3754  ;;  %v6181_v2 = vpop.permute.xlu0 %3744 }
 0x2a5   : > { %4044 = vrot.lane.b32.xlu1 %v6123_v39, %s4299_s27  ;;  %4024 = vrot.lane.b32.xlu0 %v6081_v24, %s4311_s7  ;;  %s4312_s27 = smov 111  }
 0x2a7   : > { %v6187_v41 = vpop.permute.xlu1 %3764  ;;  %v6189_v3 = vpop.permute.xlu0 %3749 }
 0x2a9   : > { %4049 = vrot.lane.b32.xlu1 %v5900_v29, %s4311_s7  ;;  %4034 = vrot.lane.b32.xlu0 %v5883_v11, %s4311_s7 }
 0x2ab   : > { %v6195_v15 = vpop.permute.xlu1 %3769  ;;  %v6197_v35 = vpop.permute.xlu0 %3759 }
 0x2ad   : > { %4059 = vrot.lane.b32.xlu1 %v6081_v24, %s4301_s29  ;;  %4054 = vrot.lane.b32.xlu0 %v5946_v53, %s4301_s29 }
 0x2af   : > { %v6203_v14 = vpop.permute.xlu1 %3779  ;;  %v6205_v33 = vpop.permute.xlu0 %3774 }
 0x2b1   : > { %4074 = vrot.lane.b32.xlu1 %v5950_v59, %s4301_s29  ;;  %4064 = vrot.lane.b32.xlu0 %v6123_v39, %s4310_s28 }
 0x2b3   : > { %v6211_v34 = vpop.permute.xlu1 %3784  ;;  %v6213_v57 = vpop.permute.xlu0 %3789 }
 0x2b4   : > { %v8163_v0 = vunpack.i.h.bf16 %v6211_v34  ;;  %v8164_v48 = vunpack.i.l.bf16 %v6211_v34 }
 0x2b5   : > { %4084 = vrot.lane.b32.xlu1 %v6085_v58, %s4301_s29  ;;  %4069 = vrot.lane.b32.xlu0 %v6085_v58, %s4311_s7 }
 0x2b7   : > { %v6219_v36 = vpop.permute.xlu1 %3794  ;;  %v6221_v60 = vpop.permute.xlu0 %3804 }
 0x2b8   : > { %8492 = vst [vmem:[#allocation49_spill] sm:$0xff] %v6221_v60  ;;  %v8168_v50 = vunpack.i.h.bf16 %v6219_v36  ;;  %v8171_v25 = vunpack.i.l.bf16 %v6219_v36 }
 0x2b9   : > { %4094 = vrot.lane.b32.xlu1 %v6008_v30, %s4312_s27  ;;  %4079 = vrot.lane.b32.xlu0 %v5900_v29, %s4301_s29 }
 0x2bb   : > { %v6227_v49 = vpop.permute.xlu1 %3799  ;;  %v6229_v28 = vpop.permute.xlu0 %3809 }
 0x2bc   : > { %8493 = vst [vmem:[#allocation50_spill] sm:$0xff] %v6227_v49  ;;  %v8165_v20 = vunpack.i.h.bf16 %v6229_v28  ;;  %v8166_v12 = vunpack.i.l.bf16 %v6229_v28 }
 0x2bd   : > { %4099 = vrot.lane.b32.xlu1 %v6012_v10, %s4312_s27  ;;  %4089 = vrot.lane.b32.xlu0 %v5883_v11, %s4301_s29 }
 0x2be   : > { %v6248_v16 = vsel %vm1768_vm9, %v8164_v48, %v8166_v12  ;;  %v6256_v42 = vsel %vm1768_vm9, %v8163_v0, %v8165_v20  ;;  %v8177_v12 = vunpack.i.h.bf16 %v6227_v49 }
 0x2bf   : > { %v6240_v54 = vpop.permute.xlu1 %3814  ;;  %v6258_v26 = vpop.permute.xlu0 %3819 }
 0x2c0   : > { %v8167_v6 = vunpack.i.h.bf16 %v6258_v26  ;;  %v8170_v40 = vunpack.i.l.bf16 %v6258_v26 }
 0x2c1   : > { %4109 = vrot.lane.b32.xlu1 %v6123_v39, %s4311_s7  ;;  %4104 = vrot.lane.b32.xlu0 %v5984_v1, %s4312_s27 }
 0x2c2   : > { %v6276_v51 = vsel %vm413_vm0, %v8168_v50, %v8167_v6  ;;  %v6284_v46 = vsel %vm413_vm0, %v8171_v25, %v8170_v40  ;;  %v8178_v6 = vunpack.i.l.bf16 %v6227_v49 }
 0x2c3   : > { %v6286_v0 = vpop.permute.xlu1 %3839  ;;  %v6290_v20 = vpop.permute.xlu0 %3824 }
 0x2c4   : > { %8494 = vst [vmem:[#allocation51_spill] sm:$0xff] %v6290_v20  ;;  %v8176_v50 = vunpack.i.h.bf16 %v6290_v20  ;;  %v8175_v55 = vunpack.i.l.bf16 %v6290_v20  ;;  %v8211_v37 = vunpack.i.h.bf16 %v6286_v0  ;;  %v8212_v9 = vunpack.i.l.bf16 %v6286_v0 }
 0x2c5   : > { %4114 = vrot.lane.b32.xlu1 %v6123_v39, %s4301_s29  ;;  %4124 = vrot.lane.b32.xlu0 %v5980_v21, %s4312_s27  ;;  %v8536_v60 = vunpack.i.h.bf16 %v6286_v0 }
 0x2c6   : > { %v6309_v48 = vsel %vm1938_vm10, %v8178_v6, %v8175_v55  ;;  %v6317_v25 = vsel %vm1938_vm10, %v8177_v12, %v8176_v50 }
 0x2c7   : > { %v6301_v40 = vpop.permute.xlu1 %3854  ;;  %8495 = vst [vmem:[#allocation52_spill] sm:$0xff] %v6309_v48  ;;  %8496 = vst [vmem:[#allocation53_spill] sm:$0xff] %v6317_v25  ;;  %v6322_v47 = vpop.permute.xlu0 %3829 }
 0x2c8   : > { %v3857_v48 = vunpack.i.h.bf16 %v6301_v40  ;;  %v3856_v25 = vunpack.i.l.bf16 %v6301_v40 }
 0x2c9   : > { %4119 = vrot.lane.b32.xlu1 %v6107_v31, %s4312_s27  ;;  %4134 = vrot.lane.b32.xlu0 %v6081_v24, %s4312_s27 }
 0x2cb   : > { %v6330_v55 = vpop.permute.xlu1 %3859  ;;  %v6334_v6 = vpop.permute.xlu0 %3834 }
 0x2cc   : > { %v8190_v50 = vunpack.i.h.bf16 %v6330_v55  ;;  %v8188_v12 = vunpack.i.l.bf16 %v6330_v55  ;;  %v8189_v7 = vunpack.i.h.bf16 %v6334_v6  ;;  %v8187_v52 = vunpack.i.l.bf16 %v6334_v6 }
 0x2cd   : > { %4129 = vrot.lane.b32.xlu1 %v5946_v53, %s4312_s27  ;;  %4144 = vrot.lane.b32.xlu0 %v5900_v29, %s4312_s27 }
 0x2ce   : > { %v6351_v4 = vsel %vm1683_vm11, %v8187_v52, %v8188_v12  ;;  %v6359_v56 = vsel %vm1683_vm11, %v8189_v7, %v8190_v50 }
 0x2cf   : > { %v6343_v13 = vpop.permute.xlu1 %3869  ;;  %v6363_v5 = vpop.permute.xlu0 %3844 }
 0x2d0   : > { %8497 = vst [vmem:[#allocation54_spill] sm:$0xff] %v6343_v13  ;;  %v8198_v63 = vunpack.i.h.bf16 %v6343_v13  ;;  %v8194_v20 = vunpack.i.l.bf16 %v6343_v13  ;;  %v8199_v52 = vunpack.i.h.bf16 %v6363_v5  ;;  %v8195_v12 = vunpack.i.l.bf16 %v6363_v5 }
 0x2d1   : > { %4139 = vrot.lane.b32.xlu1 %v5950_v59, %s4312_s27  ;;  %4154 = vrot.lane.b32.xlu0 %v6123_v39, %s4312_s27 }
 0x2d2   : > { %v6381_v50 = vsel %vm1938_vm10, %v8195_v12, %v8194_v20  ;;  %v6389_v43 = vsel %vm1938_vm10, %v8199_v52, %v8198_v63 }
 0x2d3   : > { %v6373_v7 = vpop.permute.xlu1 %3874  ;;  %v6393_v32 = vpop.permute.xlu0 %3849 }
 0x2d4   : > { %8498 = vst [vmem:[#allocation55_spill] sm:$0xff] %v6373_v7  ;;  %v8205_v22 = vunpack.i.h.bf16 %v6373_v7  ;;  %v8203_v19 = vunpack.i.l.bf16 %v6373_v7  ;;  %8499 = vst [vmem:[#allocation56_spill] sm:$0xff] %v6393_v32  ;;  %v8206_v12 = vunpack.i.h.bf16 %v6393_v32  ;;  %v8204_v13 = vunpack.i.l.bf16 %v6393_v32 }
 0x2d5   : > { %4149 = vrot.lane.b32.xlu1 %v6085_v58, %s4312_s27  ;;  %4159 = vrot.lane.b32.xlu0 %v6008_v30, %s4302_s30  ;;  %v8509_v32 = vunpack.i.h.bf16 %v6179_v62 }
 0x2d6   : > { %v6412_v52 = vsel %vm1853_vm12, %v8204_v13, %v8203_v19  ;;  %v6420_v20 = vsel %vm1853_vm12, %v8206_v12, %v8205_v22 }
 0x2d7   : > { %v6404_v63 = vpop.permute.xlu1 %3879  ;;  %8500 = vst [vmem:[#allocation57_spill] sm:$0xff] %v6412_v52  ;;  %8501 = vst [vmem:[#allocation58_spill] sm:$0xff] %v6420_v20  ;;  %v6422_v44 = vpop.permute.xlu0 %3864 }
 0x2d8   : > { %v8209_v19 = vunpack.i.h.bf16 %v6422_v44  ;;  %v8210_v13 = vunpack.i.l.bf16 %v6422_v44  ;;  %v8216_v12 = vunpack.i.l.bf16 %v6404_v63 }
 0x2d9   : > { %4169 = vrot.lane.b32.xlu1 %v6012_v10, %s4302_s30  ;;  %4164 = vrot.lane.b32.xlu0 %v5883_v11, %s4312_s27  ;;  %s7973_s27 = scalar_lea.vmem %s8073_s6, %s3298_s23 }
 0x2da   : > { %v6440_v22 = vsel %vm413_vm0, %v8211_v37, %v8209_v19  ;;  %v6448_v30 = vsel %vm413_vm0, %v8212_v9, %v8210_v13  ;;  %v4262_v13 = vld [vmem:[%s8071_s4 + $0xc] ss:$20 sps:$4 sm:$0xff]   ;;  %v8217_v9 = vunpack.i.h.bf16 %v6404_v63 }
 0x2db   : > { %v6450_v10 = vpop.permute.xlu1 %3884  ;;  %v6454_v7 = vpop.permute.xlu0 %3894  ;;  %2613 = vmatprep.mubr.bf16.mxu1 %v4262_v13 }
 0x2dd   : > { %4179 = vrot.lane.b32.xlu1 %v6107_v31, %s4302_s30  ;;  %4174 = vrot.lane.b32.xlu0 %v5984_v1, %s4302_s30 }
 0x2df   : > { %v6460_v19 = vpop.permute.xlu1 %3889  ;;  %v6465_v37 = vpop.permute.xlu0 %3909 }
 0x2e0   : > { %v8218_v52 = vunpack.i.h.bf16 %v6465_v37  ;;  %v8219_v20 = vunpack.i.l.bf16 %v6465_v37  ;;  %v8544_v49 = vunpack.i.l.bf16 %v6465_v37 }
 0x2e1   : > { %4189 = vrot.lane.b32.xlu1 %v6123_v39, %s4302_s30  ;;  %4184 = vrot.lane.b32.xlu0 %v5980_v21, %s4302_s30 }
 0x2e2   : > { %v1783_v31 = vsel %vm1768_vm9, %v8216_v12, %v8219_v20  ;;  %v1784_v39 = vsel %vm1768_vm9, %v8217_v9, %v8218_v52  ;;  %v2349_v20 = vld [vmem:[%s8072_s5 + $0x8] sm:$0xff] }
 0x2e3   : > { %v6475_v1 = vpop.permute.xlu1 %3899  ;;  %v6489_v13 = vpop.permute.xlu0 %3914  ;;  %v1803_v18 = vpack.c.bf16 %v1784_v39, %v1783_v31 }
 0x2e4   : > { %8502 = vst [vmem:[#allocation59_spill] sm:$0xff] %v6475_v1  ;;  %v8225_v39 = vunpack.i.l.bf16 %v6475_v1 }
 0x2e5   : > { %4194 = vrot.lane.b32.xlu1 %v5946_v53, %s4302_s30  ;;  %4199 = vrot.lane.b32.xlu0 %v6081_v24, %s4302_s30  ;;  %v8231_v53 = vunpack.i.h.bf16 %v6475_v1 }
 0x2e6   : > { %2508 = vmatprep.subr.bf16.mxu0 %v1803_v18 }
 0x2e7   : > { %v6495_v21 = vpop.permute.xlu1 %3904  ;;  %v6497_v12 = vpop.permute.xlu0 %3919 }
 0x2e8   : > { %8503 = vst [vmem:[#allocation60_spill] sm:$0xff] %v6495_v21 }
 0x2e9   : > { %4204 = vrot.lane.b32.xlu1 %v5950_v59, %s4302_s30  ;;  %4209 = vrot.lane.b32.xlu0 %v5900_v29, %s4302_s30  ;;  %v2348_v29 = vld [vmem:[%s8072_s5] sm:$0xff]  ;;  %v8232_v59 = vunpack.i.l.bf16 %v6179_v62 }
 0x2eb   : > { %v6503_v9 = vpop.permute.xlu1 %3924  ;;  %v6505_v31 = vpop.permute.xlu0 %3929 }
 0x2ec   : > { %8504 = vst [vmem:[#allocation61_spill] sm:$0xff] %v6505_v31  ;;  %v8230_v18 = vunpack.i.h.bf16 %v6505_v31  ;;  %v8224_v24 = vunpack.i.l.bf16 %v6505_v31 }
 0x2ed   : > { %4214 = vrot.lane.b32.xlu1 %v6085_v58, %s4302_s30  ;;  %4219 = vrot.lane.b32.xlu0 %v5883_v11, %s4302_s30 }
 0x2ee   : > { %v6530_v58 = vsel %vm1853_vm12, %v8225_v39, %v8224_v24  ;;  %v6538_v11 = vsel %vm1853_vm12, %v8231_v53, %v8230_v18  ;;  %v8235_v39 = vunpack.i.h.bf16 %v6495_v21  ;;  %v2351_v18 = vld [vmem:[%s8072_s5 + $0x18] sm:$0xff] }
 0x2ef   : > { %v6519_v52 = vpop.permute.xlu1 %3949  ;;  %8505 = vst [vmem:[#allocation62_spill] sm:$0xff] %v6530_v58  ;;  %8506 = vst [vmem:[#allocation63_spill] sm:$0xff] %v6538_v11  ;;  %v6543_v45 = vpop.permute.xlu0 %3934  ;;  %v8516_v58 = vunpack.i.l.bf16 %v6229_v28  ;;  %v8524_v11 = vunpack.i.h.bf16 %v6219_v36 }
 0x2f0   : > { %v8233_v8 = vunpack.i.l.bf16 %v6519_v52  ;;  %8507 = vst [vmem:[#allocation64_spill] sm:$0xff] %v6543_v45  ;;  %v8236_v1 = vunpack.i.h.bf16 %v6543_v45  ;;  %v8510_v24 = vunpack.i.h.bf16 %v6519_v52 }
 0x2f1   : > { %2358 = vperm.xlu1 %3742, %v2348_v29   ;;  %2363 = vperm.xlu0 %3741, %v2349_v20   ;;  %v2350_v29 = vld [vmem:[%s8072_s5 + $0x10] sm:$0xff] }
 0x2f2   : > { %v6557_v53 = vsel %vm413_vm0, %v8233_v8, %v8232_v59  ;;  %v6565_v31 = vsel %vm413_vm0, %v8510_v24, %v8509_v32  ;;  %v6578_v59 = vsel %vm583_vm2, %v8235_v39, %v8236_v1  ;;  %v8513_v8 = vunpack.i.l.bf16 %v6543_v45  ;;  %v2353_v45 = vld [vmem:[%s8072_s5 + $0x28] sm:$0xff] }
 0x2f3   : > { %8508 = vst [vmem:[#allocation65_spill] sm:$0xff] %v6557_v53  ;;  %8511 = vst [vmem:[#allocation66_spill] sm:$0xff] %v6565_v31  ;;  %v8514_v32 = vunpack.i.l.bf16 %v6495_v21  ;;  %v6588_v24 = vpop.permute.xlu1 %3959  ;;  %v6597_v31 = vpop.permute.xlu0 %3939  ;;  %v8247_v21 = vunpack.i.h.bf16 %v6187_v41 }
 0x2f4   : > { %8512 = vst [vmem:[#allocation67_spill] sm:$0xff] %v6578_v59  ;;  %v8244_v39 = vunpack.i.h.bf16 %v6588_v24  ;;  %v8245_v1 = vunpack.i.l.bf16 %v6588_v24  ;;  %v8528_v59 = vunpack.i.h.bf16 %v6195_v15 }
 0x2f5   : > { %v6586_v20 = vsel %vm583_vm2, %v8514_v32, %v8513_v8  ;;  %v8246_v32 = vunpack.i.h.bf16 %v6597_v31  ;;  %2368 = vperm.xlu1 %3742, %v2350_v29   ;;  %2373 = vperm.xlu0 %3741, %v2351_v18   ;;  %v2352_v29 = vld [vmem:[%s8072_s5 + $0x20] sm:$0xff] }
 0x2f6   : > { %8515 = vst [vmem:[#allocation68_spill] sm:$0xff] %v6586_v20  ;;  %v6609_v53 = vsel %vm1768_vm9, %v8516_v58, %v8245_v1  ;;  %v8518_v20 = vunpack.i.h.bf16 %v6229_v28  ;;  %v8521_v28 = vunpack.i.l.bf16 %v6597_v31  ;;  %v8526_v1 = vunpack.i.l.bf16 %v6219_v36 }
 0x2f7   : > { %8517 = vst [vmem:[#allocation69_spill] sm:$0xff] %v6609_v53  ;;  %v6630_v58 = vsel %vm1768_vm9, %v8247_v21, %v8246_v32  ;;  %v6649_v53 = vpop.permute.xlu0 %3944 }
 0x2f8   : > { %v6617_v8 = vsel %vm1768_vm9, %v8518_v20, %v8244_v39  ;;  %8520 = vst [vmem:[#allocation71_spill] sm:$0xff] %v6630_v58  ;;  %v8522_v20 = vunpack.i.l.bf16 %v6187_v41  ;;  %v6640_v39 = vpop.permute.xlu1 %3969  ;;  %v8534_v58 = vunpack.i.l.bf16 %v6286_v0  ;;  %v8542_v0 = vunpack.i.l.bf16 %v6240_v54 }
 0x2f9   : > { %8519 = vst [vmem:[#allocation70_spill] sm:$0xff] %v6617_v8  ;;  %v8252_v21 = vunpack.i.h.bf16 %v6640_v39  ;;  %2378 = vperm.xlu1 %3742, %v2352_v29   ;;  %2383 = vperm.xlu0 %3741, %v2353_v45   ;;  %v2354_v8 = vld [vmem:[%s8072_s5 + $0x30] sm:$0xff]  ;;  %v8530_v45 = vunpack.i.l.bf16 %v6649_v53 }
 0x2fa   : > { %v6638_v18 = vsel %vm1768_vm9, %v8522_v20, %v8521_v28  ;;  %v8254_v28 = vunpack.i.l.bf16 %v6640_v39  ;;  %v8255_v20 = vunpack.i.h.bf16 %v6649_v53 }
 0x2fb   : > { %8523 = vst [vmem:[#allocation72_spill] sm:$0xff] %v6638_v18  ;;  %v6661_v32 = vsel %vm413_vm0, %v8252_v21, %v8524_v11  ;;  %v8531_v21 = vunpack.i.l.bf16 %v6195_v15 }
 0x2fc   : > { %8525 = vst [vmem:[#allocation73_spill] sm:$0xff] %v6661_v32  ;;  %v6672_v29 = vsel %vm413_vm0, %v8254_v28, %v8526_v1  ;;  %v6680_v11 = vsel %vm1683_vm11, %v8528_v59, %v8255_v20  ;;  %v6690_v18 = vpop.permute.xlu1 %3974  ;;  %v2355_v1 = vld [vmem:[%s8072_s5 + $0x38] sm:$0xff]  ;;  %v6699_v20 = vpop.permute.xlu0 %3954  ;;  %v3832_v59 = vunpack.i.h.bf16 %v6322_v47 }
 0x2fd   : > { %8527 = vst [vmem:[#allocation74_spill] sm:$0xff] %v6672_v29  ;;  %8529 = vst [vmem:[#allocation75_spill] sm:$0xff] %v6680_v11  ;;  %v6688_v36 = vsel %vm1683_vm11, %v8531_v21, %v8530_v45  ;;  %2388 = vperm.xlu1 %3742, %v2354_v8   ;;  %2393 = vperm.xlu0 %3741, %v2355_v1   ;;  %v3831_v8 = vunpack.i.l.bf16 %v6322_v47  ;;  %v8539_v21 = vunpack.i.h.bf16 %v6240_v54 }
 0x2fe   : > { %8532 = vst [vmem:[#allocation76_spill] sm:$0xff] %v6688_v36  ;;  %8533 = vst [vmem:[#allocation77_spill] sm:$0xff] %v6699_v20 }
 0x300   : > { %v6703_v45 = vpop.permute.xlu1 %3989  ;;  %v6709_v29 = vpop.permute.xlu0 %3964 }
 0x301   : > { %v8264_v28 = vunpack.i.l.bf16 %v6703_v45  ;;  %v8269_v1 = vunpack.i.h.bf16 %v6709_v29  ;;  %v8537_v36 = vunpack.i.h.bf16 %v6703_v45 }
 0x303   : > { %v6721_v40 = vsel %vm413_vm0, %v8264_v28, %v8534_v58  ;;  %v6729_v11 = vsel %vm413_vm0, %v8537_v36, %v8536_v60  ;;  %v6739_v32 = vsel %vm1683_vm11, %v8539_v21, %v8269_v1  ;;  %v8541_v58 = vunpack.i.l.bf16 %v6709_v29 }
 0x304   : > { %8535 = vst [vmem:[#allocation78_spill] sm:$0xff] %v6721_v40  ;;  %8538 = vst [vmem:[#allocation79_spill] sm:$0xff] %v6729_v11  ;;  %v4005_v60 = vpop.permute.xlu1 %4004  ;;  %v3980_v11 = vpop.permute.xlu0 %3979  ;;  %v1781_v21 = vsel %vm1768_vm9, %v3831_v8, %v3856_v25  ;;  %v1782_v1 = vsel %vm1768_vm9, %v3832_v59, %v3857_v48 }
 0x305   : > { %8540 = vst [vmem:[#allocation80_spill] sm:$0xff] %v6739_v32  ;;  %v6747_v28 = vsel %vm1683_vm11, %v8542_v0, %v8541_v58  ;;  %v4007_v47 = vunpack.i.h.bf16 %v4005_v60  ;;  %v4006_v40 = vunpack.i.l.bf16 %v4005_v60  ;;  %v3982_v27 = vunpack.i.h.bf16 %v3980_v11 }
 0x306   : > { %8543 = vst [vmem:[#allocation81_spill] sm:$0xff] %v6747_v28  ;;  %v3981_v17 = vunpack.i.l.bf16 %v3980_v11  ;;  %v8546_v0 = vunpack.i.h.bf16 %v6465_v37  ;;  %v8547_v11 = vunpack.i.l.bf16 %v6404_v63  ;;  %v8548_v28 = vunpack.i.h.bf16 %v6404_v63 }
 0x307   : > { %v6759_v58 = vsel %vm1768_vm9, %v8544_v49, %v4006_v40  ;;  %v6779_v37 = vsel %vm1768_vm9, %v3857_v48, %v3982_v27 }
 0x308   : > { %8545 = vst [vmem:[#allocation82_spill] sm:$0xff] %v6759_v58  ;;  %v6765_v60 = vsel %vm1768_vm9, %v8546_v0, %v4007_v47  ;;  %v1791_v36 = vsel %vm1768_vm9, %v4006_v40, %v8547_v11  ;;  %v1792_v32 = vsel %vm1768_vm9, %v4007_v47, %v8548_v28  ;;  %v6783_v0 = vsel %vm1768_vm9, %v3856_v25, %v3981_v17  ;;  %v6785_v61 = vpop.permute.xlu1 %4009  ;;  %v3985_v40 = vpop.permute.xlu0 %3984 }
 0x309   : > { %v1802_v20 = vpack.c.bf16 %v1792_v32, %v1791_v36  ;;  %v1789_v63 = vsel %vm1768_vm9, %v3981_v17, %v3831_v8  ;;  %v1790_v28 = vsel %vm1768_vm9, %v3982_v27, %v3832_v59  ;;  %v1800_v47 = vpack.c.bf16 %v1782_v1, %v1781_v21 }
 0x30a   : > { %v3987_v36 = vunpack.i.h.bf16 %v3985_v40  ;;  %v3986_v48 = vunpack.i.l.bf16 %v3985_v40  ;;  %v3747_v11 = vunpack.i.h.bf16 %v6181_v2  ;;  %v3746_v25 = vunpack.i.l.bf16 %v6181_v2 }
 0x30b   : > { %2509 = vmatpush1.bf16.msra.mxu0 %v1802_v20  ;;  %v1799_v49 = vpack.c.bf16 %v1790_v28, %v1789_v63  ;;  %v8549_v58 = vunpack.i.h.bf16 %v6330_v55  ;;  %v8550_v27 = vunpack.i.l.bf16 %v6330_v55  ;;  %v8552_v20 = vunpack.i.l.bf16 %v6211_v34 }
 0x30c   : > { %2510 = vmatprep.subr.bf16.mxu0 %v1800_v47  ;;  %v6807_v8 = vpop.permute.xlu1 %4019  ;;  %v8553_v1 = vunpack.i.l.bf16 %v6588_v24  ;;  %v8554_v21 = vunpack.i.h.bf16 %v6211_v34  ;;  %v6823_v28 = vpop.permute.xlu0 %3994  ;;  %v3917_v40 = vunpack.i.h.bf16 %v6489_v13  ;;  %v3916_v47 = vunpack.i.l.bf16 %v6489_v13 }
 0x30d   : > { %v6799_v17 = vsel %vm1683_vm11, %v8549_v58, %v3987_v36  ;;  %v6805_v59 = vsel %vm1683_vm11, %v8550_v27, %v3986_v48  ;;  %v8555_v58 = vunpack.i.h.bf16 %v6588_v24  ;;  %v8556_v27 = vunpack.i.l.bf16 %v6187_v41 }
 0x30e   : > { %8551 = vst [vmem:[#allocation83_spill] sm:$0xff] %v6805_v59  ;;  %v1787_v2 = vsel %vm1768_vm9, %v8553_v1, %v8552_v20  ;;  %v8557_v24 = vunpack.i.h.bf16 %v6187_v41  ;;  %v8558_v1 = vpack.c.bf16 %v6256_v42, %v6248_v16  ;;  %v8559_v63 = vunpack.i.l.bf16 %v6597_v31 }
 0x30f   : > { %v1788_v55 = vsel %vm1768_vm9, %v8555_v58, %v8554_v21  ;;  %2511 = vmatpush1.bf16.msra.mxu0 %v1799_v49  ;;  %v1777_v34 = vsel %vm1768_vm9, %v3746_v25, %v8556_v27  ;;  %v3887_v21 = vunpack.i.h.bf16 %v6450_v10  ;;  %v3886_v58 = vunpack.i.l.bf16 %v6450_v10 }
 0x310   : > { %v1778_v20 = vsel %vm1768_vm9, %v3747_v11, %v8557_v24  ;;  %2512 = vmatprep.subr.bf16.mxu0 %v8558_v1  ;;  %v1796_v13 = vpack.c.bf16 %v1788_v55, %v1787_v2  ;;  %v6840_v49 = vpop.permute.xlu1 %4029  ;;  %v1785_v27 = vsel %vm1768_vm9, %v8559_v63, %v3746_v25  ;;  %v8560_v41 = vunpack.i.h.bf16 %v6597_v31  ;;  %v6850_v32 = vpop.permute.xlu0 %3999 }
 0x311   : > { %v1794_v16 = vpack.c.bf16 %v1778_v20, %v1777_v34  ;;  %v1698_v42 = vsel %vm1683_vm11, %v3886_v58, %v3916_v47  ;;  %v1699_v10 = vsel %vm1683_vm11, %v3887_v21, %v3917_v40  ;;  %v3792_v25 = vunpack.i.h.bf16 %v6213_v57 }
 0x312   : > { %v1786_v24 = vsel %vm1768_vm9, %v8560_v41, %v3747_v11  ;;  %v3791_v31 = vunpack.i.l.bf16 %v6213_v57  ;;  %v3922_v41 = vunpack.i.h.bf16 %v6497_v12  ;;  %v3921_v59 = vunpack.i.l.bf16 %v6497_v12 }
 0x313   : > { %2513 = vmatpush1.bf16.msra.mxu0 %v1796_v13  ;;  %v1793_v55 = vpack.c.bf16 %v1786_v24, %v1785_v27  ;;  %v1718_v13 = vpack.c.bf16 %v1699_v10, %v1698_v42  ;;  %v8562_v57 = vunpack.i.h.bf16 %v6240_v54  ;;  %v8299_v11 = vunpack.i.l.bf16 %v6503_v9 }
 0x314   : > { %2514 = vmatprep.subr.bf16.mxu0 %v1794_v16  ;;  %v4040_v63 = vpop.permute.xlu1 %4039  ;;  %v6860_v20 = vpop.permute.xlu0 %4014  ;;  %v8561_v16 = vunpack.i.l.bf16 %v6240_v54  ;;  %v3892_v54 = vunpack.i.h.bf16 %v6460_v19 }
 0x315   : > { %v4042_v1 = vunpack.i.h.bf16 %v4040_v63  ;;  %v4041_v34 = vunpack.i.l.bf16 %v4040_v63  ;;  %v1695_v27 = vsel %vm1683_vm11, %v3792_v25, %v8562_v57  ;;  %v8563_v57 = vunpack.i.l.bf16 %v6334_v6 }
 0x316   : > { %v1694_v2 = vsel %vm1683_vm11, %v3791_v31, %v8561_v16 }
 0x317   : > { %2515 = vmatpush1.bf16.msra.mxu0 %v1793_v55  ;;  %v6874_v24 = vsel %vm1683_vm11, %v3916_v47, %v4041_v34  ;;  %v6878_v42 = vsel %vm1683_vm11, %v3917_v40, %v4042_v1  ;;  %v1706_v12 = vsel %vm1683_vm11, %v4041_v34, %v3886_v58  ;;  %v1707_v10 = vsel %vm1683_vm11, %v4042_v1, %v3887_v21 }
 0x318   : > { %2516 = vmatprep.subr.bf16.mxu0 %v1718_v13  ;;  %v3891_v55 = vunpack.i.l.bf16 %v6460_v19  ;;  %v1717_v63 = vpack.c.bf16 %v1707_v10, %v1706_v12  ;;  %v4045_v16 = vpop.permute.xlu1 %4044  ;;  %v1704_v40 = vsel %vm1683_vm11, %v3986_v48, %v8563_v57  ;;  %v8564_v58 = vunpack.i.h.bf16 %v6334_v6  ;;  %v6896_v13 = vpop.permute.xlu0 %4024 }
 0x319   : > { %v4047_v1 = vunpack.i.h.bf16 %v4045_v16  ;;  %v4046_v34 = vunpack.i.l.bf16 %v4045_v16  ;;  %v2050_v19 = vsel %vm413_vm0, %v3892_v54, %v3922_v41  ;;  %v8565_v10 = vunpack.i.l.bf16 %v6703_v45 }
 0x31a   : > { %v1705_v21 = vsel %vm1683_vm11, %v3987_v36, %v8564_v58  ;;  %v2049_v12 = vsel %vm413_vm0, %v3891_v55, %v3921_v59  ;;  %v8566_v48 = vunpack.i.l.bf16 %v6422_v44  ;;  %v8567_v36 = vunpack.i.h.bf16 %v6703_v45 }
 0x31b   : > { %2517 = vmatpush1.bf16.msra.mxu0 %v1717_v63  ;;  %v8568_v16 = vunpack.i.h.bf16 %v6422_v44  ;;  %v6916_v58 = vsel %vm413_vm0, %v4046_v34, %v3891_v55  ;;  %v6920_v63 = vsel %vm413_vm0, %v4047_v1, %v3892_v54  ;;  %v8569_v47 = vpack.c.bf16 %v6359_v56, %v6351_v4 }
 0x31c   : > { %v2039_v6 = vsel %vm413_vm0, %v8566_v48, %v8565_v10  ;;  %v2041_v45 = vsel %vm413_vm0, %v3921_v59, %v4046_v34  ;;  %v2042_v44 = vsel %vm413_vm0, %v3922_v41, %v4047_v1  ;;  %v1714_v10 = vpack.c.bf16 %v1705_v21, %v1704_v40  ;;  %v6931_v55 = vpop.permute.xlu1 %4049  ;;  %v8607_v48 = vld [vmem:[#allocation35_spill] sm:$0xff] }
 0x31d   : > { %v2040_v57 = vsel %vm413_vm0, %v8568_v16, %v8567_v36  ;;  %2518 = vmatprep.subr.bf16.mxu0 %v8569_v47  ;;  %v2069_v36 = vpack.c.bf16 %v2042_v44, %v2041_v45  ;;  %v1712_v16 = vpack.c.bf16 %v1695_v27, %v1694_v2  ;;  %v2068_v54 = vpack.c.bf16 %v2050_v19, %v2049_v12  ;;  %v6942_v47 = vpop.permute.xlu0 %4034 }
 0x31e   : > { %v8570_v4 = vunpack.i.l.bf16 %v6709_v29  ;;  %v8571_v59 = vunpack.i.h.bf16 %v6709_v29  ;;  %v8297_v40 = vunpack.i.h.bf16 %v6503_v9  ;;  %v2066_v2 = vpack.c.bf16 %v2040_v57, %v2039_v6 }
 0x31f   : > { %2519 = vmatpush1.bf16.msra.mxu0 %v1714_v10  ;;  %2581 = vmatprep.subr.bf16.mxu1 %v2069_v36  ;;  %v8572_v27 = vunpack.i.l.bf16 %v6195_v15  ;;  %v8573_v21 = vunpack.i.l.bf16 %v6189_v3  ;;  %v8575_v29 = vunpack.i.h.bf16 %v6189_v3  ;;  %v3896_v34 = vunpack.i.l.bf16 %v6454_v7 }
 0x320   : > { %v1702_v56 = vsel %vm1683_vm11, %v8570_v4, %v3791_v31  ;;  %v1703_v41 = vsel %vm1683_vm11, %v8571_v59, %v3792_v25  ;;  %v8574_v31 = vunpack.i.h.bf16 %v6195_v15  ;;  %2520 = vmatprep.subr.bf16.mxu0 %v1712_v16  ;;  %2582 = vmatpush1.bf16.msra.mxu1 %v2068_v54  ;;  %v8576_v19 = vunpack.i.l.bf16 %v6640_v39  ;;  %v6973_v54 = vpop.permute.xlu1 %4059 }
 0x321   : > { %v1692_v1 = vsel %vm1683_vm11, %v8573_v21, %v8572_v27  ;;  %v8577_v12 = vunpack.i.l.bf16 %v6258_v26  ;;  %v8578_v57 = vunpack.i.h.bf16 %v6640_v39  ;;  %v8579_v15 = vunpack.i.h.bf16 %v6258_v26  ;;  %2583 = vmatprep.subr.bf16.mxu1 %v2066_v2 }
 0x322   : > { %v1693_v25 = vsel %vm1683_vm11, %v8575_v29, %v8574_v31  ;;  %v3777_v44 = vunpack.i.h.bf16 %v6205_v33  ;;  %v3776_v10 = vunpack.i.l.bf16 %v6205_v33  ;;  %v3897_v36 = vunpack.i.h.bf16 %v6454_v7 }
 0x323   : > { %v2037_v6 = vsel %vm413_vm0, %v8577_v12, %v8576_v19  ;;  %v2038_v45 = vsel %vm413_vm0, %v8579_v15, %v8578_v57  ;;  %v1711_v16 = vpack.c.bf16 %v1703_v41, %v1702_v56  ;;  %v8580_v4 = vmov %v8573_v21  ;;  %v6987_v21 = vpop.permute.xlu0 %4054 }
 0x324   : > { %v8581_v59 = vunpack.i.l.bf16 %v6649_v53  ;;  %v8582_v39 = vmov %v8575_v29  ;;  %v8583_v27 = vunpack.i.h.bf16 %v6649_v53  ;;  %v1709_v7 = vpack.c.bf16 %v1693_v25, %v1692_v1  ;;  %v7008_v19 = vpop.permute.xlu1 %4074 }
 0x325   : > { %v1953_v56 = vsel %vm1938_vm10, %v3896_v34, %v8299_v11  ;;  %2521 = vmatpush1.bf16.msra.mxu0 %v1711_v16  ;;  %v2063_v41 = vpack.c.bf16 %v2038_v45, %v2037_v6  ;;  %v1954_v3 = vsel %vm1938_vm10, %v3897_v36, %v8297_v40  ;;  %v8584_v53 = vunpack.i.l.bf16 %v6519_v52 }
 0x326   : > { %v1700_v26 = vsel %vm1683_vm11, %v8581_v59, %v8580_v4  ;;  %v1701_v33 = vsel %vm1683_vm11, %v8583_v27, %v8582_v39  ;;  %v8585_v31 = vunpack.i.h.bf16 %v6519_v52  ;;  %2522 = vmatprep.subr.bf16.mxu0 %v1709_v7  ;;  %v8586_v29 = vpack.c.bf16 %v6440_v22, %v6448_v30 }
 0x327   : > { %v2035_v2 = vsel %vm413_vm0, %v3776_v10, %v8584_v53  ;;  %v1708_v25 = vpack.c.bf16 %v1701_v33, %v1700_v26  ;;  %v8587_v12 = vunpack.i.h.bf16 %v6179_v62  ;;  %v8588_v57 = vunpack.i.l.bf16 %v6179_v62  ;;  %v7018_v15 = vpop.permute.xlu0 %4064 }
 0x328   : > { %v2036_v1 = vsel %vm413_vm0, %v3777_v44, %v8585_v31  ;;  %2584 = vmatpush1.bf16.msra.mxu1 %v8586_v29  ;;  %v1973_v45 = vpack.c.bf16 %v1954_v3, %v1953_v56  ;;  %v8295_v22 = vunpack.i.h.bf16 %v6823_v28  ;;  %v8296_v30 = vunpack.i.l.bf16 %v6823_v28  ;;  %v7035_v26 = vpop.permute.xlu1 %4084 }
 0x329   : > { %2585 = vmatprep.subr.bf16.mxu1 %v2063_v41  ;;  %v2044_v6 = vsel %vm413_vm0, %v8587_v12, %v3777_v44  ;;  %v2043_v52 = vsel %vm413_vm0, %v8588_v57, %v3776_v10  ;;  %v2060_v16 = vpack.c.bf16 %v2036_v1, %v2035_v2  ;;  %v8298_v4 = vunpack.i.h.bf16 %v7018_v15  ;;  %2523 = vmatpush1.bf16.msra.mxu0 %v1708_v25  ;;  %v8593_v1 = vld [vmem:[#allocation29_spill] sm:$0xff] }
 0x32a   : > { %v8302_v59 = vunpack.i.l.bf16 %v7018_v15  ;;  %2524 = vmatprep.subr.bf16.mxu0 %v1973_v45  ;;  %v8589_v62 = vpack.c.bf16 %v6276_v51, %v6284_v46  ;;  %v8284_v39 = vunpack.i.l.bf16 %v6203_v14  ;;  %v2059_v27 = vpack.c.bf16 %v2044_v6, %v2043_v52  ;;  %v8595_v25 = vld [vmem:[#allocation77_spill] sm:$0xff]  ;;  %v8596_v45 = vld [vmem:[#allocation50_spill] sm:$0xff] }
 0x32b   : > { %v1962_v10 = vsel %vm1938_vm10, %v8298_v4, %v3897_v36  ;;  %v7038_v7 = vpop.permute.xlu0 %4069  ;;  %v8294_v51 = vunpack.i.h.bf16 %v6690_v18  ;;  %v8288_v46 = vunpack.i.l.bf16 %v6690_v18  ;;  %v8591_v56 = vunpack.i.h.bf16 %v6363_v5 }
 0x32c   : > { %2586 = vmatpush1.bf16.msra.mxu1 %v8589_v62  ;;  %v1961_v44 = vsel %vm1938_vm10, %v8302_v59, %v3896_v34  ;;  %v8590_v34 = vunpack.i.l.bf16 %v6363_v5  ;;  %v8280_v3 = vunpack.i.h.bf16 %v6203_v14  ;;  %v3761_v53 = vunpack.i.l.bf16 %v6197_v35  ;;  %v7059_v31 = vpop.permute.xlu1 %4094 }
 0x32d   : > { %2587 = vmatprep.subr.bf16.mxu1 %v2060_v16  ;;  %v1972_v33 = vpack.c.bf16 %v1962_v10, %v1961_v44  ;;  %v1960_v41 = vsel %vm1938_vm10, %v8295_v22, %v8591_v56  ;;  %v8592_v2 = vpack.c.bf16 %v6389_v43, %v6381_v50  ;;  %v8594_v5 = vpack.c.bf16 %v5994_v23, %v8593_v1  ;;  %v8603_v1 = vld [vmem:[#allocation53_spill] sm:$0xff]  ;;  %v8633_v22 = vld [vmem:[#allocation64_spill] sm:$0xff] }
 0x32e   : > { %v1959_v36 = vsel %vm1938_vm10, %v8296_v30, %v8590_v34  ;;  %v3762_v29 = vunpack.i.h.bf16 %v6197_v35  ;;  %v8283_v12 = vunpack.i.h.bf16 %v8595_v25  ;;  %v8287_v6 = vunpack.i.l.bf16 %v8595_v25  ;;  %v8600_v34 = vld [vmem:[#allocation26_spill] sm:$0xff] }
 0x32f   : > { %2525 = vmatpush2.bf16.msra.mxu0 %v1972_v33  ;;  %v1969_v57 = vpack.c.bf16 %v1960_v41, %v1959_v36  ;;  %v7067_v52 = vpop.permute.xlu0 %4079  ;;  %v8597_v16 = vunpack.i.l.bf16 %v8596_v45  ;;  %v8598_v50 = vunpack.i.h.bf16 %v8596_v45  ;;  %v8278_v35 = vunpack.i.h.bf16 %v6785_v61  ;;  %v8599_v33 = vld [vmem:[#allocation30_spill] sm:$0xff]  ;;  %v8602_v41 = vld [vmem:[#allocation49_spill] sm:$0xff] }
 0x330   : > { %2588 = vmatpush1.bf16.msra.mxu1 %v2059_v27  ;;  %2526 = vmatprep.subr.bf16.mxu0 %v8592_v2  ;;  %v1947_v62 = vsel %vm1938_vm10, %v3761_v53, %v8284_v39  ;;  %v8282_v44 = vunpack.i.l.bf16 %v6785_v61  ;;  %v8281_v10 = vunpack.i.h.bf16 %v6850_v32  ;;  %v8279_v27 = vunpack.i.l.bf16 %v6850_v32 }
 0x331   : > { %2589 = vmatprep.subr.bf16.mxu1 %v8594_v5  ;;  %v1957_v43 = vsel %vm1938_vm10, %v8288_v46, %v8597_v16  ;;  %v1958_v23 = vsel %vm1938_vm10, %v8294_v51, %v8598_v50  ;;  %v8601_v36 = vpack.c.bf16 %v8599_v33, %v8600_v34  ;;  %v1948_v56 = vsel %vm1938_vm10, %v3762_v29, %v8280_v3  ;;  %v8604_v5 = vld [vmem:[#allocation52_spill] sm:$0xff]  ;;  %v7100_v16 = vpop.permute.xlu1 %4099  ;;  %v8606_v50 = vld [vmem:[#allocation19_spill] sm:$0xff] }
 0x332   : > { %v3807_v2 = vunpack.i.h.bf16 %v8602_v41  ;;  %v8605_v45 = vpack.c.bf16 %v8603_v1, %v8604_v5  ;;  %v3806_v33 = vunpack.i.l.bf16 %v8602_v41  ;;  %v1966_v34 = vpack.c.bf16 %v1958_v23, %v1957_v43  ;;  %v8609_v23 = vld [vmem:[#allocation56_spill] sm:$0xff] }
 0x333   : > { %2527 = vmatpush2.bf16.msra.mxu0 %v1969_v57  ;;  %v8608_v57 = vpack.c.bf16 %v8606_v50, %v8607_v48  ;;  %v1956_v1 = vsel %vm1938_vm10, %v8283_v12, %v3762_v29  ;;  %v7114_v5 = vpop.permute.xlu0 %4089  ;;  %v4016_v48 = vunpack.i.l.bf16 %v6860_v20  ;;  %v1964_v50 = vpack.c.bf16 %v1948_v56, %v1947_v62  ;;  %v8612_v62 = vld [vmem:[#allocation23_spill] sm:$0xff]  ;;  %v8613_v56 = vld [vmem:[#allocation44_spill] sm:$0xff] }
 0x334   : > { %2590 = vmatpush1.bf16.msra.mxu1 %v8601_v36  ;;  %2528 = vmatprep.subr.bf16.mxu0 %v8605_v45  ;;  %v1955_v36 = vsel %vm1938_vm10, %v8287_v6, %v3761_v53  ;;  %v4017_v45 = vunpack.i.h.bf16 %v6860_v20  ;;  %v7122_v43 = vsel %vm1853_vm12, %v3807_v2, %v8278_v35  ;;  %v8610_v53 = vunpack.i.l.bf16 %v8609_v23  ;;  %v8622_v6 = vld [vmem:[#allocation21_spill] sm:$0xff] }
 0x335   : > { %2591 = vmatprep.subr.bf16.mxu1 %v8608_v57  ;;  %v8611_v41 = vunpack.i.h.bf16 %v8609_v23  ;;  %v8614_v57 = vpack.c.bf16 %v8612_v62, %v8613_v56  ;;  %v7147_v35 = vsel %vm1853_vm12, %v3806_v33, %v8282_v44  ;;  %v8285_v23 = vunpack.i.h.bf16 %v6840_v49 }
 0x336   : > { %v7130_v29 = vsel %vm1853_vm12, %v8279_v27, %v8610_v53  ;;  %v1963_v53 = vpack.c.bf16 %v1956_v1, %v1955_v36  ;;  %v8286_v27 = vunpack.i.l.bf16 %v6840_v49  ;;  %v8292_v3 = vunpack.i.l.bf16 %v6896_v13 }
 0x337   : > { %v7138_v20 = vsel %vm1853_vm12, %v8281_v10, %v8611_v41  ;;  %2529 = vmatpush2.bf16.msra.mxu0 %v1966_v34  ;;  %v7152_v41 = vpop.permute.xlu1 %4109  ;;  %v8615_v34 = vld [vmem:[#allocation34_spill] sm:$0xff]  ;;  %v8616_v10 = vld [vmem:[#allocation17_spill] sm:$0xff]  ;;  %v8293_v56 = vunpack.i.h.bf16 %v6807_v8  ;;  %v7161_v1 = vpop.permute.xlu0 %4104  ;;  %v8634_v30 = vunpack.i.l.bf16 %v8633_v22  ;;  %v8635_v40 = vunpack.i.h.bf16 %v8633_v22 }
 0x338   : > { %2592 = vmatpush1.bf16.msra.mxu1 %v8614_v57  ;;  %2530 = vmatprep.subr.bf16.mxu0 %v1964_v50  ;;  %v8617_v62 = vpack.c.bf16 %v8615_v34, %v8616_v10  ;;  %v8291_v57 = vunpack.i.l.bf16 %v6807_v8  ;;  %v8290_v44 = vunpack.i.h.bf16 %v7152_v41  ;;  %v8289_v36 = vunpack.i.l.bf16 %v7152_v41 }
 0x339   : > { %v1884_v12 = vpack.c.bf16 %v7138_v20, %v7130_v29  ;;  %v7169_v50 = vsel %vm583_vm2, %v8285_v23, %v4017_v45  ;;  %v7175_v10 = vsel %vm583_vm2, %v8286_v27, %v4016_v48  ;;  %v1882_v34 = vpack.c.bf16 %v7122_v43, %v7147_v35  ;;  %v8621_v27 = vld [vmem:[#allocation9_spill] sm:$0xff] }
 0x33a   : > { %2593 = vmatprep.subr.bf16.mxu1 %v8617_v62  ;;  %v8618_v62 = vld [vmem:[#allocation59_spill] sm:$0xff]  ;;  %v8623_v46 = vpack.c.bf16 %v8621_v27, %v8622_v6  ;;  %v2208_v35 = vsel %vm583_vm2, %v4016_v48, %v8291_v57  ;;  %v8303_v43 = vunpack.i.h.bf16 %v6896_v13  ;;  %v8628_v6 = vld [vmem:[#allocation13_spill] sm:$0xff]  ;;  %v2209_v48 = vsel %vm583_vm2, %v4017_v45, %v8293_v56 }
 0x33b   : > { %v8619_v39 = vunpack.i.l.bf16 %v8618_v62  ;;  %v8620_v20 = vunpack.i.h.bf16 %v8618_v62  ;;  %2531 = vmatpush2.bf16.msra.mxu0 %v1963_v53  ;;  %v8304_v57 = vunpack.i.h.bf16 %v6931_v55  ;;  %v4057_v45 = vunpack.i.h.bf16 %v6987_v21  ;;  %v8631_v56 = vld [vmem:[#allocation33_spill] sm:$0xff] }
 0x33c   : > { %2594 = vmatpush1.bf16.msra.mxu1 %v8623_v46  ;;  %v8627_v46 = vld [vmem:[#allocation41_spill] sm:$0xff]  ;;  %v2234_v22 = vpack.c.bf16 %v7169_v50, %v7175_v10  ;;  %v8639_v10 = vld [vmem:[#allocation67_spill] sm:$0xff] }
 0x33d   : > { %v1876_v29 = vsel %vm1853_vm12, %v8289_v36, %v8619_v39  ;;  %v1877_v23 = vsel %vm1853_vm12, %v8290_v44, %v8620_v20  ;;  %v1872_v39 = vsel %vm1853_vm12, %v8292_v3, %v3806_v33  ;;  %v8624_v36 = vld [vmem:[#allocation63_spill] sm:$0xff]  ;;  %v8625_v20 = vld [vmem:[#allocation62_spill] sm:$0xff]  ;;  %v7206_v44 = vpop.permute.xlu1 %4114  ;;  %v8629_v27 = vpack.c.bf16 %v8627_v46, %v8628_v6 }
 0x33e   : > { %v1887_v62 = vpack.c.bf16 %v1877_v23, %v1876_v29  ;;  %v8626_v53 = vpack.c.bf16 %v8624_v36, %v8625_v20  ;;  %v8306_v33 = vunpack.i.l.bf16 %v6931_v55  ;;  %v8301_v23 = vunpack.i.h.bf16 %v7206_v44  ;;  %v7219_v29 = vpop.permute.xlu0 %4124  ;;  %v8630_v3 = vld [vmem:[#allocation43_spill] sm:$0xff] }
 0x33f   : > { %2595 = vmatprep.subr.bf16.mxu1 %v8629_v27  ;;  %v8300_v36 = vunpack.i.l.bf16 %v7206_v44  ;;  %v4037_v20 = vunpack.i.h.bf16 %v6942_v47  ;;  %v8321_v46 = vunpack.i.h.bf16 %v6973_v54  ;;  %v8325_v6 = vunpack.i.l.bf16 %v6973_v54 }
 0x340   : > { %2532 = vmatprep.subr.bf16.mxu0 %v8626_v53  ;;  %v4036_v53 = vunpack.i.l.bf16 %v6942_v47  ;;  %v4056_v27 = vunpack.i.l.bf16 %v6987_v21  ;;  %v8632_v51 = vpack.c.bf16 %v8630_v3, %v8631_v56  ;;  %v2211_v4 = vsel %vm583_vm2, %v8635_v40, %v8301_v23  ;;  %v8636_v56 = vld [vmem:[#allocation58_spill] sm:$0xff] }
 0x341   : > { %2533 = vmatpush2.bf16.msra.mxu0 %v1887_v62  ;;  %v2210_v47 = vsel %vm583_vm2, %v8634_v30, %v8300_v36  ;;  %v1873_v21 = vsel %vm1853_vm12, %v8303_v43, %v3807_v2  ;;  %v8326_v3 = vunpack.i.l.bf16 %v7008_v19  ;;  %v8637_v62 = vld [vmem:[#allocation57_spill] sm:$0xff]  ;;  %v7251_v30 = vpop.permute.xlu1 %4119  ;;  %v8305_v40 = vunpack.i.h.bf16 %v7038_v7 }
 0x342   : > { %2596 = vmatpush1.bf16.msra.mxu1 %v8632_v51  ;;  %v8638_v11 = vpack.c.bf16 %v8636_v56, %v8637_v62  ;;  %v2238_v36 = vpack.c.bf16 %v2211_v4, %v2210_v47  ;;  %v8307_v23 = vunpack.i.l.bf16 %v7038_v7  ;;  %v7257_v59 = vpop.permute.xlu0 %4134  ;;  %v2235_v2 = vpack.c.bf16 %v2209_v48, %v2208_v35  ;;  %v8640_v47 = vld [vmem:[#allocation68_spill] sm:$0xff] }
 0x343   : > { %v4082_v43 = vunpack.i.h.bf16 %v7067_v52  ;;  %v4081_v51 = vunpack.i.l.bf16 %v7067_v52  ;;  %v1863_v4 = vsel %vm1853_vm12, %v4037_v20, %v8304_v57  ;;  %v1881_v50 = vpack.c.bf16 %v1873_v21, %v1872_v39 }
 0x344   : > { %2534 = vmatprep.subr.bf16.mxu0 %v8638_v11  ;;  %2597 = vmatprep.subr.bf16.mxu1 %v2238_v36  ;;  %v1862_v11 = vsel %vm1853_vm12, %v4036_v53, %v8306_v33  ;;  %v8641_v35 = vpack.c.bf16 %v8639_v10, %v8640_v47  ;;  %v2206_v52 = vsel %vm583_vm2, %v4056_v27, %v8325_v6  ;;  %v8308_v21 = vunpack.i.h.bf16 %v7035_v26 }
 0x345   : > { %2535 = vmatpush2.bf16.msra.mxu0 %v1884_v12  ;;  %v2207_v48 = vsel %vm583_vm2, %v4057_v45, %v8321_v46  ;;  %v2214_v39 = vsel %vm583_vm2, %v8326_v3, %v4056_v27  ;;  %v8642_v12 = vunpack.i.h.bf16 %v7008_v19  ;;  %v8311_v56 = vunpack.i.l.bf16 %v7035_v26  ;;  %v7290_v62 = vpop.permute.xlu1 %4129 }
 0x346   : > { %2598 = vmatpush2.bf16.msra.mxu1 %v8641_v35  ;;  %2536 = vmatprep.subr.bf16.mxu0 %v1882_v34  ;;  %v1870_v10 = vsel %vm1853_vm12, %v8307_v23, %v4036_v53  ;;  %v1871_v27 = vsel %vm1853_vm12, %v8305_v40, %v4037_v20  ;;  %v7301_v47 = vpop.permute.xlu0 %4144  ;;  %v1879_v35 = vpack.c.bf16 %v1863_v4, %v1862_v11  ;;  %v8309_v34 = vunpack.i.h.bf16 %v7114_v5 }
 0x347   : > { %v2215_v36 = vsel %vm583_vm2, %v8642_v12, %v4057_v45  ;;  %2599 = vmatprep.subr.bf16.mxu1 %v2235_v2  ;;  %v8318_v45 = vunpack.i.l.bf16 %v7114_v5  ;;  %v2232_v12 = vpack.c.bf16 %v2207_v48, %v2206_v52  ;;  %v2204_v2 = vsel %vm583_vm2, %v4081_v51, %v8311_v56 }
 0x348   : > { %v2205_v53 = vsel %vm583_vm2, %v4082_v43, %v8308_v21  ;;  %v2231_v57 = vpack.c.bf16 %v2215_v36, %v2214_v39  ;;  %v1878_v20 = vpack.c.bf16 %v1871_v27, %v1870_v10  ;;  %v4097_v11 = vunpack.i.h.bf16 %v7059_v31 }
 0x349   : > { %2537 = vmatpush2.bf16.msra.mxu0 %v1881_v50  ;;  %v4096_v4 = vunpack.i.l.bf16 %v7059_v31  ;;  %v8316_v52 = vunpack.i.h.bf16 %v7100_v16  ;;  %v7316_v48 = vpop.permute.xlu1 %4139  ;;  %v8313_v40 = vunpack.i.l.bf16 %v7100_v16  ;;  %v2212_v39 = vsel %vm583_vm2, %v8318_v45, %v4081_v51  ;;  %v7336_v51 = vld [vmem:[%s8071_s4] ss:$20 sps:$4 sm:$0xff]  }
 0x34a   : > { %2600 = vmatpush2.bf16.msra.mxu1 %v2234_v22  ;;  %2538 = vmatprep.subr.bf16.mxu0 %v1879_v35  ;;  %v8314_v22 = vunpack.i.l.bf16 %v7219_v29  ;;  %v7324_v50 = vpop.permute.xlu0 %4154  ;;  %v2229_v36 = vpack.c.bf16 %v2205_v53, %v2204_v2  ;;  %v2213_v31 = vsel %vm583_vm2, %v8309_v34, %v4082_v43  ;;  %v8315_v10 = vunpack.i.h.bf16 %v7219_v29  ;;  %v7345_v43 = vld [vmem:[%s8071_s4 + $0x2c] ss:$20 sps:$4 sm:$0xff]  }
 0x34b   : > { %2601 = vmatprep.subr.bf16.mxu1 %v2232_v12  ;;  %v8312_v27 = vunpack.i.h.bf16 %v7324_v50  ;;  %v8310_v35 = vunpack.i.l.bf16 %v7324_v50  ;;  %v4107_v12 = vunpack.i.h.bf16 %v7161_v1  ;;  %v4106_v2 = vunpack.i.l.bf16 %v7161_v1  ;;  %8643 = vst [vmem:[#allocation29_spill] sm:$0xff] %v7345_v43 }
 0x34c   : > { %v8319_v53 = vunpack.i.h.bf16 %v7251_v30  ;;  %v8317_v33 = vunpack.i.l.bf16 %v7251_v30  ;;  %v4132_v23 = vunpack.i.h.bf16 %v7290_v62  ;;  %v4131_v21 = vunpack.i.l.bf16 %v7290_v62 }
 0x34d   : > { %2539 = vmatpush2.bf16.msra.mxu0 %v1878_v20  ;;  %v7349_v34 = vpop.permute.xlu1 %4149  ;;  %v2126_v1 = vsel %vm2119_vm13, %v4096_v4, %v8310_v35  ;;  %v2134_v20 = vsel %vm2119_vm13, %v8313_v40, %v4096_v4  ;;  %v2135_v62 = vsel %vm2119_vm13, %v8316_v52, %v4097_v11  ;;  %v2132_v35 = vsel %vm2119_vm13, %v8314_v22, %v4106_v2 }
 0x34e   : > { %2602 = vmatpush2.bf16.msra.mxu1 %v2231_v57  ;;  %8644 = vst [vmem:[#allocation77_spill] sm:$0xff] %v7349_v34  ;;  %v2127_v57 = vsel %vm2119_vm13, %v4097_v11, %v8312_v27  ;;  %v7371_v56 = vpop.permute.xlu0 %4159  ;;  %v2133_v27 = vsel %vm2119_vm13, %v8315_v10, %v4107_v12  ;;  %v8322_v4 = vunpack.i.h.bf16 %v7257_v59  ;;  %v8320_v40 = vunpack.i.l.bf16 %v7257_v59 }
 0x34f   : > { %2603 = vmatprep.subr.bf16.mxu1 %v2229_v36  ;;  %v2228_v36 = vpack.c.bf16 %v2213_v31, %v2212_v39  ;;  %v2154_v11 = vpack.c.bf16 %v2127_v57, %v2126_v1  ;;  %v8323_v39 = vunpack.i.h.bf16 %v7316_v48  ;;  %v8324_v31 = vunpack.i.l.bf16 %v7316_v48 }
 0x350   : > { %2541 = vmatmul.mubr.bf16.vlgmr.msra.gmra.mxu0 %v7336_v51  ;;  %v2124_v22 = vsel %vm2119_vm13, %v4106_v2, %v8317_v33  ;;  %v2125_v10 = vsel %vm2119_vm13, %v4107_v12, %v8319_v53  ;;  %v2122_v1 = vsel %vm2119_vm13, %v4131_v21, %v8320_v40  ;;  %v2123_v57 = vsel %vm2119_vm13, %v4132_v23, %v8322_v4  ;;  %v7409_v40 = vld [vmem:[%s8071_s4 + $0x28] ss:$20 sps:$4 sm:$0xff]  }
 0x351   : > { %2550 = vmatprep.mubr.bf16.mxu0 %v7345_v43  ;;  %v7391_v52 = vpop.permute.xlu1 %4169  ;;  %v8328_v2 = vunpack.i.h.bf16 %v7349_v34  ;;  %v8327_v33 = vunpack.i.l.bf16 %v7349_v34  ;;  %v2150_v12 = vpack.c.bf16 %v2133_v27, %v2132_v35  ;;  %v2151_v53 = vpack.c.bf16 %v2125_v10, %v2124_v22  ;;  %8646 = vst [vmem:[#allocation30_spill] sm:$0xff] %v7409_v40  ;;  %v7423_v22 = vld [vmem:[%s8071_s4 + $0x54] ss:$20 sps:$4 sm:$0xff]  }
 0x352   : > { %2604 = vmatpush2.bf16.msra.mxu1 %v2228_v36  ;;  %v2153_v36 = vpack.c.bf16 %v2135_v62, %v2134_v20  ;;  %v7403_v45 = vpop.permute.xlu0 %4164  ;;  %v4146_v46 = vunpack.i.l.bf16 %v7301_v47  ;;  %v2130_v20 = vsel %vm2119_vm13, %v8324_v31, %v4131_v21  ;;  %v2131_v27 = vsel %vm2119_vm13, %v8323_v39, %v4132_v23  ;;  %8647 = vst [vmem:[#allocation26_spill] sm:$0xff] %v7423_v22 }
 0x353   : > { %2605 = vmatprep.subr.bf16.mxu1 %v2154_v11  ;;  %8645 = vst [vmem:[#allocation50_spill] sm:$0xff] %v7403_v45  ;;  %v4147_v11 = vunpack.i.h.bf16 %v7301_v47  ;;  %v2148_v35 = vpack.c.bf16 %v2123_v57, %v2122_v1  ;;  %v4162_v10 = vunpack.i.h.bf16 %v7371_v56  ;;  %v4161_v47 = vunpack.i.l.bf16 %v7371_v56 }
 0x354   : > { %v8330_v62 = vunpack.i.h.bf16 %v7391_v52  ;;  %v8331_v21 = vunpack.i.l.bf16 %v7391_v52  ;;  %v8648_v3 = vunpack.i.l.bf16 %v7018_v15  ;;  %v8651_v39 = vunpack.i.h.bf16 %v6503_v9 }
 0x355   : > { %v7429_v4 = vpop.permute.xlu1 %4179  ;;  %v2121_v56 = vsel %vm2119_vm13, %v4147_v11, %v8328_v2  ;;  %v8650_v2 = vunpack.i.h.bf16 %v7018_v15 }
 0x356   : > { %2606 = vmatpush2.bf16.msra.mxu1 %v2153_v36  ;;  %v4175_v57 = vpop.permute.xlu0 %4174  ;;  %v2120_v36 = vsel %vm2119_vm13, %v4146_v46, %v8327_v33  ;;  %v8649_v33 = vunpack.i.l.bf16 %v6503_v9  ;;  %v2303_v1 = vsel %vm328_vm3, %v8330_v62, %v4162_v10  ;;  %v8652_v9 = vunpack.i.l.bf16 %v7403_v45 }
 0x357   : > { %2607 = vmatprep.subr.bf16.mxu1 %v2151_v53  ;;  %v4177_v53 = vunpack.i.h.bf16 %v4175_v57  ;;  %v4176_v6 = vunpack.i.l.bf16 %v4175_v57  ;;  %v1946_v31 = vsel %vm1938_vm10, %v8651_v39, %v8650_v2  ;;  %v2147_v57 = vpack.c.bf16 %v2131_v27, %v2130_v20 }
 0x358   : > { %2551 = vmatmul.mubr.bf16.gmra.mxu0 %v7409_v40  ;;  %v1945_v23 = vsel %vm1938_vm10, %v8649_v33, %v8648_v3  ;;  %v2145_v15 = vpack.c.bf16 %v2121_v56, %v2120_v36  ;;  %v2128_v33 = vsel %vm2119_vm13, %v8652_v9, %v4146_v46  ;;  %v8653_v3 = vunpack.i.h.bf16 %v7403_v45  ;;  %v7484_v36 = vld [vmem:[%s8071_s4 + $0x50] ss:$20 sps:$4 sm:$0xff]  }
 0x359   : > { %2560 = vmatprep.mubr.bf16.mxu0 %v7423_v22  ;;  %v7465_v22 = vpop.permute.xlu1 %4189  ;;  %v8654_v46 = vunpack.i.l.bf16 %v7429_v4  ;;  %v8655_v56 = vunpack.i.h.bf16 %v7429_v4  ;;  %v1974_v40 = vpack.c.bf16 %v1946_v31, %v1945_v23 }
 0x35a   : > { %2608 = vmatpush2.bf16.msra.mxu1 %v2150_v12  ;;  %v2302_v12 = vsel %vm328_vm3, %v8331_v21, %v4161_v47  ;;  %v2129_v39 = vsel %vm2119_vm13, %v8653_v3, %v4147_v11  ;;  %v4192_v2 = vunpack.i.h.bf16 %v7465_v22  ;;  %v8338_v20 = vunpack.i.l.bf16 %v7465_v22  ;;  %v7477_v27 = vpop.permute.xlu0 %4184 }
 0x35b   : > { %2609 = vmatprep.subr.bf16.mxu1 %v2148_v35  ;;  %v2292_v11 = vsel %vm328_vm3, %v4176_v6, %v8654_v46  ;;  %v2293_v9 = vsel %vm328_vm3, %v4177_v53, %v8655_v56  ;;  %v2321_v62 = vpack.c.bf16 %v2303_v1, %v2302_v12  ;;  %v2144_v43 = vpack.c.bf16 %v2129_v39, %v2128_v33  ;;  %v7523_v12 = vld [vmem:[%s8071_s4 + $0x8] ss:$20 sps:$4 sm:$0xff]  }
 0x35c   : > { %v2294_v3 = vsel %vm328_vm3, %v4161_v47, %v8338_v20  ;;  %v2295_v21 = vsel %vm328_vm3, %v4162_v10, %v4192_v2  ;;  %v7507_v47 = vld [vmem:[%s8071_s4 + $0x7c] ss:$20 sps:$4 sm:$0xff]   ;;  %v8656_v20 = vunpack.i.l.bf16 %v7477_v27  ;;  %v8657_v1 = vunpack.i.h.bf16 %v7477_v27 }
 0x35d   : > { %v4195_v35 = vpop.permute.xlu1 %4194  ;;  %v2322_v46 = vpack.c.bf16 %v2295_v21, %v2294_v3  ;;  %v8661_v39 = vunpack.i.h.bf16 %v6823_v28 }
 0x35e   : > { %2610 = vmatpush2.bf16.msra.mxu1 %v2147_v57  ;;  %v4197_v34 = vunpack.i.h.bf16 %v4195_v35  ;;  %v4196_v45 = vunpack.i.l.bf16 %v4195_v35  ;;  %v7502_v56 = vpop.permute.xlu0 %4199  ;;  %v2319_v57 = vpack.c.bf16 %v2293_v9, %v2292_v11  ;;  %v2300_v10 = vsel %vm328_vm3, %v8656_v20, %v4176_v6  ;;  %v8664_v9 = vld [vmem:[#allocation51_spill] sm:$0xff] }
 0x35f   : > { %2611 = vmatprep.subr.bf16.mxu1 %v2145_v15  ;;  %v2301_v31 = vsel %vm328_vm3, %v8657_v1, %v4177_v53  ;;  %v8339_v21 = vunpack.i.h.bf16 %v7502_v56  ;;  %v4201_v23 = vunpack.i.l.bf16 %v7502_v56  ;;  %2662 = vmatprep.subr.bf16.mxu0 %v2322_v46  ;;  %v8658_v6 = vunpack.i.l.bf16 %v6823_v28  ;;  %v8659_v15 = vld [vmem:[#allocation54_spill] sm:$0xff] }
 0x360   : > { %2561 = vmatmul.mubr.bf16.gmra.mxu0 %v7484_v36  ;;  %v8660_v33 = vunpack.i.l.bf16 %v8659_v15  ;;  %v8662_v20 = vunpack.i.h.bf16 %v8659_v15  ;;  %v8663_v28 = vunpack.i.h.bf16 %v6690_v18  ;;  %v8665_v3 = vunpack.i.h.bf16 %v8664_v9 }
 0x361   : > { %2663 = vmatpush1.bf16.msra.mxu0 %v2321_v62  ;;  %v7537_v11 = vpop.permute.xlu1 %4204  ;;  %v2291_v62 = vsel %vm328_vm3, %v4197_v34, %v8339_v21  ;;  %v2318_v1 = vpack.c.bf16 %v2301_v31, %v2300_v10  ;;  %2570 = vmatprep.mubr.bf16.mxu0 %v7507_v47  ;;  %v8666_v15 = vunpack.i.l.bf16 %v6690_v18 }
 0x362   : > { %2612 = vmatpush2.bf16.msra.mxu1 %v2144_v43  ;;  %v1943_v53 = vsel %vm1938_vm10, %v8660_v33, %v8658_v6  ;;  %v1944_v35 = vsel %vm1938_vm10, %v8662_v20, %v8661_v39  ;;  %2664 = vmatprep.subr.bf16.mxu0 %v2319_v57  ;;  %v2290_v43 = vsel %vm328_vm3, %v4196_v45, %v4201_v23  ;;  %v4206_v57 = vunpack.i.l.bf16 %v7537_v11  ;;  %v4210_v6 = vpop.permute.xlu0 %4209  ;;  %v7565_v20 = vld [vmem:[%s8071_s4 + $0x34] ss:$20 sps:$4 sm:$0xff]  }
 0x363   : > { %3178 = vmatprep.subr.bf16.mxu1 %v1974_v40  ;;  %v1942_v46 = vsel %vm1938_vm10, %v8665_v3, %v8663_v28  ;;  %v8340_v40 = vunpack.i.h.bf16 %v7537_v11  ;;  %v8667_v33 = vunpack.i.l.bf16 %v8664_v9  ;;  %v2316_v10 = vpack.c.bf16 %v2291_v62, %v2290_v43  ;;  %v7571_v28 = vld [vmem:[%s8071_s4 + $0x78] ss:$20 sps:$4 sm:$0xff]   ;;  %v8668_v3 = vld [vmem:[#allocation82_spill] sm:$0xff] }
 0x364   : > { %v1971_v31 = vpack.c.bf16 %v1944_v35, %v1943_v53  ;;  %v2298_v18 = vsel %vm328_vm3, %v4206_v57, %v4196_v45  ;;  %v8669_v43 = vpack.c.bf16 %v6765_v60, %v8668_v3  ;;  %v8671_v45 = vunpack.i.l.bf16 %v6203_v14 }
 0x365   : > { %v1941_v39 = vsel %vm1938_vm10, %v8667_v33, %v8666_v15  ;;  %2614 = vmatmul.mubr.bf16.vlgmr.msra.gmra.mxu1 %v7523_v12  ;;  %v2299_v9 = vsel %vm328_vm3, %v8340_v40, %v4197_v34  ;;  %2665 = vmatpush1.bf16.msra.mxu0 %v2318_v1  ;;  %v7584_v35 = vpop.permute.xlu1 %4214  ;;  %v8670_v15 = vunpack.i.l.bf16 %v8595_v25  ;;  %v4212_v21 = vunpack.i.h.bf16 %v4210_v6 }
 0x366   : > { %3179 = vmatpush3.bf16.msra.mxu1 %v8669_v43  ;;  %v2315_v53 = vpack.c.bf16 %v2299_v9, %v2298_v18  ;;  %2666 = vmatprep.subr.bf16.mxu0 %v2316_v10  ;;  %v1968_v62 = vpack.c.bf16 %v1942_v46, %v1941_v39  ;;  %v4211_v34 = vunpack.i.l.bf16 %v4210_v6  ;;  %v8341_v1 = vunpack.i.h.bf16 %v7584_v35  ;;  %v7594_v3 = vpop.permute.xlu0 %4219  ;;  %v7603_v39 = vld [vmem:[%s8071_s4 + $0x30] ss:$20 sps:$4 sm:$0xff]  }
 0x367   : > { %3180 = vmatprep.subr.bf16.mxu1 %v1971_v31  ;;  %v1939_v33 = vsel %vm1938_vm10, %v8671_v45, %v8670_v15  ;;  %v4216_v60 = vunpack.i.l.bf16 %v7584_v35  ;;  %2623 = vmatprep.mubr.bf16.mxu1 %v7565_v20  ;;  %v4222_v10 = vunpack.i.h.bf16 %v7594_v3  ;;  %v4221_v46 = vunpack.i.l.bf16 %v7594_v3  ;;  %v8674_v9 = vld [vmem:[#allocation60_spill] sm:$0xff] }
 0x368   : > { %2571 = vmatmul.mubr.bf16.gmra.mxu0 %v7571_v28  ;;  %v8672_v6 = vunpack.i.h.bf16 %v8595_v25  ;;  %v8673_v31 = vunpack.i.h.bf16 %v6203_v14  ;;  %v8675_v43 = vunpack.i.l.bf16 %v8674_v9  ;;  %v8676_v15 = vunpack.i.l.bf16 %v7206_v44 }
 0x369   : > { %2667 = vmatpush1.bf16.msra.mxu0 %v2315_v53  ;;  %v8677_v40 = vpack.c.bf16 %v6779_v37, %v6783_v0  ;;  %v2288_v14 = vsel %vm328_vm3, %v4211_v34, %v4216_v60  ;;  %v2289_v25 = vsel %vm328_vm3, %v4212_v21, %v8341_v1  ;;  %v2296_v37 = vsel %vm328_vm3, %v4221_v46, %v4211_v34 }
 0x36a   : > { %v1940_v18 = vsel %vm1938_vm10, %v8673_v31, %v8672_v6  ;;  %v2226_v45 = vsel %vm583_vm2, %v8676_v15, %v8675_v43  ;;  %v8678_v6 = vunpack.i.h.bf16 %v8674_v9  ;;  %v8679_v31 = vunpack.i.h.bf16 %v7206_v44  ;;  %v7646_v44 = vld [vmem:[%s8071_s4 + $0x5c] ss:$20 sps:$4 sm:$0xff]  }
 0x36b   : > { %3181 = vmatpush3.bf16.msra.mxu1 %v8677_v40  ;;  %v2297_v0 = vsel %vm328_vm3, %v4222_v10, %v4212_v21  ;;  %v2313_v40 = vpack.c.bf16 %v2289_v25, %v2288_v14  ;;  %v8680_v43 = vmov 0   ;;  %v1965_v15 = vpack.c.bf16 %v1940_v18, %v1939_v33  ;;  %v8683_v25 = vld [vmem:[#allocation70_spill] sm:$0xff]  ;;  %v8687_v18 = vld [vmem:[#allocation61_spill] sm:$0xff] }
 0x36c   : > { %v2227_v53 = vsel %vm583_vm2, %v8679_v31, %v8678_v6  ;;  %3182 = vmatprep.subr.bf16.mxu1 %v1968_v62  ;;  %2686 = vmatprep.mubr.bf16.mxu0 %v8680_v43  ;;  %v2312_v9 = vpack.c.bf16 %v2297_v0, %v2296_v37  ;;  %v7652_v6 = vld [vmem:[%s8071_s4 + $0x10] ss:$20 sps:$4 sm:$0xff]   ;;  %v8681_v21 = vunpack.i.l.bf16 %v6840_v49  ;;  %v8682_v62 = vunpack.i.l.bf16 %v6807_v8  ;;  %v8684_v31 = vld [vmem:[#allocation69_spill] sm:$0xff] }
 0x36d   : > { %2624 = vmatmul.mubr.bf16.gmra.mxu1 %v7603_v39  ;;  %2668 = vmatprep.subr.bf16.mxu0 %v2313_v40  ;;  %v2239_v34 = vpack.c.bf16 %v2227_v53, %v2226_v45  ;;  %v8685_v37 = vpack.c.bf16 %v8683_v25, %v8684_v31  ;;  %v8686_v33 = vunpack.i.l.bf16 %v7152_v41  ;;  %v8688_v45 = vunpack.i.l.bf16 %v8687_v18  ;;  %v7687_v31 = vld [vmem:[%s8071_s4 + $0x58] ss:$20 sps:$4 sm:$0xff]  }
 0x36e   : > { %v2224_v14 = vsel %vm583_vm2, %v8682_v62, %v8681_v21  ;;  %2669 = vmatpush1.bf16.msra.mxu0 %v2312_v9  ;;  %v8689_v0 = vunpack.i.h.bf16 %v7152_v41  ;;  %v8690_v40 = vunpack.i.h.bf16 %v8687_v18  ;;  %v8691_v9 = vunpack.i.h.bf16 %v6840_v49  ;;  %2633 = vmatprep.mubr.bf16.mxu1 %v7646_v44 }
 0x36f   : > { %3183 = vmatpush3.bf16.msra.mxu1 %v8685_v37  ;;  %v1860_v53 = vsel %vm1853_vm12, %v8688_v45, %v8686_v33  ;;  %v8692_v21 = vunpack.i.h.bf16 %v6807_v8  ;;  %3218 = vmatprep.subr.bf16.mxu0 %v2239_v34  ;;  %v8693_v49 = vunpack.i.l.bf16 %v6850_v32  ;;  %v8694_v8 = vld [vmem:[#allocation55_spill] sm:$0xff]  ;;  %v8697_v33 = vld [vmem:[#allocation72_spill] sm:$0xff] }
 0x370   : > { %v1861_v1 = vsel %vm1853_vm12, %v8690_v40, %v8689_v0  ;;  %3184 = vmatprep.subr.bf16.mxu1 %v1965_v15  ;;  %v8695_v37 = vunpack.i.l.bf16 %v8694_v8  ;;  %v8696_v34 = vld [vmem:[#allocation71_spill] sm:$0xff]  ;;  %v8701_v45 = vunpack.i.h.bf16 %v8694_v8  ;;  %v8702_v0 = vunpack.i.l.bf16 %v7008_v19 }
 0x371   : > { %v2225_v62 = vsel %vm583_vm2, %v8692_v21, %v8691_v9  ;;  %3080 = vmatmul.mubr.msk.bf16.vlgmr.msra.gmra.mxu0 %vm1144_vm8, %v7652_v6  ;;  %v1889_v41 = vpack.c.bf16 %v1861_v1, %v1860_v53  ;;  %v8698_v18 = vpack.c.bf16 %v8696_v34, %v8697_v33  ;;  %v8699_v1 = vpack.c.bf16 %v6920_v63, %v6916_v58  ;;  %v8710_v34 = vld [vmem:[#allocation78_spill] sm:$0xff] }
 0x372   : > { %v2236_v25 = vpack.c.bf16 %v2225_v62, %v2224_v14  ;;  %v1858_v15 = vsel %vm1853_vm12, %v8695_v37, %v8693_v49  ;;  %v8700_v14 = vunpack.i.h.bf16 %v6850_v32  ;;  %v8703_v40 = vunpack.i.l.bf16 %v6973_v54  ;;  %2696 = vmatprep.mubr.bf16.mxu0 %v8680_v43  ;;  %v7723_v32 = vld [vmem:[%s8071_s4 + $0x84] ss:$20 sps:$4 sm:$0xff]   ;;  %v8709_v37 = vld [vmem:[#allocation79_spill] sm:$0xff] }
 0x373   : > { %3185 = vmatpush3.bf16.msra.mxu1 %v8698_v18  ;;  %3219 = vmatpush3.bf16.msra.mxu0 %v8699_v1  ;;  %v8704_v21 = vunpack.i.h.bf16 %v7008_v19  ;;  %v8705_v62 = vunpack.i.h.bf16 %v6973_v54  ;;  %v7729_v54 = vld [vmem:[%s8071_s4 + $0x38] ss:$20 sps:$4 sm:$0xff]   ;;  %v8706_v19 = vunpack.i.l.bf16 %v6896_v13  ;;  %v8708_v8 = vpack.c.bf16 %v6878_v42, %v6874_v24 }
 0x374   : > { %v1859_v53 = vsel %vm1853_vm12, %v8701_v45, %v8700_v14  ;;  %v2222_v9 = vsel %vm583_vm2, %v8703_v40, %v8702_v0  ;;  %3186 = vmatprep.subr.bf16.mxu1 %v1889_v41  ;;  %3220 = vmatprep.subr.bf16.mxu0 %v2236_v25  ;;  %v8707_v41 = vunpack.i.l.bf16 %v6785_v61  ;;  %v8712_v33 = vunpack.i.h.bf16 %v6896_v13  ;;  %v7767_v40 = vld [vmem:[%s8071_s4 + $0x80] ss:$20 sps:$4 sm:$0xff]  }
 0x375   : > { %v2223_v58 = vsel %vm583_vm2, %v8705_v62, %v8704_v21  ;;  %2634 = vmatmul.mubr.bf16.gmra.mxu1 %v7687_v31  ;;  %v1886_v63 = vpack.c.bf16 %v1859_v53, %v1858_v15  ;;  %v8711_v15 = vpack.c.bf16 %v8709_v37, %v8710_v34  ;;  %v8713_v18 = vunpack.i.h.bf16 %v6785_v61  ;;  %v8720_v21 = vld [vmem:[#allocation83_spill] sm:$0xff] }
 0x376   : > { %v2233_v49 = vpack.c.bf16 %v2223_v58, %v2222_v9  ;;  %v1856_v25 = vsel %vm1853_vm12, %v8707_v41, %v8706_v19  ;;  %v8714_v14 = vunpack.i.l.bf16 %v7114_v5  ;;  %v8715_v45 = vunpack.i.l.bf16 %v7035_v26  ;;  %2643 = vmatprep.mubr.bf16.mxu1 %v7723_v32  ;;  %v8722_v58 = vld [vmem:[#allocation73_spill] sm:$0xff] }
 0x377   : > { %3187 = vmatpush3.bf16.msra.mxu1 %v8708_v8  ;;  %3221 = vmatpush3.bf16.msra.mxu0 %v8711_v15  ;;  %v1857_v1 = vsel %vm1853_vm12, %v8713_v18, %v8712_v33  ;;  %v8716_v24 = vunpack.i.h.bf16 %v7114_v5  ;;  %v8717_v42 = vunpack.i.h.bf16 %v7035_v26  ;;  %v8718_v5 = vunpack.i.l.bf16 %v7038_v7  ;;  %v7804_v18 = vld [vmem:[%s8071_s4 + $0x60] ss:$20 sps:$4 sm:$0xff]  }
 0x378   : > { %v2220_v53 = vsel %vm583_vm2, %v8715_v45, %v8714_v14  ;;  %3188 = vmatprep.subr.bf16.mxu1 %v1886_v63  ;;  %3222 = vmatprep.subr.bf16.mxu0 %v2233_v49  ;;  %v1883_v61 = vpack.c.bf16 %v1857_v1, %v1856_v25  ;;  %v8719_v26 = vunpack.i.l.bf16 %v6931_v55  ;;  %v8721_v62 = vpack.c.bf16 %v6799_v17, %v8720_v21  ;;  %v8723_v63 = vld [vmem:[#allocation74_spill] sm:$0xff]  ;;  %v8733_v14 = vld [vmem:[#allocation80_spill] sm:$0xff]  ;;  %v8734_v45 = vld [vmem:[#allocation81_spill] sm:$0xff] }
 0x379   : > { %v2221_v0 = vsel %vm583_vm2, %v8717_v42, %v8716_v24  ;;  %3081 = vmatmul.mubr.msk.bf16.gmra.mxu0 %vm1144_vm8, %v7729_v54  ;;  %v8724_v49 = vpack.c.bf16 %v8722_v58, %v8723_v63  ;;  %v8725_v19 = vunpack.i.h.bf16 %v7038_v7  ;;  %v8726_v41 = vunpack.i.h.bf16 %v6931_v55  ;;  %v8736_v24 = vld [vmem:[#allocation66_spill] sm:$0xff]  ;;  %v8737_v42 = vld [vmem:[#allocation65_spill] sm:$0xff] }
 0x37a   : > { %v2230_v13 = vpack.c.bf16 %v2221_v0, %v2220_v53  ;;  %v1854_v9 = vsel %vm1853_vm12, %v8719_v26, %v8718_v5  ;;  %v8727_v8 = vunpack.i.l.bf16 %v7100_v16  ;;  %v8728_v37 = vunpack.i.l.bf16 %v7324_v50  ;;  %2706 = vmatprep.mubr.bf16.mxu0 %v8680_v43 }
 0x37b   : > { %3189 = vmatpush3.bf16.msra.mxu1 %v8721_v62  ;;  %3223 = vmatpush3.bf16.msra.mxu0 %v8724_v49  ;;  %v1855_v25 = vsel %vm1853_vm12, %v8726_v41, %v8725_v19  ;;  %v8729_v17 = vunpack.i.h.bf16 %v7100_v16  ;;  %v8730_v15 = vunpack.i.h.bf16 %v7324_v50  ;;  %v8731_v16 = vunpack.i.l.bf16 %v7219_v29  ;;  %v8747_v19 = vld [vmem:[#allocation76_spill] sm:$0xff] }
 0x37c   : > { %v2142_v34 = vsel %vm2119_vm13, %v8728_v37, %v8727_v8  ;;  %3190 = vmatprep.subr.bf16.mxu1 %v1883_v61  ;;  %3224 = vmatprep.subr.bf16.mxu0 %v2230_v13  ;;  %v1880_v55 = vpack.c.bf16 %v1855_v25, %v1854_v9  ;;  %v8732_v50 = vunpack.i.l.bf16 %v7251_v30  ;;  %v8735_v53 = vpack.c.bf16 %v8733_v14, %v8734_v45  ;;  %v8749_v25 = vld [vmem:[#allocation47_spill] sm:$0xff]  ;;  %v8750_v8 = vld [vmem:[#allocation48_spill] sm:$0xff]  ;;  %v8758_v45 = vld [vmem:[#allocation50_spill] sm:$0xff] }
 0x37d   : > { %v2143_v33 = vsel %vm2119_vm13, %v8730_v15, %v8729_v17  ;;  %2644 = vmatmul.mubr.bf16.gmra.mxu1 %v7767_v40  ;;  %v8738_v0 = vpack.c.bf16 %v8736_v24, %v8737_v42  ;;  %v8739_v61 = vunpack.i.h.bf16 %v7219_v29  ;;  %v8740_v13 = vunpack.i.h.bf16 %v7251_v30  ;;  %v4289_v29 = vld [vmem:[%s8071_s4 + $0x4] ss:$20 sps:$4 sm:$0xff]   ;;  %v4278_v14 = vld [vmem:[%s8071_s4 + $0x88] ss:$20 sps:$4 sm:$0xff]  }
 0x37e   : > { %v2155_v7 = vpack.c.bf16 %v2143_v33, %v2142_v34  ;;  %v2140_v1 = vsel %vm2119_vm13, %v8732_v50, %v8731_v16  ;;  %v8741_v26 = vunpack.i.l.bf16 %v7391_v52  ;;  %v8742_v9 = vunpack.i.l.bf16 %v7465_v22  ;;  %2759 = vmatprep.mubr.bf16.mxu1 %v4289_v29  ;;  %v8762_v42 = vld [vmem:[#allocation42_spill] sm:$0xff] }
 0x37f   : > { %3191 = vmatpush3.bf16.msra.mxu1 %v8735_v53  ;;  %3225 = vmatpush3.bf16.msra.mxu0 %v8738_v0  ;;  %v2141_v5 = vsel %vm2119_vm13, %v8740_v13, %v8739_v61  ;;  %v8743_v62 = vunpack.i.h.bf16 %v7391_v52  ;;  %v8744_v49 = vunpack.i.l.bf16 %v7316_v48  ;;  %v8745_v52 = vunpack.i.l.bf16 %v7257_v59  ;;  %v8763_v0 = vld [vmem:[#allocation46_spill] sm:$0xff] }
 0x380   : > { %v2310_v21 = vsel %vm328_vm3, %v8742_v9, %v8741_v26  ;;  %3192 = vmatprep.subr.bf16.mxu1 %v1880_v55  ;;  %3226 = vmatprep.subr.bf16.mxu0 %v2155_v7  ;;  %v2152_v30 = vpack.c.bf16 %v2141_v5, %v2140_v1  ;;  %v8751_v37 = vpack.c.bf16 %v8749_v25, %v8750_v8  ;;  %v8752_v34 = vunpack.i.h.bf16 %v7316_v48  ;;  %v7957_v25 = vpop.permute.xlu1 %2358 }
 0x381   : > { %v2311_v58 = vsel %vm328_vm3, %v4192_v2, %v8743_v62  ;;  %3082 = vmatmul.mubr.msk.bf16.gmra.mxu0 %vm1144_vm8, %v7804_v18  ;;  %v2138_v22 = vsel %vm2119_vm13, %v8745_v52, %v8744_v49  ;;  %v8746_v2 = vld [vmem:[#allocation75_spill] sm:$0xff]  ;;  %v8753_v17 = vunpack.i.h.bf16 %v7257_v59  ;;  %v8754_v33 = vunpack.i.l.bf16 %v7477_v27  ;;  %v8769_v62 = vld [vmem:[#allocation29_spill] sm:$0xff]  ;;  %v8774_v52 = vld [vmem:[#allocation30_spill] sm:$0xff] }
 0x382   : > { %v2323_v63 = vpack.c.bf16 %v2311_v58, %v2310_v21  ;;  %v8748_v41 = vpack.c.bf16 %v8746_v2, %v8747_v19  ;;  %v8755_v55 = vunpack.i.l.bf16 %v7429_v4  ;;  %v8756_v16 = vunpack.i.h.bf16 %v7477_v27  ;;  %2716 = vmatprep.mubr.bf16.mxu0 %v8680_v43  ;;  %v8760_v27 = vld [vmem:[#allocation77_spill] sm:$0xff]  ;;  %v8775_v2 = vld [vmem:[#allocation36_spill] sm:$0xff]  ;;  %v8776_v19 = vld [vmem:[#allocation38_spill] sm:$0xff] }
 0x383   : > { %3227 = vmatpush3.bf16.msra.mxu0 %v8751_v37  ;;  %v2139_v15 = vsel %vm2119_vm13, %v8753_v17, %v8752_v34  ;;  %v8757_v50 = vunpack.i.h.bf16 %v7429_v4  ;;  %v8759_v53 = vunpack.i.l.bf16 %v8758_v45  ;;  %v8761_v24 = vunpack.i.l.bf16 %v8760_v27 }
 0x384   : > { %3193 = vmatpush3.bf16.msra.mxu1 %v8748_v41  ;;  %v2308_v7 = vsel %vm328_vm3, %v8755_v55, %v8754_v33  ;;  %3228 = vmatprep.subr.bf16.mxu0 %v2152_v30  ;;  %v2149_v59 = vpack.c.bf16 %v2139_v15, %v2138_v22  ;;  %v8764_v61 = vpack.c.bf16 %v8762_v42, %v8763_v0  ;;  %v8766_v43 = vunpack.i.h.bf16 %v8760_v27  ;;  %v8770_v30 = vld [vmem:[#allocation25_spill] sm:$0xff]  ;;  %v7964_v33 = vpop.permute.xlu0 %2363 }
 0x385   : > { %v2309_v1 = vsel %vm328_vm3, %v8757_v50, %v8756_v16  ;;  %3282 = vmatprep.subr.bf16.mxu1 %v2323_v63  ;;  %v2136_v4 = vsel %vm2119_vm13, %v8761_v24, %v8759_v53  ;;  %v2306_v5 = vsel %vm328_vm3, %v4201_v23, %v4206_v57  ;;  %v8767_v26 = vunpack.i.h.bf16 %v7537_v11  ;;  %v4290_v57 = vld [vmem:[%s8071_s4 + $0xc] ss:$20 sps:$4 sm:$0xff]   ;;  %v7975_v53 = vpop.permute.xlu1 %2368 }
 0x386   : > { %v2320_v48 = vpack.c.bf16 %v2309_v1, %v2308_v7  ;;  %v8768_v9 = vunpack.i.h.bf16 %v7502_v56  ;;  %v2304_v56 = vsel %vm328_vm3, %v4216_v60, %v4221_v46  ;;  %v8773_v23 = vunpack.i.h.bf16 %v7584_v35  ;;  %v8778_v35 = vld [vmem:[#allocation26_spill] sm:$0xff] }
 0x387   : > { %2760 = vmatmul.mubr.bf16.vlgmr.msra.gmra.mxu1 %v7336_v51  ;;  %3229 = vmatpush3.bf16.msra.mxu0 %v8764_v61  ;;  %v8765_v51 = vunpack.i.h.bf16 %v8758_v45  ;;  %v8777_v60 = vpack.c.bf16 %v8775_v2, %v8776_v19 }
 0x388   : > { %3283 = vmatpush3.bf16.msra.mxu1 %v2323_v63  ;;  %v2307_v21 = vsel %vm328_vm3, %v8768_v9, %v8767_v26  ;;  %3230 = vmatprep.subr.bf16.mxu0 %v2149_v59  ;;  %v8771_v63 = vld [vmem:[#allocation37_spill] sm:$0xff]  ;;  %v2305_v11 = vsel %vm328_vm3, %v8773_v23, %v4222_v10 }
 0x389   : > { %v2137_v13 = vsel %vm2119_vm13, %v8766_v43, %v8765_v51  ;;  %3284 = vmatprep.subr.bf16.mxu1 %v2320_v48  ;;  %2767 = vmatprep.mubr.bf16.mxu1 %v8769_v62  ;;  %v2317_v29 = vpack.c.bf16 %v2307_v21, %v2306_v5  ;;  %v8772_v49 = vpack.c.bf16 %v8770_v30, %v8771_v63  ;;  %v8780_v5 = vld [vmem:[#allocation27_spill] sm:$0xff]  ;;  %v8781_v63 = vld [vmem:[#allocation32_spill] sm:$0xff] }
 0x38a   : > { %3083 = vmatmul.mubr.msk.bf16.gmra.mxu0 %vm1144_vm8, %v4278_v14  ;;  %v2146_v58 = vpack.c.bf16 %v2137_v13, %v2136_v4  ;;  %v2314_v22 = vpack.c.bf16 %v2305_v11, %v2304_v56  ;;  %v8779_v4 = vld [vmem:[#allocation31_spill] sm:$0xff] }
 0x38b   : > { %3231 = vmatpush3.bf16.msra.mxu0 %v8772_v49  ;;  %2824 = vmatprep.mubr.bf16.mxu0 %v4290_v57 }
 0x38c   : > { %3285 = vmatpush3.bf16.msra.mxu1 %v2320_v48  ;;  %3232 = vmatprep.subr.bf16.mxu0 %v2146_v58  ;;  %v7982_v58 = vpop.permute.xlu0 %2373 }
 0x38d   : > { %3286 = vmatprep.subr.bf16.mxu1 %v2317_v29 }
 0x38f   : > { %2768 = vmatmul.mubr.bf16.gmra.mxu1 %v8774_v52  ;;  %3233 = vmatpush3.bf16.msra.mxu0 %v8777_v60 }
 0x390   : > { %3287 = vmatpush3.bf16.msra.mxu1 %v2317_v29  ;;  %2775 = vmatprep.mubr.bf16.mxu1 %v8778_v35 }
 0x391   : > { %3288 = vmatprep.subr.bf16.mxu1 %v2314_v22 }
 0x392   : > { %2825 = vmatmul.mubr.bf16.vlgmr.msra.gmra.mxu0 %v7523_v12 }
 0x393   : > { %2832 = vmatprep.mubr.bf16.mxu0 %v7565_v20 }
 0x394   : > { %3289 = vmatpush3.bf16.msra.mxu1 %v2314_v22  ;;  %v8782_v22 = vld [vmem:[#allocation28_spill] sm:$0xff] }
 0x397   : > { %2776 = vmatmul.mubr.bf16.gmra.mxu1 %v7484_v36 }
 0x398   : > { %2783 = vmatprep.mubr.bf16.mxu1 %v7507_v47 }
 0x39a   : > { %2833 = vmatmul.mubr.bf16.gmra.mxu0 %v7603_v39 }
 0x39b   : > { %2840 = vmatprep.mubr.bf16.mxu0 %v7646_v44 }
 0x39f   : > { %2784 = vmatmul.mubr.bf16.gmra.mxu1 %v7571_v28 }
 0x3a0   : > { %3290 = vmatprep.mubr.msk.bf16.mxu1 %vm1144_vm8, %v7652_v6 }
 0x3a2   : > { %2841 = vmatmul.mubr.bf16.gmra.mxu0 %v7687_v31 }
 0x3a3   : > { %2848 = vmatprep.mubr.bf16.mxu0 %v7723_v32 }
 0x3a7   : > { %3291 = vmatmul.mubr.msk.bf16.vlgmr.msra.gmra.mxu1 %vm1144_vm8, %v7729_v54 }
 0x3a8   : > { %3294 = vmatprep.mubr.msk.bf16.mxu1 %vm1144_vm8, %v7804_v18 }
 0x3aa   : > { %2849 = vmatmul.mubr.bf16.gmra.mxu0 %v7767_v40 }
 0x3af   : > { %3295 = vmatmul.mubr.msk.bf16.gmra.mxu1 %vm1144_vm8, %v4278_v14 }
 0x410   : > { %v2542_v38 = vpop.f32.mrf.mxu0 }
 0x411   : > { %v2543_v34 = vadd.f32 %v2542_v38, %v7957_v25  ;;  %v7990_v38 = vpop.permute.xlu1 %2378 }
 0x412   : > { %v2544_v36 = vpop.f32.mrf.mxu0 }
 0x413   : > { %v2545_v55 = vadd.f32 %v2544_v36, %v7957_v25 }
 0x414   : > { %v2546_v47 = vpop.f32.mrf.mxu0 }
 0x415   : > { %v2547_v1 = vadd.f32 %v2546_v47, %v7964_v33 }
 0x416   : > { %v2548_v12 = vpop.f32.mrf.mxu0 }
 0x417   : > { %v2549_v27 = vadd.f32 %v2548_v12, %v7964_v33  ;;  %v8783_v12 = vld [vmem:[#allocation22_spill] sm:$0xff] }
 0x418   : > { %v2552_v20 = vpop.f32.mrf.mxu0 }
 0x419   : > { %v2553_v43 = vadd.f32 %v2552_v20, %v7975_v53 }
 0x41a   : > { %v2554_v28 = vpop.f32.mrf.mxu0 }
 0x41b   : > { %v2555_v29 = vadd.f32 %v2554_v28, %v7975_v53 }
 0x41c   : > { %v2556_v3 = vpop.f32.mrf.mxu0 }
 0x41d   : > { %v2557_v57 = vadd.f32 %v2556_v3, %v7982_v58 }
 0x41e   : > { %v2558_v10 = vpop.f32.mrf.mxu0 }
 0x41f   : > { %v2559_v36 = vadd.f32 %v2558_v10, %v7982_v58  ;;  %v7999_v10 = vpop.permute.xlu0 %2383 }
 0x420   : > { %v7945_v46 = vpop.f32.mrf.mxu0 }
 0x422   : > { %v7947_v39 = vpop.f32.mrf.mxu0 }
 0x424   : > { %v7949_v44 = vpop.f32.mrf.mxu0 }
 0x425   : > { %v2615_v6 = vpop.f32.mrf.mxu1 }
 0x426   : > { %v7951_v31 = vpop.f32.mrf.mxu0  ;;  %v2616_v7 = vadd.f32 %v2615_v6, %v2543_v34 }
 0x427   : > { %v2617_v32 = vpop.f32.mrf.mxu1 }
 0x428   : > { %v7953_v54 = vpop.f32.mrf.mxu0  ;;  %v2618_v59 = vadd.f32 %v2617_v32, %v2545_v55  ;;  %v2563_v32 = vadd.f32 %v7945_v46, %v7990_v38 }
 0x429   : > { %v2619_v40 = vpop.f32.mrf.mxu1 }
 0x42a   : > { %v7955_v18 = vpop.f32.mrf.mxu0  ;;  %v2620_v24 = vadd.f32 %v2619_v40, %v2547_v1 }
 0x42b   : > { %v2621_v41 = vpop.f32.mrf.mxu1 }
 0x42c   : > { %v7959_v8 = vpop.f32.mrf.mxu0  ;;  %v2622_v13 = vadd.f32 %v2621_v41, %v2549_v27  ;;  %v8784_v41 = vld [vmem:[#allocation18_spill] sm:$0xff]  ;;  %v8786_v27 = vld [vmem:[#allocation20_spill] sm:$0xff] }
 0x42d   : > { %v2625_v37 = vpop.f32.mrf.mxu1 }
 0x42e   : > { %v7962_v17 = vpop.f32.mrf.mxu0  ;;  %v2626_v30 = vadd.f32 %v2625_v37, %v2553_v43  ;;  %v8787_v43 = vld [vmem:[#allocation15_spill] sm:$0xff] }
 0x42f   : > { %v2627_v15 = vpop.f32.mrf.mxu1 }
 0x430   : > { %v2628_v52 = vadd.f32 %v2627_v15, %v2555_v29 }
 0x431   : > { %v2629_v16 = vpop.f32.mrf.mxu1  ;;  %v2688_v50 = vpop.f32.mrf.mxu0 }
 0x432   : > { %v2689_v48 = vadd.f32 %v2688_v50, %v2616_v7  ;;  %v2630_v47 = vadd.f32 %v2629_v16, %v2557_v57  ;;  %v2565_v7 = vadd.f32 %v7947_v39, %v7990_v38  ;;  %v8785_v50 = vld [vmem:[#allocation24_spill] sm:$0xff]  ;;  %v8009_v39 = vpop.permute.xlu1 %2388 }
 0x433   : > { %v2631_v14 = vpop.f32.mrf.mxu1  ;;  %v2690_v45 = vpop.f32.mrf.mxu0 }
 0x434   : > { %v2922_v42 = vadd.f32 %v2689_v48, %v8779_v4  ;;  %v2691_v0 = vadd.f32 %v2690_v45, %v2618_v59  ;;  %v2632_v40 = vadd.f32 %v2631_v14, %v2559_v36  ;;  %v2567_v14 = vadd.f32 %v7949_v44, %v7999_v10 }
 0x435   : > { %v2635_v61 = vpop.f32.mrf.mxu1  ;;  %v2692_v51 = vpop.f32.mrf.mxu0 }
 0x436   : > { %2946 = vst [vmem:[%s7973_s27] sm:$0xff] %v2922_v42  ;;  %v2923_v26 = vadd.f32 %v2691_v0, %v8780_v5  ;;  %v2693_v9 = vadd.f32 %v2692_v51, %v2620_v24  ;;  %v2636_v16 = vadd.f32 %v2635_v61, %v2563_v32  ;;  %v2569_v61 = vadd.f32 %v7951_v31, %v7999_v10  ;;  %v8019_v31 = vpop.permute.xlu0 %2393 }
 0x437   : > { %v2637_v21 = vpop.f32.mrf.mxu1  ;;  %v2694_v62 = vpop.f32.mrf.mxu0 }
 0x438   : > { %2947 = vst [vmem:[%s7973_s27 + $0x8] sm:$0xff] %v2923_v26  ;;  %v2925_v49 = vadd.f32 %v2693_v9, %v8781_v63  ;;  %v2695_v56 = vadd.f32 %v2694_v62, %v2622_v13  ;;  %v2638_v45 = vadd.f32 %v2637_v21, %v2565_v7  ;;  %v2573_v9 = vadd.f32 %v7953_v54, %v8009_v39  ;;  %v8788_v62 = vld [vmem:[#allocation11_spill] sm:$0xff]  ;;  %v8793_v7 = vld [vmem:[#allocation8_spill] sm:$0xff] }
 0x439   : > { %v2639_v23 = vpop.f32.mrf.mxu1  ;;  %v2698_v11 = vpop.f32.mrf.mxu0 }
 0x43a   : > { %2949 = vst [vmem:[%s7973_s27 + $0x18] sm:$0xff] %v2925_v49  ;;  %v2926_v2 = vadd.f32 %v2695_v56, %v8782_v22  ;;  %v2699_v19 = vadd.f32 %v2698_v11, %v2626_v30  ;;  %v2640_v51 = vadd.f32 %v2639_v23, %v2567_v14  ;;  %v2575_v56 = vadd.f32 %v7955_v18, %v8009_v39  ;;  %v8789_v11 = vld [vmem:[#allocation16_spill] sm:$0xff] }
 0x43b   : > { %v2641_v60 = vpop.f32.mrf.mxu1  ;;  %v2700_v35 = vpop.f32.mrf.mxu0 }
 0x43c   : > { %2950 = vst [vmem:[%s7973_s27 + $0x20] sm:$0xff] %v2926_v2  ;;  %v2928_v20 = vadd.f32 %v2699_v19, %v8783_v12  ;;  %v2701_v28 = vadd.f32 %v2700_v35, %v2628_v52  ;;  %v2642_v21 = vadd.f32 %v2641_v60, %v2569_v61  ;;  %v2577_v2 = vadd.f32 %v7959_v8, %v8019_v31  ;;  %v8790_v60 = vld [vmem:[#allocation12_spill] sm:$0xff] }
 0x43d   : > { %v2645_v6 = vpop.f32.mrf.mxu1  ;;  %v2702_v3 = vpop.f32.mrf.mxu0  ;;  %v2579_v12 = vadd.f32 %v7962_v17, %v8019_v31 }
 0x43e   : > { %2952 = vst [vmem:[%s7973_s27 + $0x30] sm:$0xff] %v2928_v20  ;;  %v2929_v37 = vadd.f32 %v2701_v28, %v8784_v41  ;;  %v2703_v34 = vadd.f32 %v2702_v3, %v2630_v47  ;;  %v2646_v23 = vadd.f32 %v2645_v6, %v2573_v9  ;;  %v8791_v28 = vld [vmem:[#allocation7_spill] sm:$0xff]  ;;  %v8792_v41 = vld [vmem:[#allocation4_spill] sm:$0xff] }
 0x43f   : > { %v2647_v15 = vpop.f32.mrf.mxu1  ;;  %v2704_v55 = vpop.f32.mrf.mxu0 }
 0x440   : > { %2953 = vst [vmem:[%s7973_s27 + $0x38] sm:$0xff] %v2929_v37  ;;  %v2931_v1 = vadd.f32 %v2703_v34, %v8785_v50  ;;  %v2705_v59 = vadd.f32 %v2704_v55, %v2632_v40  ;;  %v2648_v19 = vadd.f32 %v2647_v15, %v2575_v56 }
 0x441   : > { %v2649_v46 = vpop.f32.mrf.mxu1  ;;  %v2708_v48 = vpop.f32.mrf.mxu0 }
 0x442   : > { %2955 = vst [vmem:[%s7973_s27 + $0x48] sm:$0xff] %v2931_v1  ;;  %v2932_v24 = vadd.f32 %v2705_v59, %v8786_v27  ;;  %v2709_v4 = vadd.f32 %v2708_v48, %v2636_v16  ;;  %v2650_v20 = vadd.f32 %v2649_v46, %v2577_v2  ;;  %v8794_v59 = vld [vmem:[#allocation6_spill] sm:$0xff] }
 0x443   : > { %v2651_v42 = vpop.f32.mrf.mxu1  ;;  %v2710_v0 = vpop.f32.mrf.mxu0 }
 0x444   : > { %2956 = vst [vmem:[%s7973_s27 + $0x50] sm:$0xff] %v2932_v24  ;;  %v2934_v13 = vadd.f32 %v2709_v4, %v8787_v43  ;;  %v2711_v5 = vadd.f32 %v2710_v0, %v2638_v45  ;;  %v2652_v8 = vadd.f32 %v2651_v42, %v2579_v12 }
 0x445   : > { %v2712_v44 = vpop.f32.mrf.mxu0 }
 0x446   : > { %2958 = vst [vmem:[%s7973_s27 + $0x60] sm:$0xff] %v2934_v13  ;;  %v2935_v29 = vadd.f32 %v2711_v5, %v8788_v62  ;;  %v2713_v30 = vadd.f32 %v2712_v44, %v2640_v51 }
 0x447   : > { %v3194_v26 = vpop.f32.mrf.mxu1  ;;  %v2714_v63 = vpop.f32.mrf.mxu0 }
 0x448   : > { %2959 = vst [vmem:[%s7973_s27 + $0x68] sm:$0xff] %v2935_v29  ;;  %v2937_v57 = vadd.f32 %v2713_v30, %v8789_v11  ;;  %v2715_v52 = vadd.f32 %v2714_v63, %v2642_v21 }
 0x449   : > { %v3195_v49 = vpop.f32.mrf.mxu1 }
 0x44a   : > { %v2718_v54 = vpop.f32.mrf.mxu0  ;;  %2961 = vst [vmem:[%s7973_s27 + $0x78] sm:$0xff] %v2937_v57  ;;  %v2938_v35 = vadd.f32 %v2715_v52, %v8790_v60  ;;  %v3196_v21 = vadd.f32 %v3195_v49, %v3194_v26 }
 0x44b   : > { %v3197_v22 = vpop.f32.mrf.mxu1  ;;  %v2719_v36 = vadd.f32 %v2718_v54, %v2646_v23 }
 0x44c   : > { %v2720_v47 = vpop.f32.mrf.mxu0  ;;  %2962 = vst [vmem:[%s7973_s27 + $0x80] sm:$0xff] %v2938_v35  ;;  %v2762_v52 = vadd.f32 %v3196_v21, %v7957_v25  ;;  %v8800_v21 = vld [vmem:[#allocation2_spill] sm:$0xff] }
 0x44d   : > { %v3198_v18 = vpop.f32.mrf.mxu1  ;;  %v2940_v6 = vadd.f32 %v2719_v36, %v8791_v28  ;;  %v2721_v3 = vadd.f32 %v2720_v47, %v2648_v19 }
 0x44e   : > { %v2722_v32 = vpop.f32.mrf.mxu0  ;;  %v3199_v54 = vadd.f32 %v3198_v18, %v3197_v22 }
 0x44f   : > { %v3200_v40 = vpop.f32.mrf.mxu1  ;;  %2964 = vst [vmem:[%s7973_s27 + $0x90] sm:$0xff] %v2940_v6  ;;  %v2941_v37 = vadd.f32 %v2721_v3, %v8792_v41  ;;  %v2723_v34 = vadd.f32 %v2722_v32, %v2650_v20  ;;  %v8795_v3 = vld [vmem:[#allocation40_spill] sm:$0xff]  ;;  %v8796_v41 = vld [vmem:[#allocation10_spill] sm:$0xff] }
 0x450   : > { %v2724_v15 = vpop.f32.mrf.mxu0  ;;  %v2765_v6 = vadd.f32 %v3199_v54, %v7964_v33 }
 0x451   : > { %v3201_v55 = vpop.f32.mrf.mxu1  ;;  %2965 = vst [vmem:[%s7973_s27 + $0x98] sm:$0xff] %v2941_v37  ;;  %v2943_v16 = vadd.f32 %v2723_v34, %v8793_v7  ;;  %v2725_v17 = vadd.f32 %v2724_v15, %v2652_v8 }
 0x452   : > { %v3234_v1 = vpop.f32.mrf.mxu0  ;;  %v3202_v5 = vadd.f32 %v3201_v55, %v3200_v40 }
 0x453   : > { %v3203_v50 = vpop.f32.mrf.mxu1  ;;  %2967 = vst [vmem:[%s7973_s27 + $0xa8] sm:$0xff] %v2943_v16  ;;  %v2944_v46 = vadd.f32 %v2725_v17, %v8794_v59 }
 0x454   : > { %v3235_v14 = vpop.f32.mrf.mxu0  ;;  %v2770_v63 = vadd.f32 %v3202_v5, %v7975_v53 }
 0x455   : > { %v3204_v48 = vpop.f32.mrf.mxu1  ;;  %2968 = vst [vmem:[%s7973_s27 + $0xb0] sm:$0xff] %v2944_v46  ;;  %v3236_v23 = vadd.f32 %v3235_v14, %v3234_v1 }
 0x456   : > { %v3237_v27 = vpop.f32.mrf.mxu0  ;;  %v3205_v56 = vadd.f32 %v3204_v48, %v3203_v50  ;;  %v8797_v50 = vld [vmem:[#allocation39_spill] sm:$0xff] }
 0x457   : > { %v3206_v45 = vpop.f32.mrf.mxu1  ;;  %v2827_v47 = vadd.f32 %v3236_v23, %v2762_v52  ;;  %v8801_v23 = vld [vmem:[#allocation5_spill] sm:$0xff] }
 0x458   : > { %v3238_v4 = vpop.f32.mrf.mxu0  ;;  %v2773_v36 = vadd.f32 %v3205_v56, %v7982_v58 }
 0x459   : > { %v3207_v24 = vpop.f32.mrf.mxu1  ;;  %v3239_v26 = vadd.f32 %v3238_v4, %v3237_v27  ;;  %v8798_v27 = vld [vmem:[#allocation14_spill] sm:$0xff] }
 0x45a   : > { %v3240_v0 = vpop.f32.mrf.mxu0  ;;  %v3208_v12 = vadd.f32 %v3207_v24, %v3206_v45 }
 0x45b   : > { %v3209_v42 = vpop.f32.mrf.mxu1  ;;  %v2830_v34 = vadd.f32 %v3239_v26, %v2765_v6 }
 0x45c   : > { %v3241_v51 = vpop.f32.mrf.mxu0  ;;  %v2778_v15 = vadd.f32 %v3208_v12, %v7990_v38 }
 0x45d   : > { %v3210_v61 = vpop.f32.mrf.mxu1  ;;  %v3242_v62 = vadd.f32 %v3241_v51, %v3240_v0 }
 0x45e   : > { %v3243_v13 = vpop.f32.mrf.mxu0  ;;  %v3211_v55 = vadd.f32 %v3210_v61, %v3209_v42 }
 0x45f   : > { %v3212_v43 = vpop.f32.mrf.mxu1  ;;  %v2835_v19 = vadd.f32 %v3242_v62, %v2770_v63 }
 0x460   : > { %v3244_v9 = vpop.f32.mrf.mxu0 }
 0x461   : > { %v3213_v44 = vpop.f32.mrf.mxu1  ;;  %v3245_v2 = vadd.f32 %v3244_v9, %v3243_v13 }
 0x462   : > { %v3246_v30 = vpop.f32.mrf.mxu0  ;;  %v3214_v20 = vadd.f32 %v3213_v44, %v3212_v43  ;;  %v8799_v44 = vld [vmem:[#allocation45_spill] sm:$0xff] }
 0x463   : > { %v3215_v29 = vpop.f32.mrf.mxu1  ;;  %v2838_v22 = vadd.f32 %v3245_v2, %v2773_v36 }
 0x464   : > { %v3247_v57 = vpop.f32.mrf.mxu0  ;;  %v2786_v7 = vadd.f32 %v3214_v20, %v8009_v39  ;;  %v2781_v39 = vadd.f32 %v3211_v55, %v7999_v10 }
 0x465   : > { %v3216_v11 = vpop.f32.mrf.mxu1  ;;  %v3248_v8 = vadd.f32 %v3247_v57, %v3246_v30 }
 0x466   : > { %v3249_v60 = vpop.f32.mrf.mxu0  ;;  %v3217_v17 = vadd.f32 %v3216_v11, %v3215_v29  ;;  %v8802_v11 = vld [vmem:[#allocation3_spill] sm:$0xff] }
 0x467   : > { %v3292_v35 = vpop.f32.mrf.mxu1  ;;  %v2843_v38 = vadd.f32 %v3248_v8, %v2778_v15 }
 0x468   : > { %v2900_v49 = vadd.f32 %v3292_v35, %v2835_v19  ;;  %v3250_v53 = vpop.f32.mrf.mxu0  ;;  %v2789_v61 = vadd.f32 %v3217_v17, %v8019_v31 }
 0x469   : > { %v2891_v28 = vpop.f32.mrf.mxu1  ;;  %v3251_v45 = vadd.f32 %v3250_v53, %v3249_v60 }
 0x46a   : > { %v2930_v32 = vadd.f32 %v2900_v49, %v8795_v3  ;;  %v2892_v25 = vadd.f32 %v2891_v28, %v2827_v47  ;;  %v3252_v18 = vpop.f32.mrf.mxu0 }
 0x46b   : > { %v3293_v40 = vpop.f32.mrf.mxu1  ;;  %v2846_v30 = vadd.f32 %v3251_v45, %v2781_v39 }
 0x46c   : > { %2954 = vst [vmem:[%s7973_s27 + $0x40] sm:$0xff] %v2930_v32  ;;  %v2924_v58 = vadd.f32 %v2892_v25, %v8796_v41  ;;  %v2903_v37 = vadd.f32 %v3293_v40, %v2838_v22  ;;  %v3253_v33 = vpop.f32.mrf.mxu0 }
 0x46d   : > { %v2894_v16 = vpop.f32.mrf.mxu1  ;;  %v3254_v59 = vadd.f32 %v3253_v33, %v3252_v18 }
 0x46e   : > { %2948 = vst [vmem:[%s7973_s27 + $0x10] sm:$0xff] %v2924_v58  ;;  %v2933_v1 = vadd.f32 %v2903_v37, %v8797_v50  ;;  %v2895_v46 = vadd.f32 %v2894_v16, %v2830_v34  ;;  %v3255_v48 = vpop.f32.mrf.mxu0 }
 0x46f   : > { %v3296_v14 = vpop.f32.mrf.mxu1  ;;  %v2851_v4 = vadd.f32 %v3254_v59, %v2786_v7 }
 0x470   : > { %2957 = vst [vmem:[%s7973_s27 + $0x58] sm:$0xff] %v2933_v1  ;;  %v2927_v24 = vadd.f32 %v2895_v46, %v8798_v27  ;;  %v3256_v42 = vpop.f32.mrf.mxu0 }
 0x471   : > { %v2907_v0 = vpop.f32.mrf.mxu1  ;;  %v2916_v51 = vadd.f32 %v3296_v14, %v2851_v4  ;;  %v3257_v43 = vadd.f32 %v3256_v42, %v3255_v48 }
 0x472   : > { %2951 = vst [vmem:[%s7973_s27 + $0x28] sm:$0xff] %v2927_v24  ;;  %v2908_v13 = vadd.f32 %v2907_v0, %v2843_v38 }
 0x473   : > { %v3297_v5 = vpop.f32.mrf.mxu1  ;;  %v2942_v9 = vadd.f32 %v2916_v51, %v8799_v44  ;;  %v2854_v29 = vadd.f32 %v3257_v43, %v2789_v61 }
 0x474   : > { %v2936_v62 = vadd.f32 %v2908_v13, %v8800_v21 }
 0x475   : > { %v2910_v63 = vpop.f32.mrf.mxu1  ;;  %2966 = vst [vmem:[%s7973_s27 + $0xa0] sm:$0xff] %v2942_v9  ;;  %v2919_v10 = vadd.f32 %v3297_v5, %v2854_v29 }
 0x476   : > { %2960 = vst [vmem:[%s7973_s27 + $0x70] sm:$0xff] %v2936_v62  ;;  %v2911_v56 = vadd.f32 %v2910_v63, %v2846_v30 }
 0x477   : > { %v2945_v31 = vadd.f32 %v2919_v10, %v8801_v23 }
 0x478   : > { %v2939_v57 = vadd.f32 %v2911_v56, %v8802_v11 }
 0x479   : > { %2969 = vst [vmem:[%s7973_s27 + $0xb8] sm:$0xff] %v2945_v31 }
 0x47a   : > { %2963 = vst [vmem:[%s7973_s27 + $0x88] sm:$0xff] %v2939_v57 }
 0x47b PF: > { %s16_s21 = sadd.s32 1, %s4297_s21  }
 0x47c   : > { %p13_p4 = scmp.ge.s32.totalorder %s16_s21, 4  }
 0x47e   :  { %15 = sbr.rel (!%p13_p4) target bundleno = 1 (0x1), region = 74 }

</bundles_post_ra>
